<compile_context>
chip_gen: v5e
topology: v5e:2x2
jax: 0.10.0
libtpu: 0.0.40
codegen_flags: <defaults>
</compile_context>

<pallas_src>
import math
from functools import partial

import jax
import jax.numpy as jnp
from jax.experimental import pallas as pl
from jax.experimental.pallas import tpu as pltpu


# -----------------------------------------------------------------------------
# Per-generation VMEM budget (leave ~16 MiB headroom for Mosaic scratch)
# -----------------------------------------------------------------------------
try:
    _VMEM_CAP = int(pltpu.get_tpu_info().vmem_capacity_bytes)
except Exception:  # conservative fallback if the query is unavailable
    _VMEM_CAP = 64 * 1024 * 1024
_VMEM_LIMIT = int(max(32 * 1024 * 1024,
                      min(_VMEM_CAP - 16 * 1024 * 1024, 64 * 1024 * 1024)))

_PALLAS_MIN_M = 128      # below this, leave the matmul to XLA (perf review)
_CONV3X3_MIN_PIX = 64    # per-image output pixels below which XLA handles c2


def _round_up(x, m):
    return (x + m - 1) // m * m


# -----------------------------------------------------------------------------
# Pallas kernels
# -----------------------------------------------------------------------------

def _mm_kernel(a_ref, b_ref, bias_ref, o_ref, acc_ref, *, relu):
    k = pl.program_id(2)

    @pl.when(k == 0)
    def _():
        acc_ref[...] = jnp.zeros_like(acc_ref)

    acc_ref[...] += jnp.dot(a_ref[...], b_ref[...],
                            preferred_element_type=jnp.float32)

    @pl.when(k == pl.num_programs(2) - 1)
    def _():
        r = acc_ref[...] + bias_ref[...]
        if relu:
            r = jnp.maximum(r, 0.0)
        o_ref[...] = r.astype(o_ref.dtype)


def _mm_res_kernel(a_ref, b_ref, bias_ref, res_ref, o_ref, acc_ref, *, relu):
    k = pl.program_id(2)

    @pl.when(k == 0)
    def _():
        acc_ref[...] = jnp.zeros_like(acc_ref)

    acc_ref[...] += jnp.dot(a_ref[...], b_ref[...],
                            preferred_element_type=jnp.float32)

    @pl.when(k == pl.num_programs(2) - 1)
    def _():
        r = acc_ref[...] + bias_ref[...] + res_ref[...].astype(jnp.float32)
        if relu:
            r = jnp.maximum(r, 0.0)
        o_ref[...] = r.astype(o_ref.dtype)


def _conv3x3_kernel(x_ref, w_ref, b_ref, o_ref, acc_ref, *, ho, wo, relu):
    """Implicit-im2col 3x3 / stride-1 / pad-1 conv for one batch element.

    The nine taps are read as shifted windows of the VMEM-resident padded
    input slab, so no kh*kw-expanded patch matrix ever touches HBM.
      x_ref : (ho+2, wo+2, tck)  spatially padded input slab (batch squeezed)
      w_ref : (3, 3, tck, tn)    folded-BN weights
      b_ref : (1, tn)            folded BN bias
    """
    k = pl.program_id(2)

    @pl.when(k == 0)
    def _():
        acc_ref[...] = jnp.zeros_like(acc_ref)

    c = x_ref.shape[-1]
    acc = acc_ref[...]
    for di in range(3):
        for dj in range(3):
            a = x_ref[pl.ds(di, ho), pl.ds(dj, wo), :].reshape(ho * wo, c)
            acc = acc + jnp.dot(a, w_ref[di, dj, :, :],
                                preferred_element_type=jnp.float32)
    acc_ref[...] = acc

    @pl.when(k == pl.num_programs(2) - 1)
    def _():
        r = acc_ref[...] + b_ref[...]
        if relu:
            r = jnp.maximum(r, 0.0)
        o_ref[...] = r.astype(o_ref.dtype)


# -----------------------------------------------------------------------------
# Tile selection
# -----------------------------------------------------------------------------

def _pick_m(M):
    """Prefer a divisor tile (no M pad); tm up to 512 for large-M layers."""
    for tm in (512, 256, 128):
        if M % tm == 0:
            return M, tm
    if M >= 1024:
        tm = 512
    elif M >= 256:
        tm = 256
    else:
        tm = 128
    return _round_up(M, tm), tm


def _pick_tk(Kp):
    if Kp <= 2048:
        return Kp
    for c in (2048, 1792, 1536, 1280, 1024, 896, 768, 640, 512, 384, 256, 128):
        if Kp % c == 0:
            return c
    return 128


def _pick_tn(Np):
    if Np <= 512:
        return Np
    for c in (512, 384, 256, 128):
        if Np % c == 0:
            return c
    return 128


def _ensure_parallel_tiles(Mp, Np, tm, tn):
    """Expose >=2 tiles on the parallel (i, j) axes so both v7x TCs get work."""
    while (Mp // tm) * (Np // tn) < 2:
        if tn > 128 and Np % (tn // 2) == 0:
            tn //= 2
        elif tm > 128 and Mp % (tm // 2) == 0:
            tm //= 2
        else:
            break
    return tm, tn


def _make_b_spec(tk, tn, deep):
    """Weight BlockSpec; optionally request 3-deep buffering for large-K."""
    idx = lambda i, j, k: (k, j)
    if deep:
        try:
            return pl.BlockSpec((tk, tn), idx, pipeline_mode=pl.Buffered(3))
        except Exception:  # pipeline_mode/Buffered unavailable on this JAX
            pass
    return pl.BlockSpec((tk, tn), idx)


# -----------------------------------------------------------------------------
# Fused matmul (1x1 convs, stem / stride-2 im2col, pred_head-sized fallbacks)
# -----------------------------------------------------------------------------

def matmul_fused(a, w, bias, residual=None, *, relu):
    """maybe_relu(a @ w + bias (+ residual)) -> (M, Np) bf16.

    a:        (M, Kp)  bf16 activations (K already matches the weight's Kp)
    w:        (Kp, Np) pre-padded bf16 weights, BN scale folded in
    bias:     (1, Np)  f32 folded BN bias (pre-padded)
    residual: (M, Np)  optional tensor fused into the epilogue
    """
    M, Kp = a.shape
    _, Np = w.shape

    Mp, tm = _pick_m(M)
    tk = _pick_tk(Kp)
    tn = _pick_tn(Np)
    tm, tn = _ensure_parallel_tiles(Mp, Np, tm, tn)
    grid = (Mp // tm, Np // tn, Kp // tk)

    if Mp != M:
        a = jnp.pad(a, ((0, Mp - M), (0, 0)))
        if residual is not None:
            residual = jnp.pad(residual, ((0, Mp - M), (0, 0)))

    a_spec = pl.BlockSpec((tm, tk), lambda i, j, k: (i, k))
    b_spec = _make_b_spec(tk, tn, deep=(Kp // tk >= 2 and Kp >= 2048))
    s_spec = pl.BlockSpec((1, tn), lambda i, j, k: (0, j))
    o_spec = pl.BlockSpec((tm, tn), lambda i, j, k: (i, j))
    common = dict(
        out_shape=jax.ShapeDtypeStruct((Mp, Np), jnp.bfloat16),
        compiler_params=pltpu.CompilerParams(
            dimension_semantics=("parallel", "parallel", "arbitrary"),
            vmem_limit_bytes=_VMEM_LIMIT),
    )

    if residual is None:
        out = pl.pallas_call(
            partial(_mm_kernel, relu=relu),
            grid_spec=pltpu.PrefetchScalarGridSpec(
                num_scalar_prefetch=0, grid=grid,
                in_specs=[a_spec, b_spec, s_spec],
                out_specs=o_spec,
                scratch_shapes=[pltpu.VMEM((tm, tn), jnp.float32)]),
            **common,
        )(a, w, bias)
    else:
        r_spec = pl.BlockSpec((tm, tn), lambda i, j, k: (i, j))
        out = pl.pallas_call(
            partial(_mm_res_kernel, relu=relu),
            grid_spec=pltpu.PrefetchScalarGridSpec(
                num_scalar_prefetch=0, grid=grid,
                in_specs=[a_spec, b_spec, s_spec, r_spec],
                out_specs=o_spec,
                scratch_shapes=[pltpu.VMEM((tm, tn), jnp.float32)]),
            **common,
        )(a, w, bias, residual)
    return out if Mp == M else out[:M]


def _matmul_dispatch(a, w, bias, residual=None, *, relu):
    """Fused matmul + bias (+residual) (+relu); tiny M goes to XLA directly."""
    M, K = a.shape
    Kp, Np = w.shape
    a = a.astype(jnp.bfloat16)
    if K != Kp:                               # stem only: 147 -> 256
        a = jnp.pad(a, ((0, 0), (0, Kp - K)))
    if residual is not None:
        residual = residual.astype(jnp.bfloat16)
    if M < _PALLAS_MIN_M:
        # Tiny matmul: MXU tile mostly idle + fixed pallas_call cost dominates;
        # let XLA fuse it inside the same jit (perf review).
        r = jnp.dot(a, w, preferred_element_type=jnp.float32) + bias
        if residual is not None:
            r = r + residual.astype(jnp.float32)
        if relu:
            r = jnp.maximum(r, 0.0)
        return r.astype(jnp.bfloat16)
    return matmul_fused(a, w, bias, residual, relu=relu)


# -----------------------------------------------------------------------------
# Implicit-im2col 3x3 conv (stride 1, pad 1): the hot path of the network
# -----------------------------------------------------------------------------

def _conv3x3_tiles(C, Np):
    tn = _pick_tn(Np)
    if C <= 1024:
        tck = C
    elif C % 512 == 0:
        tck = 512
    else:
        tck = 128
    return tck, tn


def _conv3x3_vmem_ok(H, W, C, Np):
    tck, tn = _conv3x3_tiles(C, Np)
    hp, wp = H + 2, W + 2
    x_blk = hp * wp * tck * 2
    w_blk = 9 * tck * tn * 2
    o_blk = H * W * tn * 2
    acc = H * W * tn * 4
    need = 2 * (x_blk + w_blk + o_blk) + acc + 2 * tn * 4
    return need <= int(0.75 * _VMEM_LIMIT)


def conv3x3_pallas(x, w4d, bias, *, relu):
    """3x3/s1/p1 conv + folded BN (+ReLU); taps handled inside the kernel."""
    N, H, W, C = x.shape
    Np = w4d.shape[-1]
    ho, wo = H, W
    hp, wp = H + 2, W + 2
    tck, tn = _conv3x3_tiles(C, Np)
    kg = C // tck

    xp = jnp.pad(x.astype(jnp.bfloat16), ((0, 0), (1, 1), (1, 1), (0, 0)))

    # Grid order (co, batch, cin): with kg == 1 (all ResNet 3x3s) the weight
    # block index is constant across the batch axis, so the weight strip is
    # DMA'd once per co tile and stays VMEM-resident for the whole batch.
    grid = (Np // tn, N, kg)
    out = pl.pallas_call(
        partial(_conv3x3_kernel, ho=ho, wo=wo, relu=relu),
        out_shape=jax.ShapeDtypeStruct((N, ho * wo, Np), jnp.bfloat16),
        grid_spec=pltpu.PrefetchScalarGridSpec(
            num_scalar_prefetch=0, grid=grid,
            in_specs=[
                pl.BlockSpec((None, hp, wp, tck), lambda j, b, k: (b, 0, 0, k)),
                pl.BlockSpec((3, 3, tck, tn), lambda j, b, k: (0, 0, k, j)),
                pl.BlockSpec((1, tn), lambda j, b, k: (0, j)),
            ],
            out_specs=pl.BlockSpec((None, ho * wo, tn),
                                   lambda j, b, k: (b, 0, j)),
            scratch_shapes=[pltpu.VMEM((ho * wo, tn), jnp.float32)]),
        compiler_params=pltpu.CompilerParams(
            dimension_semantics=("parallel", "parallel", "arbitrary"),
            vmem_limit_bytes=_VMEM_LIMIT),
    )(xp, w4d, bias)
    return out.reshape(N, ho, wo, Np)


_CONV3X3_STATE = {"ok": None}


def _conv3x3_available():
    """Probe the fused conv kernel once; fall back gracefully if it fails."""
    if _CONV3X3_STATE["ok"] is None:
        try:
            px = jnp.zeros((1, 8, 8, 128), jnp.bfloat16)
            pw = jnp.zeros((3, 3, 128, 128), jnp.bfloat16)
            pb = jnp.zeros((1, 128), jnp.float32)
            jax.block_until_ready(conv3x3_pallas(px, pw, pb, relu=True))
            _CONV3X3_STATE["ok"] = True
        except Exception:
            # TODO(synk): fused 3x3 conv kernel failed to lower on this
            # backend; falling back to explicit im2col + fused matmul.
            _CONV3X3_STATE["ok"] = False
    return _CONV3X3_STATE["ok"]


# -----------------------------------------------------------------------------
# Glue: im2col, conv+BN, pooling, bottleneck, full forward (single jax.jit)
# -----------------------------------------------------------------------------

_CFG = ((64, 3, 1), (128, 4, 2), (256, 23, 2), (512, 3, 2))   # ResNet101
_EXPANSION = 4


def _im2col(x, kh, kw, stride, pad):
    """x: NHWC -> (N*Ho*Wo, kh*kw*C) with (kh, kw, C) patch ordering."""
    N, H, W, C = x.shape
    Ho = (H + 2 * pad - kh) // stride + 1
    Wo = (W + 2 * pad - kw) // stride + 1
    xp = jnp.pad(x, ((0, 0), (pad, pad), (pad, pad), (0, 0)))
    taps = []
    for i in range(kh):
        for j in range(kw):
            taps.append(xp[:, i:i + (Ho - 1) * stride + 1:stride,
                            j:j + (Wo - 1) * stride + 1:stride, :])
    patches = jnp.stack(taps, axis=3)  # (N, Ho, Wo, kh*kw, C)
    return patches.reshape(N * Ho * Wo, kh * kw * C), Ho, Wo


def conv_bn(x, w, bias, kh, kw, stride, pad, *, relu, residual=None):
    """NHWC conv (no conv bias) + folded BN (+residual) (+ReLU)."""
    N, H, W, C = x.shape

    if kh == 1 and kw == 1:
        if stride > 1:
            # TODO(synk): fold the stride into the matmul A-side index_map
            # instead of this XLA strided-slice HBM pass.
            x = x[:, ::stride, ::stride, :]
        Ho, Wo = x.shape[1], x.shape[2]
        a = x.reshape(N * Ho * Wo, C)
        res2d = None
        if residual is not None:
            res2d = residual.reshape(N * Ho * Wo, residual.shape[-1])
        out = _matmul_dispatch(a, w, bias, res2d, relu=relu)
        return out.reshape(N, Ho, Wo, out.shape[-1])

    # 3x3 stride-1 pad-1 convs: implicit im2col (taps stay inside the kernel).
    if (kh == 3 and kw == 3 and stride == 1 and pad == 1 and residual is None
            and C % 128 == 0 and w.ndim == 4
            and H * W >= _CONV3X3_MIN_PIX
            and _conv3x3_vmem_ok(H, W, C, w.shape[-1])
            and _conv3x3_available()):
        return conv3x3_pallas(x, w, bias, relu=relu)

    # Fallback: explicit im2col (7x7 stem, the three stride-2 3x3 convs, and
    # any conv too small / too large for the fused conv kernel).
    w2d = w.reshape(-1, w.shape[-1]) if w.ndim == 4 else w
    a, Ho, Wo = _im2col(x, kh, kw, stride, pad)
    res2d = None
    if residual is not None:
        res2d = residual.reshape(N * Ho * Wo, residual.shape[-1])
    out = _matmul_dispatch(a, w2d, bias, res2d, relu=relu)
    return out.reshape(N, Ho, Wo, out.shape[-1])


def maxpool_3x3_s2_p1(x):
    """MaxPool2d(3, stride=2, padding=1) as a maximum tree (fused by XLA)."""
    N, H, W, C = x.shape
    Ho = (H + 2 - 3) // 2 + 1
    Wo = (W + 2 - 3) // 2 + 1
    xp = jnp.pad(x, ((0, 0), (1, 1), (1, 1), (0, 0)),
                 constant_values=-jnp.inf)
    out = None
    for i in range(3):
        for j in range(3):
            tap = xp[:, i:i + (Ho - 1) * 2 + 1:2,
                      j:j + (Wo - 1) * 2 + 1:2, :]
            out = tap if out is None else jnp.maximum(out, tap)
    return out


def bottleneck(x, blk, stride):
    if 'ds_w' in blk:
        identity = conv_bn(x, blk['ds_w'], blk['ds_b'], 1, 1, stride, 0,
                           relu=False)
    else:
        identity = x
    out = conv_bn(x, blk['c1_w'], blk['c1_b'], 1, 1, 1, 0, relu=True)
    out = conv_bn(out, blk['c2_w'], blk['c2_b'], 3, 3, stride, 1, relu=True)
    # conv3 epilogue fuses BN bias + residual add + ReLU (no extra HBM pass).
    out = conv_bn(out, blk['c3_w'], blk['c3_b'], 1, 1, 1, 0,
                  relu=True, residual=identity)
    return out


@jax.jit
def resnet101_forward(params, x_nchw):
    x = jnp.transpose(x_nchw, (0, 2, 3, 1)).astype(jnp.bfloat16)  # NCHW->NHWC
    # stem: conv7x7/s2 + BN + ReLU + maxpool3x3/s2
    x = conv_bn(x, params['stem_w'], params['stem_b'], 7, 7, 2, 3, relu=True)
    x = maxpool_3x3_s2_p1(x)
    # layer1..layer4 (bottleneck counts [3, 4, 23, 3]); activations carry the
    # 128-padded channel layout between layers (padded lanes are exact zeros).
    for li, (_, n_blocks, stride) in enumerate(_CFG):
        for bi in range(n_blocks):
            s = stride if bi == 0 else 1
            x = bottleneck(x, params['layers'][li][bi], s)
    # adaptive avg pool to (1, 1) + pred_head Linear + log_softmax (tiny: jnp)
    feat = jnp.mean(x.astype(jnp.float32), axis=(1, 2))          # (N, 2048)
    logits = feat @ params['fc_w'] + params['fc_b']
    return jax.nn.log_softmax(logits, axis=1)


# -----------------------------------------------------------------------------
# Deterministic parameter construction (ResNet101 shapes, synthetic values)
# -----------------------------------------------------------------------------

def _folded_conv(key, cout, cin, kh, kw, *, cin_carry, flatten, eps=1e-5):
    """He-init conv, eval-mode BN folded, padded to the carried channel layout.

    Returns (weight, bias):
      weight: (kh, kw, cin_carry, cout_p) bf16  if not flatten
              (round128(kh*kw*cin_carry), cout_p) bf16  if flatten
      bias:   (1, cout_p) f32
    """
    fan_in = cin * kh * kw
    std = math.sqrt(2.0 / fan_in)   # He (kaiming_normal-ish) init
    w = jax.random.normal(key, (kh, kw, cin, cout), jnp.float32) * std  # HWIO
    # identity running stats: gamma=1, beta=0, mean=0, var=1 (eval-mode fold)
    gamma = jnp.ones((cout,), jnp.float32)
    beta = jnp.zeros((cout,), jnp.float32)
    mean = jnp.zeros((cout,), jnp.float32)
    var = jnp.ones((cout,), jnp.float32)
    scale = gamma / jnp.sqrt(var + eps)
    bias = beta - mean * scale
    w = w * scale                                  # fold BN scale into cout
    cout_p = _round_up(cout, 128)
    w = jnp.pad(w, ((0, 0), (0, 0), (0, cin_carry - cin), (0, cout_p - cout)))
    if flatten:
        w = w.reshape(kh * kw * cin_carry, cout_p)
        kp = _round_up(w.shape[0], 128)
        if kp != w.shape[0]:
            w = jnp.pad(w, ((0, kp - w.shape[0]), (0, 0)))
    w = w.astype(jnp.bfloat16)
    bias_p = jnp.pad(bias, (0, cout_p - cout)).reshape(1, cout_p)
    return w, bias_p


def make_params(key, n_classes=10):
    keys = iter(jax.random.split(key, 160))
    params = {}
    # stem consumes the raw (unpadded) 3-channel image through explicit im2col
    params['stem_w'], params['stem_b'] = _folded_conv(
        next(keys), 64, 3, 7, 7, cin_carry=3, flatten=True)

    inplanes = 64
    layers = []
    for planes, n_blocks, stride in _CFG:
        # Invariant (perf review): only convs whose outputs never feed a
        # residual add or the global pool may carry zero-padded channels.
        assert (planes * _EXPANSION) % 128 == 0
        blocks = []
        for bi in range(n_blocks):
            s = stride if bi == 0 else 1
            blk = {}
            blk['c1_w'], blk['c1_b'] = _folded_conv(
                next(keys), planes, inplanes, 1, 1,
                cin_carry=_round_up(inplanes, 128), flatten=True)
            blk['c2_w'], blk['c2_b'] = _folded_conv(
                next(keys), planes, planes, 3, 3,
                cin_carry=_round_up(planes, 128), flatten=False)
            blk['c3_w'], blk['c3_b'] = _folded_conv(
                next(keys), planes * _EXPANSION, planes, 1, 1,
                cin_carry=_round_up(planes, 128), flatten=True)
            if s != 1 or inplanes != planes * _EXPANSION:
                blk['ds_w'], blk['ds_b'] = _folded_conv(
                    next(keys), planes * _EXPANSION, inplanes, 1, 1,
                    cin_carry=_round_up(inplanes, 128), flatten=True)
            blocks.append(blk)
            inplanes = planes * _EXPANSION
        layers.append(blocks)
    params['layers'] = layers

    in_features = 512 * _EXPANSION  # 2048
    bound = 1.0 / math.sqrt(in_features)
    params['fc_w'] = jax.random.uniform(next(keys), (in_features, n_classes),
                                        jnp.float32, -bound, bound)
    params['fc_b'] = jax.random.uniform(next(keys), (n_classes,),
                                        jnp.float32, -bound, bound)
    return params


# -----------------------------------------------------------------------------

if __name__ == "__main__":
    key = jax.random.PRNGKey(0)
    pkey, xkey = jax.random.split(key)

    n_classes = 10
    params = make_params(pkey, n_classes=n_classes)

    # Probe the fused 3x3 conv kernel outside the jitted trace (sets the
    # fallback flag if the kernel cannot be lowered on this backend).
    _conv3x3_available()

    # NCHW input, small spatial size (32x32 -> layer4 output is 1x1 spatial)
    x = jax.random.normal(xkey, (2, 3, 32, 32), jnp.float32)

    out = resnet101_forward(params, x)
    out = jax.block_until_ready(out)

    assert out.shape == (2, n_classes), out.shape
    assert bool(jnp.all(jnp.isfinite(out)))
    # rows of log_softmax must exp-sum to 1
    assert bool(jnp.allclose(jnp.sum(jnp.exp(out), axis=1), 1.0, atol=1e-4))

    print("KERNEL_OK")
</pallas_src>

<mosaic_0001>
module attributes {stable_mosaic.version = 11 : i64} {
  func.func @_conv3x3_kernel(%arg0: i32, %arg1: i32, %arg2: i32, %arg3: memref<1x10x10x128xbf16, #tpu.memory_space<vmem>>, %arg4: memref<3x3x128x128xbf16, #tpu.memory_space<vmem>>, %arg5: memref<1x128xf32, #tpu.memory_space<vmem>>, %arg6: memref<1x64x128xbf16, #tpu.memory_space<vmem>>, %arg7: memref<64x128xf32, #tpu.memory_space<vmem>>) attributes {dimension_semantics = [#tpu.dimension_semantics<parallel>, #tpu.dimension_semantics<parallel>, #tpu.dimension_semantics<arbitrary>], iteration_bounds = array<i64: 1, 1, 1>, scalar_prefetch = 0 : i64, scratch_operands = 1 : i64, tpu.core_type = #tpu.core_type<tc>, window_params = [{transform_indices = @transform_0, window_bounds = array<i64: 1, 10, 10, 128>}, {transform_indices = @transform_1, window_bounds = array<i64: 3, 3, 128, 128>}, {transform_indices = @transform_2, window_bounds = array<i64: 1, 128>}, {transform_indices = @transform_3, window_bounds = array<i64: 1, 64, 128>}]} {
    %c0_i32 = arith.constant 0 : i32
    %0 = arith.cmpi eq, %arg2, %c0_i32 : i32
    %1 = arith.extui %0 : i1 to i32
    %c0_i32_0 = arith.constant 0 : i32
    %2 = arith.cmpi ne, %1, %c0_i32_0 : i32
    scf.if %2 {
      %cst_84 = arith.constant 0.000000e+00 : f32
      %71 = vector.broadcast %cst_84 : f32 to vector<64x128xf32>
      %c0_85 = arith.constant 0 : index
      %c0_86 = arith.constant 0 : index
      %72 = vector.load %arg7[%c0_85, %c0_86] : memref<64x128xf32, #tpu.memory_space<vmem>>, vector<64x128xf32>
      tpu.vector_store %arg7[%c0_85, %c0_86], %71 {strides = array<i32>} : memref<64x128xf32, #tpu.memory_space<vmem>>, vector<64x128xf32>,
    } else {
    }
    %c0 = arith.constant 0 : index
    %c0_1 = arith.constant 0 : index
    %3 = vector.load %arg7[%c0, %c0_1] : memref<64x128xf32, #tpu.memory_space<vmem>>, vector<64x128xf32>
    %c0_2 = arith.constant 0 : index
    %c0_3 = arith.constant 0 : index
    %c0_4 = arith.constant 0 : index
    %c0_5 = arith.constant 0 : index
    %4 = vector.load %arg3[%c0_2, %c0_3, %c0_4, %c0_5] : memref<1x10x10x128xbf16, #tpu.memory_space<vmem>>, vector<1x8x8x128xbf16>
    %5 = vector.shape_cast %4 : vector<1x8x8x128xbf16> to vector<8x8x128xbf16>
    %6 = vector.shape_cast %5 : vector<8x8x128xbf16> to vector<64x128xbf16>
    %c0_6 = arith.constant 0 : index
    %c0_7 = arith.constant 0 : index
    %c0_8 = arith.constant 0 : index
    %c0_9 = arith.constant 0 : index
    %7 = vector.load %arg4[%c0_6, %c0_7, %c0_8, %c0_9] : memref<3x3x128x128xbf16, #tpu.memory_space<vmem>>, vector<1x1x128x128xbf16>
    %8 = vector.shape_cast %7 : vector<1x1x128x128xbf16> to vector<128x128xbf16>
    %cst = arith.constant dense<0.000000e+00> : vector<64x128xf32>
    %9 = tpu.matmul %6, %8, %cst {dimension_numbers = #tpu.dot_dimension_numbers<[1], [0], [0], [1], [0, 0, 1, 1], [], []>} : vector<64x128xbf16>, vector<128x128xbf16>, vector<64x128xf32> -> vector<64x128xf32>
    %10 = arith.addf %3, %9 : vector<64x128xf32>
    %c0_10 = arith.constant 0 : index
    %c0_11 = arith.constant 0 : index
    %c1 = arith.constant 1 : index
    %c0_12 = arith.constant 0 : index
    %11 = vector.load %arg3[%c0_10, %c0_11, %c1, %c0_12] : memref<1x10x10x128xbf16, #tpu.memory_space<vmem>>, vector<1x8x8x128xbf16>
    %12 = vector.shape_cast %11 : vector<1x8x8x128xbf16> to vector<8x8x128xbf16>
    %13 = vector.shape_cast %12 : vector<8x8x128xbf16> to vector<64x128xbf16>
    %c0_13 = arith.constant 0 : index
    %c1_14 = arith.constant 1 : index
    %c0_15 = arith.constant 0 : index
    %c0_16 = arith.constant 0 : index
    %14 = vector.load %arg4[%c0_13, %c1_14, %c0_15, %c0_16] : memref<3x3x128x128xbf16, #tpu.memory_space<vmem>>, vector<1x1x128x128xbf16>
    %15 = vector.shape_cast %14 : vector<1x1x128x128xbf16> to vector<128x128xbf16>
    %cst_17 = arith.constant dense<0.000000e+00> : vector<64x128xf32>
    %16 = tpu.matmul %13, %15, %cst_17 {dimension_numbers = #tpu.dot_dimension_numbers<[1], [0], [0], [1], [0, 0, 1, 1], [], []>} : vector<64x128xbf16>, vector<128x128xbf16>, vector<64x128xf32> -> vector<64x128xf32>
    %17 = arith.addf %10, %16 : vector<64x128xf32>
    %c0_18 = arith.constant 0 : index
    %c0_19 = arith.constant 0 : index
    %c2 = arith.constant 2 : index
    %c0_20 = arith.constant 0 : index
    %18 = vector.load %arg3[%c0_18, %c0_19, %c2, %c0_20] : memref<1x10x10x128xbf16, #tpu.memory_space<vmem>>, vector<1x8x8x128xbf16>
    %19 = vector.shape_cast %18 : vector<1x8x8x128xbf16> to vector<8x8x128xbf16>
    %20 = vector.shape_cast %19 : vector<8x8x128xbf16> to vector<64x128xbf16>
    %c0_21 = arith.constant 0 : index
    %c2_22 = arith.constant 2 : index
    %c0_23 = arith.constant 0 : index
    %c0_24 = arith.constant 0 : index
    %21 = vector.load %arg4[%c0_21, %c2_22, %c0_23, %c0_24] : memref<3x3x128x128xbf16, #tpu.memory_space<vmem>>, vector<1x1x128x128xbf16>
    %22 = vector.shape_cast %21 : vector<1x1x128x128xbf16> to vector<128x128xbf16>
    %cst_25 = arith.constant dense<0.000000e+00> : vector<64x128xf32>
    %23 = tpu.matmul %20, %22, %cst_25 {dimension_numbers = #tpu.dot_dimension_numbers<[1], [0], [0], [1], [0, 0, 1, 1], [], []>} : vector<64x128xbf16>, vector<128x128xbf16>, vector<64x128xf32> -> vector<64x128xf32>
    %24 = arith.addf %17, %23 : vector<64x128xf32>
    %c0_26 = arith.constant 0 : index
    %c1_27 = arith.constant 1 : index
    %c0_28 = arith.constant 0 : index
    %c0_29 = arith.constant 0 : index
    %25 = vector.load %arg3[%c0_26, %c1_27, %c0_28, %c0_29] : memref<1x10x10x128xbf16, #tpu.memory_space<vmem>>, vector<1x8x8x128xbf16>
    %26 = vector.shape_cast %25 : vector<1x8x8x128xbf16> to vector<8x8x128xbf16>
    %27 = vector.shape_cast %26 : vector<8x8x128xbf16> to vector<64x128xbf16>
    %c1_30 = arith.constant 1 : index
    %c0_31 = arith.constant 0 : index
    %c0_32 = arith.constant 0 : index
    %c0_33 = arith.constant 0 : index
    %28 = vector.load %arg4[%c1_30, %c0_31, %c0_32, %c0_33] : memref<3x3x128x128xbf16, #tpu.memory_space<vmem>>, vector<1x1x128x128xbf16>
    %29 = vector.shape_cast %28 : vector<1x1x128x128xbf16> to vector<128x128xbf16>
    %cst_34 = arith.constant dense<0.000000e+00> : vector<64x128xf32>
    %30 = tpu.matmul %27, %29, %cst_34 {dimension_numbers = #tpu.dot_dimension_numbers<[1], [0], [0], [1], [0, 0, 1, 1], [], []>} : vector<64x128xbf16>, vector<128x128xbf16>, vector<64x128xf32> -> vector<64x128xf32>
    %31 = arith.addf %24, %30 : vector<64x128xf32>
    %c0_35 = arith.constant 0 : index
    %c1_36 = arith.constant 1 : index
    %c1_37 = arith.constant 1 : index
    %c0_38 = arith.constant 0 : index
    %32 = vector.load %arg3[%c0_35, %c1_36, %c1_37, %c0_38] : memref<1x10x10x128xbf16, #tpu.memory_space<vmem>>, vector<1x8x8x128xbf16>
    %33 = vector.shape_cast %32 : vector<1x8x8x128xbf16> to vector<8x8x128xbf16>
    %34 = vector.shape_cast %33 : vector<8x8x128xbf16> to vector<64x128xbf16>
    %c1_39 = arith.constant 1 : index
    %c1_40 = arith.constant 1 : index
    %c0_41 = arith.constant 0 : index
    %c0_42 = arith.constant 0 : index
    %35 = vector.load %arg4[%c1_39, %c1_40, %c0_41, %c0_42] : memref<3x3x128x128xbf16, #tpu.memory_space<vmem>>, vector<1x1x128x128xbf16>
    %36 = vector.shape_cast %35 : vector<1x1x128x128xbf16> to vector<128x128xbf16>
    %cst_43 = arith.constant dense<0.000000e+00> : vector<64x128xf32>
    %37 = tpu.matmul %34, %36, %cst_43 {dimension_numbers = #tpu.dot_dimension_numbers<[1], [0], [0], [1], [0, 0, 1, 1], [], []>} : vector<64x128xbf16>, vector<128x128xbf16>, vector<64x128xf32> -> vector<64x128xf32>
    %38 = arith.addf %31, %37 : vector<64x128xf32>
    %c0_44 = arith.constant 0 : index
    %c1_45 = arith.constant 1 : index
    %c2_46 = arith.constant 2 : index
    %c0_47 = arith.constant 0 : index
    %39 = vector.load %arg3[%c0_44, %c1_45, %c2_46, %c0_47] : memref<1x10x10x128xbf16, #tpu.memory_space<vmem>>, vector<1x8x8x128xbf16>
    %40 = vector.shape_cast %39 : vector<1x8x8x128xbf16> to vector<8x8x128xbf16>
    %41 = vector.shape_cast %40 : vector<8x8x128xbf16> to vector<64x128xbf16>
    %c1_48 = arith.constant 1 : index
    %c2_49 = arith.constant 2 : index
    %c0_50 = arith.constant 0 : index
    %c0_51 = arith.constant 0 : index
    %42 = vector.load %arg4[%c1_48, %c2_49, %c0_50, %c0_51] : memref<3x3x128x128xbf16, #tpu.memory_space<vmem>>, vector<1x1x128x128xbf16>
    %43 = vector.shape_cast %42 : vector<1x1x128x128xbf16> to vector<128x128xbf16>
    %cst_52 = arith.constant dense<0.000000e+00> : vector<64x128xf32>
    %44 = tpu.matmul %41, %43, %cst_52 {dimension_numbers = #tpu.dot_dimension_numbers<[1], [0], [0], [1], [0, 0, 1, 1], [], []>} : vector<64x128xbf16>, vector<128x128xbf16>, vector<64x128xf32> -> vector<64x128xf32>
    %45 = arith.addf %38, %44 : vector<64x128xf32>
    %c0_53 = arith.constant 0 : index
    %c2_54 = arith.constant 2 : index
    %c0_55 = arith.constant 0 : index
    %c0_56 = arith.constant 0 : index
    %46 = vector.load %arg3[%c0_53, %c2_54, %c0_55, %c0_56] : memref<1x10x10x128xbf16, #tpu.memory_space<vmem>>, vector<1x8x8x128xbf16>
    %47 = vector.shape_cast %46 : vector<1x8x8x128xbf16> to vector<8x8x128xbf16>
    %48 = vector.shape_cast %47 : vector<8x8x128xbf16> to vector<64x128xbf16>
    %c2_57 = arith.constant 2 : index
    %c0_58 = arith.constant 0 : index
    %c0_59 = arith.constant 0 : index
    %c0_60 = arith.constant 0 : index
    %49 = vector.load %arg4[%c2_57, %c0_58, %c0_59, %c0_60] : memref<3x3x128x128xbf16, #tpu.memory_space<vmem>>, vector<1x1x128x128xbf16>
    %50 = vector.shape_cast %49 : vector<1x1x128x128xbf16> to vector<128x128xbf16>
    %cst_61 = arith.constant dense<0.000000e+00> : vector<64x128xf32>
    %51 = tpu.matmul %48, %50, %cst_61 {dimension_numbers = #tpu.dot_dimension_numbers<[1], [0], [0], [1], [0, 0, 1, 1], [], []>} : vector<64x128xbf16>, vector<128x128xbf16>, vector<64x128xf32> -> vector<64x128xf32>
    %52 = arith.addf %45, %51 : vector<64x128xf32>
    %c0_62 = arith.constant 0 : index
    %c2_63 = arith.constant 2 : index
    %c1_64 = arith.constant 1 : index
    %c0_65 = arith.constant 0 : index
    %53 = vector.load %arg3[%c0_62, %c2_63, %c1_64, %c0_65] : memref<1x10x10x128xbf16, #tpu.memory_space<vmem>>, vector<1x8x8x128xbf16>
    %54 = vector.shape_cast %53 : vector<1x8x8x128xbf16> to vector<8x8x128xbf16>
    %55 = vector.shape_cast %54 : vector<8x8x128xbf16> to vector<64x128xbf16>
    %c2_66 = arith.constant 2 : index
    %c1_67 = arith.constant 1 : index
    %c0_68 = arith.constant 0 : index
    %c0_69 = arith.constant 0 : index
    %56 = vector.load %arg4[%c2_66, %c1_67, %c0_68, %c0_69] : memref<3x3x128x128xbf16, #tpu.memory_space<vmem>>, vector<1x1x128x128xbf16>
    %57 = vector.shape_cast %56 : vector<1x1x128x128xbf16> to vector<128x128xbf16>
    %cst_70 = arith.constant dense<0.000000e+00> : vector<64x128xf32>
    %58 = tpu.matmul %55, %57, %cst_70 {dimension_numbers = #tpu.dot_dimension_numbers<[1], [0], [0], [1], [0, 0, 1, 1], [], []>} : vector<64x128xbf16>, vector<128x128xbf16>, vector<64x128xf32> -> vector<64x128xf32>
    %59 = arith.addf %52, %58 : vector<64x128xf32>
    %c0_71 = arith.constant 0 : index
    %c2_72 = arith.constant 2 : index
    %c2_73 = arith.constant 2 : index
    %c0_74 = arith.constant 0 : index
    %60 = vector.load %arg3[%c0_71, %c2_72, %c2_73, %c0_74] : memref<1x10x10x128xbf16, #tpu.memory_space<vmem>>, vector<1x8x8x128xbf16>
    %61 = vector.shape_cast %60 : vector<1x8x8x128xbf16> to vector<8x8x128xbf16>
    %62 = vector.shape_cast %61 : vector<8x8x128xbf16> to vector<64x128xbf16>
    %c2_75 = arith.constant 2 : index
    %c2_76 = arith.constant 2 : index
    %c0_77 = arith.constant 0 : index
    %c0_78 = arith.constant 0 : index
    %63 = vector.load %arg4[%c2_75, %c2_76, %c0_77, %c0_78] : memref<3x3x128x128xbf16, #tpu.memory_space<vmem>>, vector<1x1x128x128xbf16>
    %64 = vector.shape_cast %63 : vector<1x1x128x128xbf16> to vector<128x128xbf16>
    %cst_79 = arith.constant dense<0.000000e+00> : vector<64x128xf32>
    %65 = tpu.matmul %62, %64, %cst_79 {dimension_numbers = #tpu.dot_dimension_numbers<[1], [0], [0], [1], [0, 0, 1, 1], [], []>} : vector<64x128xbf16>, vector<128x128xbf16>, vector<64x128xf32> -> vector<64x128xf32>
    %66 = arith.addf %59, %65 : vector<64x128xf32>
    %c0_80 = arith.constant 0 : index
    %c0_81 = arith.constant 0 : index
    %67 = vector.load %arg7[%c0_80, %c0_81] : memref<64x128xf32, #tpu.memory_space<vmem>>, vector<64x128xf32>
    tpu.vector_store %arg7[%c0_80, %c0_81], %66 {strides = array<i32>} : memref<64x128xf32, #tpu.memory_space<vmem>>, vector<64x128xf32>,
    %c0_i32_82 = arith.constant 0 : i32
    %68 = arith.cmpi eq, %arg2, %c0_i32_82 : i32
    %69 = arith.extui %68 : i1 to i32
    %c0_i32_83 = arith.constant 0 : i32
    %70 = arith.cmpi ne, %69, %c0_i32_83 : i32
    scf.if %70 {
      %c0_84 = arith.constant 0 : index
      %c0_85 = arith.constant 0 : index
      %71 = vector.load %arg7[%c0_84, %c0_85] : memref<64x128xf32, #tpu.memory_space<vmem>>, vector<64x128xf32>
      %c0_86 = arith.constant 0 : index
      %c0_87 = arith.constant 0 : index
      %72 = vector.load %arg5[%c0_86, %c0_87] : memref<1x128xf32, #tpu.memory_space<vmem>>, vector<1x128xf32>
      %73 = vector.broadcast %72 : vector<1x128xf32> to vector<64x128xf32>
      %74 = arith.addf %71, %73 : vector<64x128xf32>
      %cst_88 = arith.constant 0.000000e+00 : f32
      %75 = vector.broadcast %cst_88 : f32 to vector<64x128xf32>
      %76 = arith.maximumf %74, %75 : vector<64x128xf32>
      %77 = arith.truncf %76 : vector<64x128xf32> to vector<64x128xbf16>
      %c0_89 = arith.constant 0 : index
      %c0_90 = arith.constant 0 : index
      %c0_91 = arith.constant 0 : index
      %78 = vector.load %arg6[%c0_89, %c0_90, %c0_91] : memref<1x64x128xbf16, #tpu.memory_space<vmem>>, vector<1x64x128xbf16>
      %79 = vector.shape_cast %78 : vector<1x64x128xbf16> to vector<64x128xbf16>
      %80 = vector.shape_cast %77 : vector<64x128xbf16> to vector<1x64x128xbf16>
      tpu.vector_store %arg6[%c0_89, %c0_90, %c0_91], %80 {strides = array<i32>} : memref<1x64x128xbf16, #tpu.memory_space<vmem>>, vector<1x64x128xbf16>,
    } else {
    }
    return
  }
  func.func @transform_0(%arg0: i32, %arg1: i32, %arg2: i32) -> (i32, i32, i32, i32) {
    %c0_i32 = arith.constant 0 : i32
    %c0_i32_0 = arith.constant 0 : i32
    %c0_i32_1 = arith.constant 0 : i32
    return %arg1, %c0_i32, %c0_i32_0, %arg2 : i32, i32, i32, i32
  }
  func.func @transform_1(%arg0: i32, %arg1: i32, %arg2: i32) -> (i32, i32, i32, i32) {
    %c0_i32 = arith.constant 0 : i32
    %c0_i32_0 = arith.constant 0 : i32
    %c0_i32_1 = arith.constant 0 : i32
    return %c0_i32, %c0_i32_0, %arg2, %arg0 : i32, i32, i32, i32
  }
  func.func @transform_2(%arg0: i32, %arg1: i32, %arg2: i32) -> (i32, i32) {
    %c0_i32 = arith.constant 0 : i32
    %c0_i32_0 = arith.constant 0 : i32
    return %c0_i32, %arg0 : i32, i32
  }
  func.func @transform_3(%arg0: i32, %arg1: i32, %arg2: i32) -> (i32, i32, i32) {
    %c0_i32 = arith.constant 0 : i32
    %c0_i32_0 = arith.constant 0 : i32
    return %arg1, %c0_i32, %arg0 : i32, i32, i32
  }
}

module attributes {stable_mosaic.version = 11 : i64} {
  func.func @_mm_kernel(%arg0: i32, %arg1: i32, %arg2: i32, %arg3: memref<256x256xbf16, #tpu.memory_space<vmem>>, %arg4: memref<256x128xbf16, #tpu.memory_space<vmem>>, %arg5: memref<1x128xf32, #tpu.memory_space<vmem>>, %arg6: memref<256x128xbf16, #tpu.memory_space<vmem>>, %arg7: memref<256x128xf32, #tpu.memory_space<vmem>>) attributes {dimension_semantics = [#tpu.dimension_semantics<parallel>, #tpu.dimension_semantics<parallel>, #tpu.dimension_semantics<arbitrary>], iteration_bounds = array<i64: 2, 1, 1>, scalar_prefetch = 0 : i64, scratch_operands = 1 : i64, tpu.core_type = #tpu.core_type<tc>, window_params = [{transform_indices = @transform_0, window_bounds = array<i64: 256, 256>}, {transform_indices = @transform_1, window_bounds = array<i64: 256, 128>}, {transform_indices = @transform_2, window_bounds = array<i64: 1, 128>}, {transform_indices = @transform_3, window_bounds = array<i64: 256, 128>}]} {
    %c0_i32 = arith.constant 0 : i32
    %0 = arith.cmpi eq, %arg2, %c0_i32 : i32
    %1 = arith.extui %0 : i1 to i32
    %c0_i32_0 = arith.constant 0 : i32
    %2 = arith.cmpi ne, %1, %c0_i32_0 : i32
    scf.if %2 {
      %cst_10 = arith.constant 0.000000e+00 : f32
      %12 = vector.broadcast %cst_10 : f32 to vector<256x128xf32>
      %c0_11 = arith.constant 0 : index
      %c0_12 = arith.constant 0 : index
      %13 = vector.load %arg7[%c0_11, %c0_12] : memref<256x128xf32, #tpu.memory_space<vmem>>, vector<256x128xf32>
      tpu.vector_store %arg7[%c0_11, %c0_12], %12 {strides = array<i32>} : memref<256x128xf32, #tpu.memory_space<vmem>>, vector<256x128xf32>,
    } else {
    }
    %c0 = arith.constant 0 : index
    %c0_1 = arith.constant 0 : index
    %3 = vector.load %arg7[%c0, %c0_1] : memref<256x128xf32, #tpu.memory_space<vmem>>, vector<256x128xf32>
    %c0_2 = arith.constant 0 : index
    %c0_3 = arith.constant 0 : index
    %4 = vector.load %arg3[%c0_2, %c0_3] : memref<256x256xbf16, #tpu.memory_space<vmem>>, vector<256x256xbf16>
    %c0_4 = arith.constant 0 : index
    %c0_5 = arith.constant 0 : index
    %5 = vector.load %arg4[%c0_4, %c0_5] : memref<256x128xbf16, #tpu.memory_space<vmem>>, vector<256x128xbf16>
    %cst = arith.constant dense<0.000000e+00> : vector<256x128xf32>
    %6 = tpu.matmul %4, %5, %cst {dimension_numbers = #tpu.dot_dimension_numbers<[1], [0], [0], [1], [0, 0, 1, 1], [], []>} : vector<256x256xbf16>, vector<256x128xbf16>, vector<256x128xf32> -> vector<256x128xf32>
    %7 = arith.addf %3, %6 : vector<256x128xf32>
    %c0_6 = arith.constant 0 : index
    %c0_7 = arith.constant 0 : index
    %8 = vector.load %arg7[%c0_6, %c0_7] : memref<256x128xf32, #tpu.memory_space<vmem>>, vector<256x128xf32>
    tpu.vector_store %arg7[%c0_6, %c0_7], %7 {strides = array<i32>} : memref<256x128xf32, #tpu.memory_space<vmem>>, vector<256x128xf32>,
    %c0_i32_8 = arith.constant 0 : i32
    %9 = arith.cmpi eq, %arg2, %c0_i32_8 : i32
    %10 = arith.extui %9 : i1 to i32
    %c0_i32_9 = arith.constant 0 : i32
    %11 = arith.cmpi ne, %10, %c0_i32_9 : i32
    scf.if %11 {
      %c0_10 = arith.constant 0 : index
      %c0_11 = arith.constant 0 : index
      %12 = vector.load %arg7[%c0_10, %c0_11] : memref<256x128xf32, #tpu.memory_space<vmem>>, vector<256x128xf32>
      %c0_12 = arith.constant 0 : index
      %c0_13 = arith.constant 0 : index
      %13 = vector.load %arg5[%c0_12, %c0_13] : memref<1x128xf32, #tpu.memory_space<vmem>>, vector<1x128xf32>
      %14 = vector.broadcast %13 : vector<1x128xf32> to vector<256x128xf32>
      %15 = arith.addf %12, %14 : vector<256x128xf32>
      %cst_14 = arith.constant 0.000000e+00 : f32
      %16 = vector.broadcast %cst_14 : f32 to vector<256x128xf32>
      %17 = arith.maximumf %15, %16 : vector<256x128xf32>
      %18 = arith.truncf %17 : vector<256x128xf32> to vector<256x128xbf16>
      %c0_15 = arith.constant 0 : index
      %c0_16 = arith.constant 0 : index
      %19 = vector.load %arg6[%c0_15, %c0_16] : memref<256x128xbf16, #tpu.memory_space<vmem>>, vector<256x128xbf16>
      tpu.vector_store %arg6[%c0_15, %c0_16], %18 {strides = array<i32>} : memref<256x128xbf16, #tpu.memory_space<vmem>>, vector<256x128xbf16>,
    } else {
    }
    return
  }
  func.func @transform_0(%arg0: i32, %arg1: i32, %arg2: i32) -> (i32, i32) {
    %c0_i32 = arith.constant 0 : i32
    return %arg0, %arg2 : i32, i32
  }
  func.func @transform_1(%arg0: i32, %arg1: i32, %arg2: i32) -> (i32, i32) {
    %c0_i32 = arith.constant 0 : i32
    return %arg2, %arg1 : i32, i32
  }
  func.func @transform_2(%arg0: i32, %arg1: i32, %arg2: i32) -> (i32, i32) {
    %c0_i32 = arith.constant 0 : i32
    %c0_i32_0 = arith.constant 0 : i32
    return %c0_i32, %arg1 : i32, i32
  }
  func.func @transform_3(%arg0: i32, %arg1: i32, %arg2: i32) -> (i32, i32) {
    %c0_i32 = arith.constant 0 : i32
    return %arg0, %arg1 : i32, i32
  }
}

module attributes {stable_mosaic.version = 11 : i64} {
  func.func @_mm_kernel(%arg0: i32, %arg1: i32, %arg2: i32, %arg3: memref<128x128xbf16, #tpu.memory_space<vmem>>, %arg4: memref<128x128xbf16, #tpu.memory_space<vmem>>, %arg5: memref<1x128xf32, #tpu.memory_space<vmem>>, %arg6: memref<128x128xbf16, #tpu.memory_space<vmem>>, %arg7: memref<128x128xf32, #tpu.memory_space<vmem>>) attributes {dimension_semantics = [#tpu.dimension_semantics<parallel>, #tpu.dimension_semantics<parallel>, #tpu.dimension_semantics<arbitrary>], iteration_bounds = array<i64: 1, 1, 1>, scalar_prefetch = 0 : i64, scratch_operands = 1 : i64, tpu.core_type = #tpu.core_type<tc>, window_params = [{transform_indices = @transform_0, window_bounds = array<i64: 128, 128>}, {transform_indices = @transform_1, window_bounds = array<i64: 128, 128>}, {transform_indices = @transform_2, window_bounds = array<i64: 1, 128>}, {transform_indices = @transform_3, window_bounds = array<i64: 128, 128>}]} {
    %c0_i32 = arith.constant 0 : i32
    %0 = arith.cmpi eq, %arg2, %c0_i32 : i32
    %1 = arith.extui %0 : i1 to i32
    %c0_i32_0 = arith.constant 0 : i32
    %2 = arith.cmpi ne, %1, %c0_i32_0 : i32
    scf.if %2 {
      %cst_10 = arith.constant 0.000000e+00 : f32
      %12 = vector.broadcast %cst_10 : f32 to vector<128x128xf32>
      %c0_11 = arith.constant 0 : index
      %c0_12 = arith.constant 0 : index
      %13 = vector.load %arg7[%c0_11, %c0_12] : memref<128x128xf32, #tpu.memory_space<vmem>>, vector<128x128xf32>
      tpu.vector_store %arg7[%c0_11, %c0_12], %12 {strides = array<i32>} : memref<128x128xf32, #tpu.memory_space<vmem>>, vector<128x128xf32>,
    } else {
    }
    %c0 = arith.constant 0 : index
    %c0_1 = arith.constant 0 : index
    %3 = vector.load %arg7[%c0, %c0_1] : memref<128x128xf32, #tpu.memory_space<vmem>>, vector<128x128xf32>
    %c0_2 = arith.constant 0 : index
    %c0_3 = arith.constant 0 : index
    %4 = vector.load %arg3[%c0_2, %c0_3] : memref<128x128xbf16, #tpu.memory_space<vmem>>, vector<128x128xbf16>
    %c0_4 = arith.constant 0 : index
    %c0_5 = arith.constant 0 : index
    %5 = vector.load %arg4[%c0_4, %c0_5] : memref<128x128xbf16, #tpu.memory_space<vmem>>, vector<128x128xbf16>
    %cst = arith.constant dense<0.000000e+00> : vector<128x128xf32>
    %6 = tpu.matmul %4, %5, %cst {dimension_numbers = #tpu.dot_dimension_numbers<[1], [0], [0], [1], [0, 0, 1, 1], [], []>} : vector<128x128xbf16>, vector<128x128xbf16>, vector<128x128xf32> -> vector<128x128xf32>
    %7 = arith.addf %3, %6 : vector<128x128xf32>
    %c0_6 = arith.constant 0 : index
    %c0_7 = arith.constant 0 : index
    %8 = vector.load %arg7[%c0_6, %c0_7] : memref<128x128xf32, #tpu.memory_space<vmem>>, vector<128x128xf32>
    tpu.vector_store %arg7[%c0_6, %c0_7], %7 {strides = array<i32>} : memref<128x128xf32, #tpu.memory_space<vmem>>, vector<128x128xf32>,
    %c0_i32_8 = arith.constant 0 : i32
    %9 = arith.cmpi eq, %arg2, %c0_i32_8 : i32
    %10 = arith.extui %9 : i1 to i32
    %c0_i32_9 = arith.constant 0 : i32
    %11 = arith.cmpi ne, %10, %c0_i32_9 : i32
    scf.if %11 {
      %c0_10 = arith.constant 0 : index
      %c0_11 = arith.constant 0 : index
      %12 = vector.load %arg7[%c0_10, %c0_11] : memref<128x128xf32, #tpu.memory_space<vmem>>, vector<128x128xf32>
      %c0_12 = arith.constant 0 : index
      %c0_13 = arith.constant 0 : index
      %13 = vector.load %arg5[%c0_12, %c0_13] : memref<1x128xf32, #tpu.memory_space<vmem>>, vector<1x128xf32>
      %14 = vector.broadcast %13 : vector<1x128xf32> to vector<128x128xf32>
      %15 = arith.addf %12, %14 : vector<128x128xf32>
      %cst_14 = arith.constant 0.000000e+00 : f32
      %16 = vector.broadcast %cst_14 : f32 to vector<128x128xf32>
      %17 = arith.maximumf %15, %16 : vector<128x128xf32>
      %18 = arith.truncf %17 : vector<128x128xf32> to vector<128x128xbf16>
      %c0_15 = arith.constant 0 : index
      %c0_16 = arith.constant 0 : index
      %19 = vector.load %arg6[%c0_15, %c0_16] : memref<128x128xbf16, #tpu.memory_space<vmem>>, vector<128x128xbf16>
      tpu.vector_store %arg6[%c0_15, %c0_16], %18 {strides = array<i32>} : memref<128x128xbf16, #tpu.memory_space<vmem>>, vector<128x128xbf16>,
    } else {
    }
    return
  }
  func.func @transform_0(%arg0: i32, %arg1: i32, %arg2: i32) -> (i32, i32) {
    %c0_i32 = arith.constant 0 : i32
    return %arg0, %arg2 : i32, i32
  }
  func.func @transform_1(%arg0: i32, %arg1: i32, %arg2: i32) -> (i32, i32) {
    %c0_i32 = arith.constant 0 : i32
    return %arg2, %arg1 : i32, i32
  }
  func.func @transform_2(%arg0: i32, %arg1: i32, %arg2: i32) -> (i32, i32) {
    %c0_i32 = arith.constant 0 : i32
    %c0_i32_0 = arith.constant 0 : i32
    return %c0_i32, %arg1 : i32, i32
  }
  func.func @transform_3(%arg0: i32, %arg1: i32, %arg2: i32) -> (i32, i32) {
    %c0_i32 = arith.constant 0 : i32
    return %arg0, %arg1 : i32, i32
  }
}

module attributes {stable_mosaic.version = 11 : i64} {
  func.func @_mm_kernel(%arg0: i32, %arg1: i32, %arg2: i32, %arg3: memref<128x1152xbf16, #tpu.memory_space<vmem>>, %arg4: memref<1152x128xbf16, #tpu.memory_space<vmem>>, %arg5: memref<1x128xf32, #tpu.memory_space<vmem>>, %arg6: memref<128x128xbf16, #tpu.memory_space<vmem>>, %arg7: memref<128x128xf32, #tpu.memory_space<vmem>>) attributes {dimension_semantics = [#tpu.dimension_semantics<parallel>, #tpu.dimension_semantics<parallel>, #tpu.dimension_semantics<arbitrary>], iteration_bounds = array<i64: 1, 1, 1>, scalar_prefetch = 0 : i64, scratch_operands = 1 : i64, tpu.core_type = #tpu.core_type<tc>, window_params = [{transform_indices = @transform_0, window_bounds = array<i64: 128, 1152>}, {transform_indices = @transform_1, window_bounds = array<i64: 1152, 128>}, {transform_indices = @transform_2, window_bounds = array<i64: 1, 128>}, {transform_indices = @transform_3, window_bounds = array<i64: 128, 128>}]} {
    %c0_i32 = arith.constant 0 : i32
    %0 = arith.cmpi eq, %arg2, %c0_i32 : i32
    %1 = arith.extui %0 : i1 to i32
    %c0_i32_0 = arith.constant 0 : i32
    %2 = arith.cmpi ne, %1, %c0_i32_0 : i32
    scf.if %2 {
      %cst_10 = arith.constant 0.000000e+00 : f32
      %12 = vector.broadcast %cst_10 : f32 to vector<128x128xf32>
      %c0_11 = arith.constant 0 : index
      %c0_12 = arith.constant 0 : index
      %13 = vector.load %arg7[%c0_11, %c0_12] : memref<128x128xf32, #tpu.memory_space<vmem>>, vector<128x128xf32>
      tpu.vector_store %arg7[%c0_11, %c0_12], %12 {strides = array<i32>} : memref<128x128xf32, #tpu.memory_space<vmem>>, vector<128x128xf32>,
    } else {
    }
    %c0 = arith.constant 0 : index
    %c0_1 = arith.constant 0 : index
    %3 = vector.load %arg7[%c0, %c0_1] : memref<128x128xf32, #tpu.memory_space<vmem>>, vector<128x128xf32>
    %c0_2 = arith.constant 0 : index
    %c0_3 = arith.constant 0 : index
    %4 = vector.load %arg3[%c0_2, %c0_3] : memref<128x1152xbf16, #tpu.memory_space<vmem>>, vector<128x1152xbf16>
    %c0_4 = arith.constant 0 : index
    %c0_5 = arith.constant 0 : index
    %5 = vector.load %arg4[%c0_4, %c0_5] : memref<1152x128xbf16, #tpu.memory_space<vmem>>, vector<1152x128xbf16>
    %cst = arith.constant dense<0.000000e+00> : vector<128x128xf32>
    %6 = tpu.matmul %4, %5, %cst {dimension_numbers = #tpu.dot_dimension_numbers<[1], [0], [0], [1], [0, 0, 1, 1], [], []>} : vector<128x1152xbf16>, vector<1152x128xbf16>, vector<128x128xf32> -> vector<128x128xf32>
    %7 = arith.addf %3, %6 : vector<128x128xf32>
    %c0_6 = arith.constant 0 : index
    %c0_7 = arith.constant 0 : index
    %8 = vector.load %arg7[%c0_6, %c0_7] : memref<128x128xf32, #tpu.memory_space<vmem>>, vector<128x128xf32>
    tpu.vector_store %arg7[%c0_6, %c0_7], %7 {strides = array<i32>} : memref<128x128xf32, #tpu.memory_space<vmem>>, vector<128x128xf32>,
    %c0_i32_8 = arith.constant 0 : i32
    %9 = arith.cmpi eq, %arg2, %c0_i32_8 : i32
    %10 = arith.extui %9 : i1 to i32
    %c0_i32_9 = arith.constant 0 : i32
    %11 = arith.cmpi ne, %10, %c0_i32_9 : i32
    scf.if %11 {
      %c0_10 = arith.constant 0 : index
      %c0_11 = arith.constant 0 : index
      %12 = vector.load %arg7[%c0_10, %c0_11] : memref<128x128xf32, #tpu.memory_space<vmem>>, vector<128x128xf32>
      %c0_12 = arith.constant 0 : index
      %c0_13 = arith.constant 0 : index
      %13 = vector.load %arg5[%c0_12, %c0_13] : memref<1x128xf32, #tpu.memory_space<vmem>>, vector<1x128xf32>
      %14 = vector.broadcast %13 : vector<1x128xf32> to vector<128x128xf32>
      %15 = arith.addf %12, %14 : vector<128x128xf32>
      %cst_14 = arith.constant 0.000000e+00 : f32
      %16 = vector.broadcast %cst_14 : f32 to vector<128x128xf32>
      %17 = arith.maximumf %15, %16 : vector<128x128xf32>
      %18 = arith.truncf %17 : vector<128x128xf32> to vector<128x128xbf16>
      %c0_15 = arith.constant 0 : index
      %c0_16 = arith.constant 0 : index
      %19 = vector.load %arg6[%c0_15, %c0_16] : memref<128x128xbf16, #tpu.memory_space<vmem>>, vector<128x128xbf16>
      tpu.vector_store %arg6[%c0_15, %c0_16], %18 {strides = array<i32>} : memref<128x128xbf16, #tpu.memory_space<vmem>>, vector<128x128xbf16>,
    } else {
    }
    return
  }
  func.func @transform_0(%arg0: i32, %arg1: i32, %arg2: i32) -> (i32, i32) {
    %c0_i32 = arith.constant 0 : i32
    return %arg0, %arg2 : i32, i32
  }
  func.func @transform_1(%arg0: i32, %arg1: i32, %arg2: i32) -> (i32, i32) {
    %c0_i32 = arith.constant 0 : i32
    return %arg2, %arg1 : i32, i32
  }
  func.func @transform_2(%arg0: i32, %arg1: i32, %arg2: i32) -> (i32, i32) {
    %c0_i32 = arith.constant 0 : i32
    %c0_i32_0 = arith.constant 0 : i32
    return %c0_i32, %arg1 : i32, i32
  }
  func.func @transform_3(%arg0: i32, %arg1: i32, %arg2: i32) -> (i32, i32) {
    %c0_i32 = arith.constant 0 : i32
    return %arg0, %arg1 : i32, i32
  }
}

module attributes {stable_mosaic.version = 11 : i64} {
  func.func @_mm_kernel(%arg0: i32, %arg1: i32, %arg2: i32, %arg3: memref<128x128xbf16, #tpu.memory_space<vmem>>, %arg4: memref<128x128xbf16, #tpu.memory_space<vmem>>, %arg5: memref<1x128xf32, #tpu.memory_space<vmem>>, %arg6: memref<128x128xbf16, #tpu.memory_space<vmem>>, %arg7: memref<128x128xf32, #tpu.memory_space<vmem>>) attributes {dimension_semantics = [#tpu.dimension_semantics<parallel>, #tpu.dimension_semantics<parallel>, #tpu.dimension_semantics<arbitrary>], iteration_bounds = array<i64: 1, 2, 1>, scalar_prefetch = 0 : i64, scratch_operands = 1 : i64, tpu.core_type = #tpu.core_type<tc>, window_params = [{transform_indices = @transform_0, window_bounds = array<i64: 128, 128>}, {transform_indices = @transform_1, window_bounds = array<i64: 128, 128>}, {transform_indices = @transform_2, window_bounds = array<i64: 1, 128>}, {transform_indices = @transform_3, window_bounds = array<i64: 128, 128>}]} {
    %c0_i32 = arith.constant 0 : i32
    %0 = arith.cmpi eq, %arg2, %c0_i32 : i32
    %1 = arith.extui %0 : i1 to i32
    %c0_i32_0 = arith.constant 0 : i32
    %2 = arith.cmpi ne, %1, %c0_i32_0 : i32
    scf.if %2 {
      %cst_10 = arith.constant 0.000000e+00 : f32
      %12 = vector.broadcast %cst_10 : f32 to vector<128x128xf32>
      %c0_11 = arith.constant 0 : index
      %c0_12 = arith.constant 0 : index
      %13 = vector.load %arg7[%c0_11, %c0_12] : memref<128x128xf32, #tpu.memory_space<vmem>>, vector<128x128xf32>
      tpu.vector_store %arg7[%c0_11, %c0_12], %12 {strides = array<i32>} : memref<128x128xf32, #tpu.memory_space<vmem>>, vector<128x128xf32>,
    } else {
    }
    %c0 = arith.constant 0 : index
    %c0_1 = arith.constant 0 : index
    %3 = vector.load %arg7[%c0, %c0_1] : memref<128x128xf32, #tpu.memory_space<vmem>>, vector<128x128xf32>
    %c0_2 = arith.constant 0 : index
    %c0_3 = arith.constant 0 : index
    %4 = vector.load %arg3[%c0_2, %c0_3] : memref<128x128xbf16, #tpu.memory_space<vmem>>, vector<128x128xbf16>
    %c0_4 = arith.constant 0 : index
    %c0_5 = arith.constant 0 : index
    %5 = vector.load %arg4[%c0_4, %c0_5] : memref<128x128xbf16, #tpu.memory_space<vmem>>, vector<128x128xbf16>
    %cst = arith.constant dense<0.000000e+00> : vector<128x128xf32>
    %6 = tpu.matmul %4, %5, %cst {dimension_numbers = #tpu.dot_dimension_numbers<[1], [0], [0], [1], [0, 0, 1, 1], [], []>} : vector<128x128xbf16>, vector<128x128xbf16>, vector<128x128xf32> -> vector<128x128xf32>
    %7 = arith.addf %3, %6 : vector<128x128xf32>
    %c0_6 = arith.constant 0 : index
    %c0_7 = arith.constant 0 : index
    %8 = vector.load %arg7[%c0_6, %c0_7] : memref<128x128xf32, #tpu.memory_space<vmem>>, vector<128x128xf32>
    tpu.vector_store %arg7[%c0_6, %c0_7], %7 {strides = array<i32>} : memref<128x128xf32, #tpu.memory_space<vmem>>, vector<128x128xf32>,
    %c0_i32_8 = arith.constant 0 : i32
    %9 = arith.cmpi eq, %arg2, %c0_i32_8 : i32
    %10 = arith.extui %9 : i1 to i32
    %c0_i32_9 = arith.constant 0 : i32
    %11 = arith.cmpi ne, %10, %c0_i32_9 : i32
    scf.if %11 {
      %c0_10 = arith.constant 0 : index
      %c0_11 = arith.constant 0 : index
      %12 = vector.load %arg7[%c0_10, %c0_11] : memref<128x128xf32, #tpu.memory_space<vmem>>, vector<128x128xf32>
      %c0_12 = arith.constant 0 : index
      %c0_13 = arith.constant 0 : index
      %13 = vector.load %arg5[%c0_12, %c0_13] : memref<1x128xf32, #tpu.memory_space<vmem>>, vector<1x128xf32>
      %14 = vector.broadcast %13 : vector<1x128xf32> to vector<128x128xf32>
      %15 = arith.addf %12, %14 : vector<128x128xf32>
      %16 = arith.truncf %15 : vector<128x128xf32> to vector<128x128xbf16>
      %c0_14 = arith.constant 0 : index
      %c0_15 = arith.constant 0 : index
      %17 = vector.load %arg6[%c0_14, %c0_15] : memref<128x128xbf16, #tpu.memory_space<vmem>>, vector<128x128xbf16>
      tpu.vector_store %arg6[%c0_14, %c0_15], %16 {strides = array<i32>} : memref<128x128xbf16, #tpu.memory_space<vmem>>, vector<128x128xbf16>,
    } else {
    }
    return
  }
  func.func @transform_0(%arg0: i32, %arg1: i32, %arg2: i32) -> (i32, i32) {
    %c0_i32 = arith.constant 0 : i32
    return %arg0, %arg2 : i32, i32
  }
  func.func @transform_1(%arg0: i32, %arg1: i32, %arg2: i32) -> (i32, i32) {
    %c0_i32 = arith.constant 0 : i32
    return %arg2, %arg1 : i32, i32
  }
  func.func @transform_2(%arg0: i32, %arg1: i32, %arg2: i32) -> (i32, i32) {
    %c0_i32 = arith.constant 0 : i32
    %c0_i32_0 = arith.constant 0 : i32
    return %c0_i32, %arg1 : i32, i32
  }
  func.func @transform_3(%arg0: i32, %arg1: i32, %arg2: i32) -> (i32, i32) {
    %c0_i32 = arith.constant 0 : i32
    return %arg0, %arg1 : i32, i32
  }
}

module attributes {stable_mosaic.version = 11 : i64} {
  func.func @_mm_res_kernel(%arg0: i32, %arg1: i32, %arg2: i32, %arg3: memref<128x128xbf16, #tpu.memory_space<vmem>>, %arg4: memref<128x128xbf16, #tpu.memory_space<vmem>>, %arg5: memref<1x128xf32, #tpu.memory_space<vmem>>, %arg6: memref<128x128xbf16, #tpu.memory_space<vmem>>, %arg7: memref<128x128xbf16, #tpu.memory_space<vmem>>, %arg8: memref<128x128xf32, #tpu.memory_space<vmem>>) attributes {dimension_semantics = [#tpu.dimension_semantics<parallel>, #tpu.dimension_semantics<parallel>, #tpu.dimension_semantics<arbitrary>], iteration_bounds = array<i64: 1, 2, 1>, scalar_prefetch = 0 : i64, scratch_operands = 1 : i64, tpu.core_type = #tpu.core_type<tc>, window_params = [{transform_indices = @transform_0, window_bounds = array<i64: 128, 128>}, {transform_indices = @transform_1, window_bounds = array<i64: 128, 128>}, {transform_indices = @transform_2, window_bounds = array<i64: 1, 128>}, {transform_indices = @transform_3, window_bounds = array<i64: 128, 128>}, {transform_indices = @transform_4, window_bounds = array<i64: 128, 128>}]} {
    %c0_i32 = arith.constant 0 : i32
    %0 = arith.cmpi eq, %arg2, %c0_i32 : i32
    %1 = arith.extui %0 : i1 to i32
    %c0_i32_0 = arith.constant 0 : i32
    %2 = arith.cmpi ne, %1, %c0_i32_0 : i32
    scf.if %2 {
      %cst_10 = arith.constant 0.000000e+00 : f32
      %12 = vector.broadcast %cst_10 : f32 to vector<128x128xf32>
      %c0_11 = arith.constant 0 : index
      %c0_12 = arith.constant 0 : index
      %13 = vector.load %arg8[%c0_11, %c0_12] : memref<128x128xf32, #tpu.memory_space<vmem>>, vector<128x128xf32>
      tpu.vector_store %arg8[%c0_11, %c0_12], %12 {strides = array<i32>} : memref<128x128xf32, #tpu.memory_space<vmem>>, vector<128x128xf32>,
    } else {
    }
    %c0 = arith.constant 0 : index
    %c0_1 = arith.constant 0 : index
    %3 = vector.load %arg8[%c0, %c0_1] : memref<128x128xf32, #tpu.memory_space<vmem>>, vector<128x128xf32>
    %c0_2 = arith.constant 0 : index
    %c0_3 = arith.constant 0 : index
    %4 = vector.load %arg3[%c0_2, %c0_3] : memref<128x128xbf16, #tpu.memory_space<vmem>>, vector<128x128xbf16>
    %c0_4 = arith.constant 0 : index
    %c0_5 = arith.constant 0 : index
    %5 = vector.load %arg4[%c0_4, %c0_5] : memref<128x128xbf16, #tpu.memory_space<vmem>>, vector<128x128xbf16>
    %cst = arith.constant dense<0.000000e+00> : vector<128x128xf32>
    %6 = tpu.matmul %4, %5, %cst {dimension_numbers = #tpu.dot_dimension_numbers<[1], [0], [0], [1], [0, 0, 1, 1], [], []>} : vector<128x128xbf16>, vector<128x128xbf16>, vector<128x128xf32> -> vector<128x128xf32>
    %7 = arith.addf %3, %6 : vector<128x128xf32>
    %c0_6 = arith.constant 0 : index
    %c0_7 = arith.constant 0 : index
    %8 = vector.load %arg8[%c0_6, %c0_7] : memref<128x128xf32, #tpu.memory_space<vmem>>, vector<128x128xf32>
    tpu.vector_store %arg8[%c0_6, %c0_7], %7 {strides = array<i32>} : memref<128x128xf32, #tpu.memory_space<vmem>>, vector<128x128xf32>,
    %c0_i32_8 = arith.constant 0 : i32
    %9 = arith.cmpi eq, %arg2, %c0_i32_8 : i32
    %10 = arith.extui %9 : i1 to i32
    %c0_i32_9 = arith.constant 0 : i32
    %11 = arith.cmpi ne, %10, %c0_i32_9 : i32
    scf.if %11 {
      %c0_10 = arith.constant 0 : index
      %c0_11 = arith.constant 0 : index
      %12 = vector.load %arg8[%c0_10, %c0_11] : memref<128x128xf32, #tpu.memory_space<vmem>>, vector<128x128xf32>
      %c0_12 = arith.constant 0 : index
      %c0_13 = arith.constant 0 : index
      %13 = vector.load %arg5[%c0_12, %c0_13] : memref<1x128xf32, #tpu.memory_space<vmem>>, vector<1x128xf32>
      %14 = vector.broadcast %13 : vector<1x128xf32> to vector<128x128xf32>
      %15 = arith.addf %12, %14 : vector<128x128xf32>
      %c0_14 = arith.constant 0 : index
      %c0_15 = arith.constant 0 : index
      %16 = vector.load %arg6[%c0_14, %c0_15] : memref<128x128xbf16, #tpu.memory_space<vmem>>, vector<128x128xbf16>
      %17 = arith.extf %16 : vector<128x128xbf16> to vector<128x128xf32>
      %18 = arith.addf %15, %17 : vector<128x128xf32>
      %cst_16 = arith.constant 0.000000e+00 : f32
      %19 = vector.broadcast %cst_16 : f32 to vector<128x128xf32>
      %20 = arith.maximumf %18, %19 : vector<128x128xf32>
      %21 = arith.truncf %20 : vector<128x128xf32> to vector<128x128xbf16>
      %c0_17 = arith.constant 0 : index
      %c0_18 = arith.constant 0 : index
      %22 = vector.load %arg7[%c0_17, %c0_18] : memref<128x128xbf16, #tpu.memory_space<vmem>>, vector<128x128xbf16>
      tpu.vector_store %arg7[%c0_17, %c0_18], %21 {strides = array<i32>} : memref<128x128xbf16, #tpu.memory_space<vmem>>, vector<128x128xbf16>,
    } else {
    }
    return
  }
  func.func @transform_0(%arg0: i32, %arg1: i32, %arg2: i32) -> (i32, i32) {
    %c0_i32 = arith.constant 0 : i32
    return %arg0, %arg2 : i32, i32
  }
  func.func @transform_1(%arg0: i32, %arg1: i32, %arg2: i32) -> (i32, i32) {
    %c0_i32 = arith.constant 0 : i32
    return %arg2, %arg1 : i32, i32
  }
  func.func @transform_2(%arg0: i32, %arg1: i32, %arg2: i32) -> (i32, i32) {
    %c0_i32 = arith.constant 0 : i32
    %c0_i32_0 = arith.constant 0 : i32
    return %c0_i32, %arg1 : i32, i32
  }
  func.func @transform_3(%arg0: i32, %arg1: i32, %arg2: i32) -> (i32, i32) {
    %c0_i32 = arith.constant 0 : i32
    return %arg0, %arg1 : i32, i32
  }
  func.func @transform_4(%arg0: i32, %arg1: i32, %arg2: i32) -> (i32, i32) {
    %c0_i32 = arith.constant 0 : i32
    return %arg0, %arg1 : i32, i32
  }
}

module attributes {stable_mosaic.version = 11 : i64} {
  func.func @_mm_kernel(%arg0: i32, %arg1: i32, %arg2: i32, %arg3: memref<128x256xbf16, #tpu.memory_space<vmem>>, %arg4: memref<256x128xbf16, #tpu.memory_space<vmem>>, %arg5: memref<1x128xf32, #tpu.memory_space<vmem>>, %arg6: memref<128x128xbf16, #tpu.memory_space<vmem>>, %arg7: memref<128x128xf32, #tpu.memory_space<vmem>>) attributes {dimension_semantics = [#tpu.dimension_semantics<parallel>, #tpu.dimension_semantics<parallel>, #tpu.dimension_semantics<arbitrary>], iteration_bounds = array<i64: 1, 1, 1>, scalar_prefetch = 0 : i64, scratch_operands = 1 : i64, tpu.core_type = #tpu.core_type<tc>, window_params = [{transform_indices = @transform_0, window_bounds = array<i64: 128, 256>}, {transform_indices = @transform_1, window_bounds = array<i64: 256, 128>}, {transform_indices = @transform_2, window_bounds = array<i64: 1, 128>}, {transform_indices = @transform_3, window_bounds = array<i64: 128, 128>}]} {
    %c0_i32 = arith.constant 0 : i32
    %0 = arith.cmpi eq, %arg2, %c0_i32 : i32
    %1 = arith.extui %0 : i1 to i32
    %c0_i32_0 = arith.constant 0 : i32
    %2 = arith.cmpi ne, %1, %c0_i32_0 : i32
    scf.if %2 {
      %cst_10 = arith.constant 0.000000e+00 : f32
      %12 = vector.broadcast %cst_10 : f32 to vector<128x128xf32>
      %c0_11 = arith.constant 0 : index
      %c0_12 = arith.constant 0 : index
      %13 = vector.load %arg7[%c0_11, %c0_12] : memref<128x128xf32, #tpu.memory_space<vmem>>, vector<128x128xf32>
      tpu.vector_store %arg7[%c0_11, %c0_12], %12 {strides = array<i32>} : memref<128x128xf32, #tpu.memory_space<vmem>>, vector<128x128xf32>,
    } else {
    }
    %c0 = arith.constant 0 : index
    %c0_1 = arith.constant 0 : index
    %3 = vector.load %arg7[%c0, %c0_1] : memref<128x128xf32, #tpu.memory_space<vmem>>, vector<128x128xf32>
    %c0_2 = arith.constant 0 : index
    %c0_3 = arith.constant 0 : index
    %4 = vector.load %arg3[%c0_2, %c0_3] : memref<128x256xbf16, #tpu.memory_space<vmem>>, vector<128x256xbf16>
    %c0_4 = arith.constant 0 : index
    %c0_5 = arith.constant 0 : index
    %5 = vector.load %arg4[%c0_4, %c0_5] : memref<256x128xbf16, #tpu.memory_space<vmem>>, vector<256x128xbf16>
    %cst = arith.constant dense<0.000000e+00> : vector<128x128xf32>
    %6 = tpu.matmul %4, %5, %cst {dimension_numbers = #tpu.dot_dimension_numbers<[1], [0], [0], [1], [0, 0, 1, 1], [], []>} : vector<128x256xbf16>, vector<256x128xbf16>, vector<128x128xf32> -> vector<128x128xf32>
    %7 = arith.addf %3, %6 : vector<128x128xf32>
    %c0_6 = arith.constant 0 : index
    %c0_7 = arith.constant 0 : index
    %8 = vector.load %arg7[%c0_6, %c0_7] : memref<128x128xf32, #tpu.memory_space<vmem>>, vector<128x128xf32>
    tpu.vector_store %arg7[%c0_6, %c0_7], %7 {strides = array<i32>} : memref<128x128xf32, #tpu.memory_space<vmem>>, vector<128x128xf32>,
    %c0_i32_8 = arith.constant 0 : i32
    %9 = arith.cmpi eq, %arg2, %c0_i32_8 : i32
    %10 = arith.extui %9 : i1 to i32
    %c0_i32_9 = arith.constant 0 : i32
    %11 = arith.cmpi ne, %10, %c0_i32_9 : i32
    scf.if %11 {
      %c0_10 = arith.constant 0 : index
      %c0_11 = arith.constant 0 : index
      %12 = vector.load %arg7[%c0_10, %c0_11] : memref<128x128xf32, #tpu.memory_space<vmem>>, vector<128x128xf32>
      %c0_12 = arith.constant 0 : index
      %c0_13 = arith.constant 0 : index
      %13 = vector.load %arg5[%c0_12, %c0_13] : memref<1x128xf32, #tpu.memory_space<vmem>>, vector<1x128xf32>
      %14 = vector.broadcast %13 : vector<1x128xf32> to vector<128x128xf32>
      %15 = arith.addf %12, %14 : vector<128x128xf32>
      %cst_14 = arith.constant 0.000000e+00 : f32
      %16 = vector.broadcast %cst_14 : f32 to vector<128x128xf32>
      %17 = arith.maximumf %15, %16 : vector<128x128xf32>
      %18 = arith.truncf %17 : vector<128x128xf32> to vector<128x128xbf16>
      %c0_15 = arith.constant 0 : index
      %c0_16 = arith.constant 0 : index
      %19 = vector.load %arg6[%c0_15, %c0_16] : memref<128x128xbf16, #tpu.memory_space<vmem>>, vector<128x128xbf16>
      tpu.vector_store %arg6[%c0_15, %c0_16], %18 {strides = array<i32>} : memref<128x128xbf16, #tpu.memory_space<vmem>>, vector<128x128xbf16>,
    } else {
    }
    return
  }
  func.func @transform_0(%arg0: i32, %arg1: i32, %arg2: i32) -> (i32, i32) {
    %c0_i32 = arith.constant 0 : i32
    return %arg0, %arg2 : i32, i32
  }
  func.func @transform_1(%arg0: i32, %arg1: i32, %arg2: i32) -> (i32, i32) {
    %c0_i32 = arith.constant 0 : i32
    return %arg2, %arg1 : i32, i32
  }
  func.func @transform_2(%arg0: i32, %arg1: i32, %arg2: i32) -> (i32, i32) {
    %c0_i32 = arith.constant 0 : i32
    %c0_i32_0 = arith.constant 0 : i32
    return %c0_i32, %arg1 : i32, i32
  }
  func.func @transform_3(%arg0: i32, %arg1: i32, %arg2: i32) -> (i32, i32) {
    %c0_i32 = arith.constant 0 : i32
    return %arg0, %arg1 : i32, i32
  }
}

</mosaic_0001>

<bundles_post_ra>
// kernel: tpu_custom_call.1
= control target key start
LH: loop header
LB: loop body
LE: loop exit
PB: predicated region body
PF: predicated region fallthrough
CT: control target
= control target key end

     0   :  { %8 = vsyncpa [#allocation4], 0  ;;  %s2788_s0 = inlined_call_operand.hbm [shape: bf16[1,10,10,128], index: 0, kind: input, shape index: {}]   ;;  %s2789_s1 = inlined_call_operand.hbm [shape: bf16[3,3,128,128], index: 1, kind: input, shape index: {}]   ;;  %s2790_s2 = inlined_call_operand.vmem [shape: f32[1,128], index: 2, kind: input, shape index: {}]   ;;  %s2791_s3 = inlined_call_operand.hbm [shape: bf16[1,64,128], index: 3, kind: output, shape index: {}]  }
   0x1   :  { %9 = vsyncpa [#allocation7], 0 }
   0x2   :  { %10 = vsyncpa [#allocation5], 0  ;;  %s15_s14 = sshll.u32 %s2788_s0, 4  ;;  %s2378_s15 = smov [#allocation3]   ;;  %s16_s14 = int_to_ptr.hbm [resolvable:$true] %s15_s14 }
   0x3   :  { %s17_s16 = sshll.u32 %s2378_s15, 4  ;;  %s28_s19 = sshll.u32 %s2789_s1, 4  ;;  %s18_s16 = int_to_ptr.vmem [resolvable:$true] %s17_s16  ;;  %s29_s19 = int_to_ptr.hbm [resolvable:$true] %s28_s19 }
   0x4   :  { %s2379_s20 = smov 64   ;;  %s2380_s21 = smov 4  }
   0x5   :  { %23 = dma.hbm_to_vmem [thread:$0]  %s16_s14, 1280, %s18_s16, [#allocation4], %s2379_s20, %s2379_s20, %s2380_s21  }
   0x6   :  { %s2381_s22 = smov [#allocation6]  }
   0x7   :  { %s30_s23 = sshll.u32 %s2381_s22, 4  ;;  %s31_s23 = int_to_ptr.vmem [resolvable:$true] %s30_s23 }
   0x8   :  { %36 = dma.hbm_to_vmem [thread:$0]  %s29_s19, 9216, %s31_s23, [#allocation7], %s2379_s20, %s2379_s20, %s2380_s21  }
   0x9   :  { %2372 = dma.done.wait [#allocation4], 1280  }
   0xa   :  { %2373 = vsyncadd [#allocation4], 4294966016 }
   0xb   :  { %2374 = dma.done.wait [#allocation7], 9216  }
   0xc   :  { %2375 = vsyncadd [#allocation7], 4294958080  ;;  %v2182_v0 = vld [vmem:[#allocation6 + $0x38] sm:$0xff]  ;;  %v2181_v2 = vld [vmem:[#allocation6 + $0x30] sm:$0xff]  ;;  %vm473_vm0 = vcmask 1042432   ;;  %vm474_vm1 = vcmask 1046532  }
   0xd   :  { %v2198_v1 = vld [vmem:[#allocation6 + $0xb8] sm:$0xff]  ;;  %2278 = vmatpush.bf16.msra.mxu1 %v2182_v0  ;;  %163 = vmatpush.bf16.msra.mxu0 %v2182_v0  ;;  %v2197_v3 = vld [vmem:[#allocation6 + $0xb0] sm:$0xff]  ;;  %v2180_v6 = vld [vmem:[#allocation6 + $0x28] sm:$0xff]  ;;  %vm216_vm3 = vsmask.f32 3328  ;;  %s1797_s27 = sshll.u32 %s2791_s3, 4  ;;  %s1798_s27 = int_to_ptr.hbm [resolvable:$true] %s1797_s27 }
   0xe   :  { %589 = vmatpush.bf16.msra.mxu2 %v2198_v1  ;;  %v2210_v4 = vld [vmem:[#allocation6 + $0xf8] sm:$0xff]  ;;  %v2209_v5 = vld [vmem:[#allocation6 + $0xf0] sm:$0xff]  ;;  %v2196_v7 = vld [vmem:[#allocation6 + $0xa8] sm:$0xff]  ;;  %vm217_vm4 = vsmask.f32 7440 }
   0xf   :  { %724 = vmatpush.bf16.msra.mxu3 %v2210_v4  ;;  %v2208_v8 = vld [vmem:[#allocation6 + $0xe8] sm:$0xff]  ;;  %v2179_v9 = vld [vmem:[#allocation6 + $0x20] sm:$0xff]  ;;  %v2178_v12 = vld [vmem:[#allocation6 + $0x18] sm:$0xff] }
  0x10   :  { %v2195_v10 = vld [vmem:[#allocation6 + $0xa0] sm:$0xff]  ;;  %v2194_v13 = vld [vmem:[#allocation6 + $0x98] sm:$0xff]  ;;  %v2415_v14 = vld [vmem:[#allocation3 + $0x4] sm:$0x1] }
  0x11   :  { %2279 = vmatpush.bf16.msra.mxu1 %v2181_v2  ;;  %164 = vmatpush.bf16.msra.mxu0 %v2181_v2  ;;  %v2207_v11 = vld [vmem:[#allocation6 + $0xe0] sm:$0xff]  ;;  %v2417_v15 = vld [vmem:[#allocation3 + $0xc] sm:$0x1]  ;;  %v449_v16 = vld [vmem:[#allocation3] sm:$0xe]  ;;  %v478_v22 = vrot.slane %v2415_v14, 5 }
  0x12   :  { %590 = vmatpush.bf16.msra.mxu2 %v2197_v3  ;;  %v450_v17 = vld [vmem:[#allocation3 + $0x8] sm:$0xe]  ;;  %v2177_v19 = vld [vmem:[#allocation6 + $0x10] sm:$0xff]  ;;  %v1891_v21 = vrot.slane %v449_v16, 9  ;;  %v482_v24 = vrot.slane %v2417_v15, 5  ;;  %vm2421_vm2 = vmor %vm473_vm0, %vm474_vm1 }
  0x13   :  { %725 = vmatpush.bf16.msra.mxu3 %v2209_v5  ;;  %v2206_v18 = vld [vmem:[#allocation6 + $0xd8] sm:$0xff]  ;;  %v2193_v20 = vld [vmem:[#allocation6 + $0x90] sm:$0xff]  ;;  %v1892_v23 = vrot.slane %v450_v17, 9  ;;  %v2176_v27 = vld [vmem:[#allocation6 + $0x8] sm:$0xff] }
  0x14   :  { %v2205_v26 = vld [vmem:[#allocation6 + $0xd0] sm:$0xff]  ;;  %v2192_v28 = vld [vmem:[#allocation6 + $0x88] sm:$0xff]  ;;  %v479_v29 = vsel %vm2421_vm2, %v1891_v21, %v478_v22  ;;  %v2175_v31 = vld [vmem:[#allocation6] sm:$0xff]  ;;  %v229_v22 = vshll.u32 %v2415_v14, 16 }
  0x15   :  { %2280 = vmatpush.bf16.msra.mxu1 %v2180_v6  ;;  %165 = vmatpush.bf16.msra.mxu0 %v2180_v6  ;;  %v483_v30 = vsel %vm2421_vm2, %v1892_v23, %v482_v24  ;;  %v1821_v32 = vld [vmem:[#allocation3 + $0x20] sm:$0xf]  ;;  %v2173_v33 = vld [vmem:[#allocation3 + $0x24] sm:$0xf0]  ;;  %v2204_v35 = vld [vmem:[#allocation6 + $0xc8] sm:$0xff]  ;;  %v525_v39 = vunpack.c.l.b16 %v479_v29  ;;  %v243_v23 = vshll.u32 %v2417_v15, 16 }
  0x16   :  { %591 = vmatpush.bf16.msra.mxu2 %v2196_v7  ;;  %v2190_v34 = vld [vmem:[#allocation6 + $0x78] sm:$0xff]  ;;  %v2191_v36 = vld [vmem:[#allocation6 + $0x80] sm:$0xff]  ;;  %v1813_v37 = vld [vmem:[#allocation3] sm:$0xf]  ;;  %v526_v40 = vunpack.c.l.b16 %v483_v30  ;;  %v1822_v47 = vor.u32 %v2173_v33, %v1821_v32 }
  0x17   :  { %726 = vmatpush.bf16.msra.mxu3 %v2208_v8  ;;  %v2171_v38 = vld [vmem:[#allocation3 + $0x4] sm:$0xf0]  ;;  %v200_v42 = vld [vmem:[#allocation3] sm:$0xf]  ;;  %v2429_v45 = vld [vmem:[#allocation3 + $0x14] sm:$0x1] }
  0x18   :  { %v2218_v41 = vld [vmem:[#allocation6 + $0x138] sm:$0xff]  ;;  %v2431_v46 = vld [vmem:[#allocation3 + $0x1c] sm:$0x1]  ;;  %v2189_v48 = vld [vmem:[#allocation6 + $0x70] sm:$0xff]  ;;  %v1814_v49 = vor.u32 %v2171_v38, %v1813_v37  ;;  %v533_v53 = vpack.c.b16 %v526_v40, %v525_v39  ;;  %v220_v56 = vshrl.u32 %v200_v42, 16  ;;  %v223_v57 = vshll.u32 %v200_v42, 16 }
  0x19   :  { %2281 = vmatpush.bf16.msra.mxu1 %v2179_v9  ;;  %166 = vmatpush.bf16.msra.mxu0 %v2179_v9  ;;  %v202_v43 = vld [vmem:[#allocation3 + $0x8] sm:$0xf]  ;;  %v2199_v51 = vld [vmem:[#allocation3 + $0xc] sm:$0xf0]  ;;  %v452_v55 = vld [vmem:[#allocation3 + $0x18] sm:$0xe] }
  0x1a   :  { %592 = vmatpush.bf16.msra.mxu2 %v2195_v10  ;;  %v2238_v44 = vld [vmem:[#allocation6 + $0x1b8] sm:$0xff]  ;;  %v451_v52 = vld [vmem:[#allocation3 + $0x10] sm:$0xe]  ;;  %v234_v58 = vshrl.u32 %v202_v43, 16  ;;  %v237_v60 = vshll.u32 %v202_v43, 16  ;;  %v2217_v63 = vld [vmem:[#allocation6 + $0x130] sm:$0xff] }
  0x1b   :  { %727 = vmatpush.bf16.msra.mxu3 %v2207_v11  ;;  %v1933_v50 = vld [vmem:[#allocation3 + $0x8] sm:$0xf]  ;;  %v2203_v54 = vld [vmem:[#allocation6 + $0xc0] sm:$0xff]  ;;  %v486_v0 = vrot.slane %v2429_v45, 5  ;;  %v2237_v1 = vld [vmem:[#allocation6 + $0x1b0] sm:$0xff]  ;;  %v1893_v3 = vrot.slane %v451_v52, 9 }
  0x1c   :  { %v2246_v59 = vld [vmem:[#allocation6 + $0x1f8] sm:$0xff]  ;;  %v763_v62 = vld [vmem:[#allocation3 + $0x10] sm:$0xf]  ;;  %v1934_v2 = vor.u32 %v2199_v51, %v1933_v50  ;;  %v1894_v4 = vrot.slane %v452_v55, 9  ;;  %v490_v5 = vrot.slane %v2431_v46, 5  ;;  %v2188_v6 = vld [vmem:[#allocation6 + $0x68] sm:$0xff] }
  0x1d   :  { %2282 = vmatpush.bf16.msra.mxu1 %v2178_v12  ;;  %167 = vmatpush.bf16.msra.mxu0 %v2178_v12  ;;  %v761_v61 = vld [vmem:[#allocation3 + $0x8] sm:$0xf]  ;;  %v792_v9 = vshrl.u32 %v763_v62, 16  ;;  %v795_v10 = vshll.u32 %v763_v62, 16  ;;  %v2216_v11 = vld [vmem:[#allocation6 + $0x128] sm:$0xff]  ;;  %v222_v12 = vrot.slane %v220_v56, 4  ;;  %v487_v24 = vsel %vm2421_vm2, %v1893_v3, %v486_v0  ;;  %vm2467_vm5 = vmor %vm216_vm3, %vm217_vm4 }
  0x1e   :  { %593 = vmatpush.bf16.msra.mxu2 %v2194_v13  ;;  %v778_v7 = vshrl.u32 %v761_v61, 16  ;;  %v781_v8 = vshll.u32 %v761_v61, 16  ;;  %v225_v13 = vrot.slane %v223_v57, 5  ;;  %v236_v16 = vrot.slane %v234_v58, 4  ;;  %v2437_v21 = vld [vmem:[#allocation3 + $0x14] sm:$0x1] }
  0x1f   :  { %728 = vmatpush.bf16.msra.mxu3 %v2206_v18  ;;  %v239_v17 = vrot.slane %v237_v60, 5  ;;  %v2245_v18 = vld [vmem:[#allocation6 + $0x1f0] sm:$0xff]  ;;  %v794_v30 = vrot.slane %v792_v9, 4  ;;  %v2445_v32 = vld [vmem:[#allocation3 + $0x30] sm:$0xf]  ;;  %v2244_v37 = vld [vmem:[#allocation6 + $0x1e8] sm:$0xff] }
  0x20   :  { %v783_v29 = vrot.slane %v781_v8, 5  ;;  %v2447_v33 = vld [vmem:[#allocation3 + $0x34] sm:$0xf0]  ;;  %v2215_v14 = vld [vmem:[#allocation6 + $0x120] sm:$0xff]  ;;  %v2471_v61 = vld [vmem:[#allocation3 + $0x24] sm:$0x1] }
  0x21   :  { %2283 = vmatpush.bf16.msra.mxu1 %v2177_v19  ;;  %168 = vmatpush.bf16.msra.mxu0 %v2177_v19  ;;  %v2236_v19 = vld [vmem:[#allocation6 + $0x1a8] sm:$0xff]  ;;  %v240_v15 = vor.u32 %v239_v17, %v236_v16  ;;  %v1817_v38 = vld [vmem:[#allocation3 + $0x10] sm:$0xf]  ;;  %v1826_v58 = vor.u32 %v2447_v33, %v2445_v32  ;;  %v453_v62 = vld [vmem:[#allocation3 + $0x20] sm:$0xe] }
  0x22   :  { %594 = vmatpush.bf16.msra.mxu2 %v2193_v20  ;;  %v2435_v20 = vld [vmem:[#allocation3 + $0xc] sm:$0x1]  ;;  %v2172_v39 = vld [vmem:[#allocation3 + $0x14] sm:$0xf0]  ;;  %v2235_v40 = vld [vmem:[#allocation6 + $0x1a0] sm:$0xff]  ;;  %v1895_v17 = vrot.slane %v453_v62, 9 }
  0x23   :  { %729 = vmatpush.bf16.msra.mxu3 %v2205_v26  ;;  %v491_v26 = vsel %vm2421_vm2, %v1894_v4, %v490_v5  ;;  %v204_v43 = vld [vmem:[#allocation3 + $0x10] sm:$0xf]  ;;  %v206_v52 = vld [vmem:[#allocation3 + $0x18] sm:$0xf]  ;;  %v2473_v3 = vld [vmem:[#allocation3 + $0x2c] sm:$0x1] }
  0x24   :  { %v528_v42 = vunpack.c.l.b16 %v491_v26  ;;  %v765_v57 = vld [vmem:[#allocation3 + $0x18] sm:$0xf]  ;;  %v251_v0 = vshll.u32 %v204_v43, 16  ;;  %v454_v4 = vld [vmem:[#allocation3 + $0x28] sm:$0xe]  ;;  %v262_v5 = vshrl.u32 %v206_v52, 16 }
  0x25   :  { %2284 = vmatpush.bf16.msra.mxu1 %v2176_v27  ;;  %169 = vmatpush.bf16.msra.mxu0 %v2176_v27  ;;  %v2187_v27 = vld [vmem:[#allocation6 + $0x60] sm:$0xff]  ;;  %v1937_v60 = vld [vmem:[#allocation3 + $0x18] sm:$0xf]  ;;  %v767_v26 = vld [vmem:[#allocation3 + $0x20] sm:$0xf] }
  0x26   :  { %595 = vmatpush.bf16.msra.mxu2 %v2192_v28  ;;  %v780_v28 = vrot.slane %v778_v7, 4  ;;  %v2200_v7 = vld [vmem:[#allocation3 + $0x1c] sm:$0xf0] }
  0x27   :  { %730 = vmatpush.bf16.msra.mxu3 %v2204_v35  ;;  %v787_v35 = vshll.u32 %v2435_v20, 16 }
  0x28   :  { %v784_v50 = vor.u32 %v783_v29, %v780_v28  ;;  %v1938_v28 = vor.u32 %v2200_v7, %v1937_v60  ;;  %v264_v29 = vrot.slane %v262_v5, 4  ;;  %v2509_v60 = vld [vmem:[#allocation3 + $0x24] sm:$0x1] }
  0x29   :  { %2285 = vmatpush.bf16.msra.mxu1 %v2175_v31  ;;  %170 = vmatpush.bf16.msra.mxu0 %v2175_v31  ;;  %v797_v31 = vrot.slane %v795_v10, 5  ;;  %v2459_v55 = vrot.slane %v787_v35, 5  ;;  %v806_v10 = vshrl.u32 %v765_v57, 16  ;;  %v2184_v35 = vld [vmem:[#allocation6 + $0x48] sm:$0xff] }
  0x2a   :  { %596 = vmatpush.bf16.msra.mxu2 %v2191_v36  ;;  %v801_v36 = vshll.u32 %v2437_v21, 16  ;;  %v785_v8 = vrot.slane %v784_v50, 4 }
  0x2b   :  { %731 = vmatpush.bf16.msra.mxu3 %v2203_v54  ;;  %v798_v51 = vor.u32 %v797_v31, %v794_v30  ;;  %v2457_v54 = vrot.slane %v240_v15, 4  ;;  %v2234_v31 = vld [vmem:[#allocation6 + $0x198] sm:$0xff]  ;;  %v2243_v15 = vld [vmem:[#allocation6 + $0x1e0] sm:$0xff] }
  0x2c   :  { %181 = vmatmul.bf16.vlgmr.msra.gmra.mxu1 %v1822_v47  ;;  %171 = vmatmul.bf16.vlgmr.msra.gmra.mxu0 %v1814_v49  ;;  %v2214_v47 = vld [vmem:[#allocation6 + $0x118] sm:$0xff]  ;;  %v2453_v49 = vrot.slane %v243_v23, 5  ;;  %v2461_v56 = vrot.slane %v801_v36, 5  ;;  %v790_v32 = vsel %vm2467_vm5, %v785_v8, %v2459_v55  ;;  %v208_v55 = vld [vmem:[#allocation3 + $0x20] sm:$0xf] }
  0x2d   :  { %412 = vmatpush.bf16.msrb.mxu1 %v2190_v34  ;;  %970 = vmatpush.bf16.msrb.mxu0 %v2218_v41  ;;  %v226_v34 = vor.u32 %v225_v13, %v222_v12  ;;  %v527_v41 = vunpack.c.l.b16 %v487_v24  ;;  %v799_v9 = vrot.slane %v798_v51, 4  ;;  %v2185_v12 = vld [vmem:[#allocation6 + $0x50] sm:$0xff]  ;;  %v253_v24 = vrot.slane %v251_v0, 5  ;;  %v2226_v0 = vld [vmem:[#allocation6 + $0x178] sm:$0xff] }
  0x2e   :  { %1279 = vmatpush.bf16.msrb.mxu2 %v2238_v44  ;;  %732 = vmatmul.bf16.vlgmr.msra.gmra.mxu3 %v1934_v2  ;;  %v2186_v44 = vld [vmem:[#allocation6 + $0x58] sm:$0xff]  ;;  %v2213_v13 = vld [vmem:[#allocation6 + $0x110] sm:$0xff]  ;;  %v2501_v50 = vunpack.c.l.b16 %v790_v32  ;;  %v276_v5 = vshrl.u32 %v208_v55, 16 }
  0x2f   :  { %597 = vmatmul.bf16.vlgmr.msra.gmra.mxu2 %v533_v53  ;;  %1525 = vmatpush.bf16.msrb.mxu3 %v2246_v59  ;;  %v2455_v53 = vrot.slane %v226_v34, 4  ;;  %v534_v2 = vpack.c.b16 %v528_v42, %v527_v41  ;;  %v804_v33 = vsel %vm2467_vm5, %v799_v9, %v2461_v56  ;;  %v210_v56 = vld [vmem:[#allocation3 + $0x28] sm:$0xf] }
  0x30   :  { %v2503_v51 = vunpack.c.l.b16 %v804_v33  ;;  %v2518_v9 = vld [vmem:[#allocation6 + $0x238] sm:$0xff] }
  0x31   :  { %413 = vmatpush.bf16.msrb.mxu1 %v2189_v48  ;;  %971 = vmatpush.bf16.msrb.mxu0 %v2217_v63  ;;  %v2451_v48 = vrot.slane %v229_v22, 5  ;;  %v248_v63 = vshrl.u32 %v204_v43, 16  ;;  %v498_v22 = vrot.slane %v2473_v3, 5  ;;  %v271_v43 = vshll.u32 %v2431_v46, 16  ;;  %v2183_v46 = vld [vmem:[#allocation6 + $0x40] sm:$0xff] }
  0x32   :  { %1280 = vmatpush.bf16.msrb.mxu2 %v2237_v1  ;;  %v1818_v1 = vor.u32 %v2172_v39, %v1817_v38  ;;  %v820_v38 = vshrl.u32 %v767_v26, 16  ;;  %v823_v39 = vshll.u32 %v767_v26, 16  ;;  %v2529_v26 = vld [vmem:[#allocation3 + $0x3c] sm:$0x1] }
  0x33   :  { %1526 = vmatpush.bf16.msrb.mxu3 %v2245_v18  ;;  %v232_v16 = vsel %vm2467_vm5, %v2455_v53, %v2451_v48  ;;  %v494_v18 = vrot.slane %v2471_v61, 5  ;;  %v250_v23 = vrot.slane %v248_v63, 4  ;;  %v2505_v53 = vld [vmem:[#allocation3 + $0x1c] sm:$0x1] }
  0x34   :  { %v822_v62 = vrot.slane %v820_v38, 4  ;;  %v825_v63 = vrot.slane %v823_v39, 5  ;;  %v815_v8 = vshll.u32 %v2505_v53, 16  ;;  %v2534_v38 = vld [vmem:[#allocation6 + $0x230] sm:$0xff]  ;;  %v285_v39 = vshll.u32 %v2471_v61, 16 }
  0x35   :  { %414 = vmatpush.bf16.msrb.mxu1 %v2188_v6  ;;  %972 = vmatpush.bf16.msrb.mxu0 %v2216_v11  ;;  %v265_v6 = vshll.u32 %v206_v52, 16  ;;  %v809_v11 = vshll.u32 %v765_v57, 16  ;;  %v495_v36 = vsel %vm2421_vm2, %v1895_v17, %v494_v18  ;;  %v254_v42 = vor.u32 %v253_v24, %v250_v23  ;;  %v769_v18 = vld [vmem:[#allocation3 + $0x28] sm:$0xf]  ;;  %v2527_v24 = vld [vmem:[#allocation3 + $0x34] sm:$0x1] }
  0x36   :  { %1281 = vmatpush.bf16.msrb.mxu2 %v2236_v19  ;;  %v1896_v19 = vrot.slane %v454_v4, 9  ;;  %v529_v52 = vunpack.c.l.b16 %v495_v36  ;;  %v2513_v4 = vrot.slane %v271_v43, 5  ;;  %v829_v17 = vshll.u32 %v2509_v60, 16 }
  0x37   :  { %1527 = vmatpush.bf16.msrb.mxu3 %v2244_v37  ;;  %v267_v30 = vrot.slane %v265_v6, 5  ;;  %v811_v34 = vrot.slane %v809_v11, 5  ;;  %v257_v37 = vshll.u32 %v2429_v45, 16  ;;  %v2242_v45 = vld [vmem:[#allocation6 + $0x1d8] sm:$0xff]  ;;  %v279_v6 = vshll.u32 %v208_v55, 16 }
  0x38   :  { %v499_v41 = vsel %vm2421_vm2, %v1896_v19, %v498_v22  ;;  %v293_v11 = vshll.u32 %v210_v56, 16  ;;  %v2201_v22 = vld [vmem:[#allocation3 + $0x2c] sm:$0xf0]  ;;  %v826_v23 = vor.u32 %v825_v63, %v822_v62  ;;  %v817_v36 = vrot.slane %v815_v8, 5  ;;  %v2552_v62 = vld [vmem:[#allocation6 + $0x228] sm:$0xff] }
  0x39   :  { %415 = vmatpush.bf16.msrb.mxu1 %v2187_v27  ;;  %973 = vmatpush.bf16.msrb.mxu0 %v2215_v14  ;;  %v246_v27 = vsel %vm2467_vm5, %v2457_v54, %v2453_v49  ;;  %v808_v14 = vrot.slane %v806_v10, 4  ;;  %v268_v48 = vor.u32 %v267_v30, %v264_v29  ;;  %v2233_v49 = vld [vmem:[#allocation6 + $0x190] sm:$0xff]  ;;  %v530_v57 = vunpack.c.l.b16 %v499_v41  ;;  %v455_v29 = vld [vmem:[#allocation3 + $0x30] sm:$0xe]  ;;  %v456_v30 = vld [vmem:[#allocation3 + $0x38] sm:$0xe] }
  0x3a   :  { %1282 = vmatpush.bf16.msrb.mxu2 %v2235_v40  ;;  %v2212_v40 = vld [vmem:[#allocation6 + $0x108] sm:$0xff]  ;;  %v290_v10 = vshrl.u32 %v210_v56, 16  ;;  %v281_v32 = vrot.slane %v279_v6, 5  ;;  %v502_v43 = vrot.slane %v2527_v24, 5  ;;  %v2223_v6 = vld [vmem:[#allocation6 + $0x160] sm:$0xff] }
  0x3b   :  { %1528 = vmatpush.bf16.msrb.mxu3 %v2243_v15  ;;  %v812_v54 = vor.u32 %v811_v34, %v808_v14  ;;  %v2515_v7 = vrot.slane %v268_v48, 4  ;;  %v295_v14 = vrot.slane %v293_v11, 5  ;;  %v771_v34 = vld [vmem:[#allocation3 + $0x30] sm:$0xf]  ;;  %v834_v15 = vshrl.u32 %v769_v18, 16 }
  0x3c   :  { %186 = vmatmul.bf16.gmra.mxu1 %v1826_v58  ;;  %176 = vmatmul.bf16.gmra.mxu0 %v1818_v1  ;;  %v2507_v58 = vrot.slane %v257_v37, 5  ;;  %v2211_v1 = vld [vmem:[#allocation6 + $0x100] sm:$0xff]  ;;  %v292_v33 = vrot.slane %v290_v10, 4  ;;  %v831_v37 = vrot.slane %v829_v17, 5  ;;  %v1897_v48 = vrot.slane %v455_v29, 9  ;;  %v2240_v10 = vld [vmem:[#allocation6 + $0x1c8] sm:$0xff] }
  0x3d   :  { %416 = vmatpush.bf16.msrb.mxu1 %v2186_v44  ;;  %974 = vmatpush.bf16.msrb.mxu0 %v2214_v47  ;;  %v2497_v44 = vunpack.c.l.b16 %v232_v16  ;;  %v2499_v47 = vunpack.c.l.b16 %v246_v27  ;;  %v2522_v16 = vrot.slane %v812_v54, 4  ;;  %v914_v27 = vpack.c.b16 %v2503_v51, %v2501_v50  ;;  %v2232_v50 = vld [vmem:[#allocation6 + $0x188] sm:$0xff] }
  0x3e   :  { %1283 = vmatpush.bf16.msrb.mxu2 %v2234_v31  ;;  %737 = vmatmul.bf16.gmra.mxu3 %v1938_v28  ;;  %v535_v28 = vpack.c.b16 %v530_v57, %v529_v52  ;;  %v278_v31 = vrot.slane %v276_v5, 4  ;;  %v848_v51 = vshrl.u32 %v771_v34, 16  ;;  %v296_v52 = vor.u32 %v295_v14, %v292_v33  ;;  %v2241_v57 = vld [vmem:[#allocation6 + $0x1d0] sm:$0xff]  ;;  %v212_v33 = vld [vmem:[#allocation3 + $0x30] sm:$0xf] }
  0x3f   :  { %602 = vmatmul.bf16.gmra.mxu2 %v534_v2  ;;  %v2511_v2 = vrot.slane %v254_v42, 4  ;;  %1529 = vmatpush.bf16.msrb.mxu3 %v2242_v45  ;;  %v356_v19 = vpack.c.b16 %v2499_v47, %v2497_v44  ;;  %v827_v42 = vrot.slane %v826_v23, 4  ;;  %v506_v44 = vrot.slane %v2529_v26, 5  ;;  %v2224_v47 = vld [vmem:[#allocation6 + $0x168] sm:$0xff] }
  0x40   :  { %v282_v45 = vor.u32 %v281_v32, %v278_v31  ;;  %v836_v61 = vrot.slane %v834_v15, 4  ;;  %v274_v56 = vsel %vm2467_vm5, %v2515_v7, %v2513_v4  ;;  %v818_v63 = vsel %vm2467_vm5, %v2522_v16, %v817_v36  ;;  %v2222_v31 = vld [vmem:[#allocation6 + $0x158] sm:$0xff]  ;;  %v1316_v36 = vld [vmem:[#allocation3 + $0x10] sm:$0xf] }
  0x41   :  { %417 = vmatpush.bf16.msrb.mxu1 %v2185_v12  ;;  %975 = vmatpush.bf16.msrb.mxu0 %v2213_v13  ;;  %v2225_v12 = vld [vmem:[#allocation6 + $0x170] sm:$0xff]  ;;  %v2520_v13 = vld [vmem:[#allocation3 + $0x28] sm:$0xf]  ;;  %v260_v55 = vsel %vm2467_vm5, %v2511_v2, %v2507_v58  ;;  %v287_v58 = vrot.slane %v285_v39, 5  ;;  %v2231_v2 = vld [vmem:[#allocation6 + $0x180] sm:$0xff]  ;;  %v503_v4 = vsel %vm2421_vm2, %v1897_v48, %v502_v43  ;;  %v850_v8 = vrot.slane %v848_v51, 4 }
  0x42   :  { %1284 = vmatpush.bf16.msrb.mxu2 %v2233_v49  ;;  %v1942_v41 = vor.u32 %v2201_v22, %v2520_v13  ;;  %v1898_v49 = vrot.slane %v456_v30, 9  ;;  %v283_v7 = vrot.slane %v282_v45, 4  ;;  %v297_v11 = vrot.slane %v296_v52, 4  ;;  %v2567_v22 = vld [vmem:[#allocation6 + $0x220] sm:$0xff]  ;;  %v214_v43 = vld [vmem:[#allocation3 + $0x38] sm:$0xf] }
  0x43   :  { %1530 = vmatpush.bf16.msrb.mxu3 %v2241_v57  ;;  %v908_v23 = vunpack.c.l.b16 %v818_v63  ;;  %v1037_v39 = vrot.slane %v2437_v21, 5  ;;  %v1333_v48 = vshrl.u32 %v1316_v36, 16  ;;  %v2221_v52 = vld [vmem:[#allocation6 + $0x150] sm:$0xff] }
  0x44   :  { %v507_v5 = vsel %vm2421_vm2, %v1898_v49, %v506_v44  ;;  %v288_v30 = vsel %vm2467_vm5, %v283_v7, %v287_v58  ;;  %v304_v44 = vshrl.u32 %v212_v33, 16  ;;  %v1336_v49 = vshll.u32 %v1316_v36, 16 }
  0x45   :  { %418 = vmatpush.bf16.msrb.mxu1 %v2184_v35  ;;  %976 = vmatpush.bf16.msrb.mxu0 %v2212_v40  ;;  %v837_v35 = vshll.u32 %v769_v18, 16  ;;  %v299_v40 = vshll.u32 %v2473_v3, 16  ;;  %v851_v3 = vshll.u32 %v771_v34, 16  ;;  %v350_v18 = vunpack.c.l.b16 %v260_v55  ;;  %v773_v55 = vld [vmem:[#allocation3 + $0x38] sm:$0xf] }
  0x46   :  { %1285 = vmatpush.bf16.msrb.mxu2 %v2232_v50  ;;  %v532_v29 = vunpack.c.l.b16 %v507_v5  ;;  %v2582_v50 = vunpack.c.l.b16 %v288_v30  ;;  %v1335_v57 = vrot.slane %v1333_v48, 4  ;;  %v318_v58 = vshrl.u32 %v214_v43, 16 }
  0x47   :  { %v839_v54 = vrot.slane %v837_v35, 5  ;;  %v853_v17 = vrot.slane %v851_v3, 5  ;;  %1531 = vmatpush.bf16.msrb.mxu3 %v2240_v10  ;;  %v1338_v7 = vrot.slane %v1336_v49, 5  ;;  %v1008_v49 = vld [vmem:[#allocation3 + $0x10] sm:$0xe] }
  0x49   :  { %419 = vmatpush.bf16.msrb.mxu1 %v2183_v46  ;;  %977 = vmatpush.bf16.msrb.mxu0 %v2211_v1  ;;  %v2550_v46 = vld [vmem:[#allocation3 + $0x2c] sm:$0x1]  ;;  %v301_v1 = vrot.slane %v299_v40, 5  ;;  %v840_v13 = vor.u32 %v839_v54, %v836_v61  ;;  %v854_v35 = vor.u32 %v853_v17, %v850_v8  ;;  %v2239_v17 = vld [vmem:[#allocation6 + $0x1c0] sm:$0xff] }
  0x4a   :  { %v843_v16 = vshll.u32 %v2550_v46, 16  ;;  %1286 = vmatpush.bf16.msrb.mxu2 %v2231_v2  ;;  %v2593_v2 = vld [vmem:[#allocation3 + $0x14] sm:$0x1] }
  0x4b   :  { %v302_v14 = vsel %vm2467_vm5, %v297_v11, %v301_v1  ;;  %v841_v34 = vrot.slane %v840_v13, 4  ;;  %v855_v3 = vrot.slane %v854_v35, 4  ;;  %v327_v1 = vshll.u32 %v2529_v26, 16  ;;  %v2599_v13 = vld [vmem:[#allocation3 + $0x1c] sm:$0x1]  ;;  %1532 = vmatpush.bf16.msrb.mxu3 %v2239_v17 }
  0x4c   :  { %420 = vmatmul.bf16.vlgmr.msrb.gmra.mxu1 %v356_v19  ;;  %978 = vmatmul.bf16.vlgmr.msrb.gmra.mxu0 %v914_v27  ;;  %v351_v19 = vunpack.c.l.b16 %v274_v56  ;;  %v845_v15 = vrot.slane %v843_v16, 5  ;;  %v1318_v56 = vld [vmem:[#allocation3 + $0x18] sm:$0xf]  ;;  %v862_v11 = vshrl.u32 %v773_v55, 16  ;;  %v2053_v17 = vld [vmem:[#allocation3 + $0x10] sm:$0xf] }
  0x4d   :  { %1144 = vmatpush.bf16.msra.mxu1 %v2226_v0  ;;  %1699 = vmatpush.bf16.msra.mxu0 %v2518_v9  ;;  %v832_v0 = vsel %vm2467_vm5, %v827_v42, %v831_v37  ;;  %v1033_v37 = vrot.slane %v2435_v20, 5  ;;  %v2579_v42 = vld [vmem:[#allocation3 + $0x3c] sm:$0xf0]  ;;  %v2220_v16 = vld [vmem:[#allocation6 + $0x148] sm:$0xff] }
  0x4e   :  { %742 = vmatmul.bf16.gmra.mxu3 %v1942_v41  ;;  %v909_v27 = vunpack.c.l.b16 %v832_v0  ;;  %2286 = vmatpush.bf16.msra.mxu2 %v2518_v9  ;;  %v357_v40 = vpack.c.b16 %v351_v19, %v350_v18  ;;  %v2577_v41 = vld [vmem:[#allocation3 + $0x38] sm:$0xf]  ;;  %v2584_v9 = vunpack.c.l.b16 %v302_v14  ;;  %v846_v54 = vsel %vm2467_vm5, %v841_v34, %v845_v15  ;;  %v2610_v15 = vld [vmem:[#allocation6 + $0x210] sm:$0xff] }
  0x4f   :  { %607 = vmatmul.bf16.gmra.mxu2 %v535_v28  ;;  %v531_v28 = vunpack.c.l.b16 %v503_v4  ;;  %v1946_v63 = vor.u32 %v2579_v42, %v2577_v41  ;;  %v313_v0 = vshll.u32 %v2527_v24, 16  ;;  %v306_v4 = vrot.slane %v304_v44, 4  ;;  %v2219_v42 = vld [vmem:[#allocation6 + $0x140] sm:$0xff] }
  0x50   :  { %v915_v45 = vpack.c.b16 %v909_v27, %v908_v23  ;;  %v358_v8 = vpack.c.b16 %v2584_v9, %v2582_v50  ;;  %v2597_v10 = vunpack.c.l.b16 %v846_v54  ;;  %v1347_v24 = vshrl.u32 %v1318_v56, 16  ;;  %v2604_v27 = vld [vmem:[#allocation6 + $0x218] sm:$0xff] }
  0x51   :  { %1145 = vmatpush.bf16.msra.mxu1 %v2225_v12  ;;  %1700 = vmatpush.bf16.msra.mxu0 %v2534_v38  ;;  %v2563_v12 = vld [vmem:[#allocation3 + $0x34] sm:$0x1]  ;;  %v536_v61 = vpack.c.b16 %v532_v29, %v531_v28  ;;  %v865_v18 = vshll.u32 %v773_v55, 16  ;;  %v1339_v19 = vor.u32 %v1338_v7, %v1335_v57  ;;  %v1342_v23 = vshll.u32 %v2593_v2, 16 }
  0x52   :  { %v857_v32 = vshll.u32 %v2563_v12, 16  ;;  %2287 = vmatpush.bf16.msra.mxu2 %v2534_v38  ;;  %v775_v38 = vld [vmem:[#allocation3 + $0x40] sm:$0xf]  ;;  %v2606_v28 = vrot.slane %v313_v0, 5  ;;  %v320_v29 = vrot.slane %v318_v58, 4  ;;  %v1349_v30 = vrot.slane %v1347_v24, 4 }
  0x53   :  { %v879_v14 = vshll.u32 %v775_v38, 16  ;;  %v1356_v34 = vshll.u32 %v2599_v13, 16  ;;  %v867_v44 = vrot.slane %v865_v18, 5  ;;  %v1344_v48 = vrot.slane %v1342_v23, 5  ;;  %v2620_v0 = vld [vmem:[#allocation6 + $0x208] sm:$0xff] }
  0x54   :  { %v859_v51 = vrot.slane %v857_v32, 5  ;;  %v2626_v58 = vld [vmem:[#allocation3 + $0x44] sm:$0x1] }
  0x55   :  { %1146 = vmatpush.bf16.msra.mxu1 %v2224_v47  ;;  %1701 = vmatpush.bf16.msra.mxu0 %v2552_v62  ;;  %v307_v47 = vshll.u32 %v212_v33, 16  ;;  %v876_v33 = vshrl.u32 %v775_v38, 16  ;;  %v1358_v54 = vrot.slane %v1356_v34, 5  ;;  %v881_v57 = vrot.slane %v879_v14, 5  ;;  %v1320_v38 = vld [vmem:[#allocation3 + $0x20] sm:$0xf] }
  0x56   :  { %v860_v26 = vsel %vm2467_vm5, %v855_v3, %v859_v51  ;;  %2288 = vmatpush.bf16.msra.mxu2 %v2552_v62  ;;  %v2615_v51 = vrot.slane %v327_v1, 5  ;;  %v2012_v3 = vrot.slane %v1008_v49, 9  ;;  %v1364_v21 = vshll.u32 %v1320_v38, 16  ;;  %v2645_v34 = vld [vmem:[#allocation3 + $0x24] sm:$0x1] }
  0x57   :  { %v309_v5 = vrot.slane %v307_v47, 5  ;;  %v2612_v35 = vunpack.c.l.b16 %v860_v26  ;;  %v1340_v47 = vrot.slane %v1339_v19, 4  ;;  %v1361_v26 = vshrl.u32 %v1320_v38, 16  ;;  %v1562_v38 = vld [vmem:[#allocation3 + $0x10] sm:$0xe] }
  0x58   :  { %v1370_v49 = vshll.u32 %v2645_v34, 16 }
  0x59   :  { %1147 = vmatpush.bf16.msra.mxu1 %v2223_v6  ;;  %1702 = vmatpush.bf16.msra.mxu0 %v2567_v22  ;;  %v321_v6 = vshll.u32 %v214_v43, 16  ;;  %v310_v36 = vor.u32 %v309_v5, %v306_v4  ;;  %v1007_v43 = vld [vmem:[#allocation3 + $0x8] sm:$0xe]  ;;  %v1038_v4 = vsel %vm2421_vm2, %v2012_v3, %v1037_v39  ;;  %v1345_v20 = vsel %vm2467_vm5, %v1340_v47, %v1344_v48  ;;  %v2227_v39 = vld [vmem:[#allocation3 + $0x14] sm:$0xf0] }
  0x5a   :  { %2289 = vmatpush.bf16.msra.mxu2 %v2567_v22  ;;  %v885_v22 = vshll.u32 %v2626_v58, 16  ;;  %v1009_v3 = vld [vmem:[#allocation3 + $0x18] sm:$0xe] }
  0x5b   :  { %v323_v32 = vrot.slane %v321_v6, 5  ;;  %v2013_v9 = vrot.slane %v1009_v3, 9 }
  0x5c   :  { %425 = vmatmul.bf16.gmra.mxu1 %v357_v40  ;;  %983 = vmatmul.bf16.gmra.mxu0 %v915_v45  ;;  %v864_v40 = vrot.slane %v862_v11, 4  ;;  %v2011_v45 = vrot.slane %v1007_v43, 9  ;;  %v1322_v11 = vld [vmem:[#allocation3 + $0x28] sm:$0xf]  ;;  %v887_v47 = vrot.slane %v885_v22, 5 }
  0x5d   :  { %1148 = vmatpush.bf16.msra.mxu1 %v2222_v31  ;;  %v1350_v31 = vshll.u32 %v1318_v56, 16  ;;  %1703 = vmatpush.bf16.msra.mxu0 %v2604_v27  ;;  %v324_v55 = vor.u32 %v323_v32, %v320_v29  ;;  %v878_v56 = vrot.slane %v876_v33, 4  ;;  %v1378_v23 = vshll.u32 %v1322_v11, 16 }
  0x5e   :  { %747 = vmatmul.bf16.gmra.mxu3 %v1946_v63  ;;  %v1034_v62 = vsel %vm2421_vm2, %v2011_v45, %v1033_v37  ;;  %v311_v63 = vrot.slane %v310_v36, 4  ;;  %v868_v6 = vor.u32 %v867_v44, %v864_v40  ;;  %v1081_v37 = vunpack.c.l.b16 %v1038_v4  ;;  %2290 = vmatpush.bf16.msra.mxu2 %v2604_v27  ;;  %v2647_v36 = vld [vmem:[#allocation3 + $0x2c] sm:$0x1] }
  0x5f   :  { %612 = vmatmul.bf16.gmra.mxu2 %v536_v61  ;;  %v1352_v41 = vrot.slane %v1350_v31, 5  ;;  %v1080_v5 = vunpack.c.l.b16 %v1034_v62  ;;  %v882_v18 = vor.u32 %v881_v57, %v878_v56  ;;  %v916_v29 = vpack.c.b16 %v2612_v35, %v2597_v10 }
  0x60   :  { %v1363_v31 = vrot.slane %v1361_v26, 4  ;;  %v1366_v32 = vrot.slane %v1364_v21, 5  ;;  %v1461_v33 = vunpack.c.l.b16 %v1345_v20  ;;  %v316_v43 = vsel %vm2467_vm5, %v311_v63, %v2606_v28  ;;  %v1324_v21 = vld [vmem:[#allocation3 + $0x30] sm:$0xf] }
  0x61   :  { %1149 = vmatpush.bf16.msra.mxu1 %v2221_v52  ;;  %v2617_v52 = vld [vmem:[#allocation3 + $0x3c] sm:$0x1]  ;;  %v1353_v61 = vor.u32 %v1352_v41, %v1349_v30  ;;  %1704 = vmatpush.bf16.msra.mxu0 %v2610_v15  ;;  %v2640_v19 = vpack.c.b16 %v1081_v37, %v1080_v5  ;;  %v325_v30 = vrot.slane %v324_v55, 4  ;;  %v1380_v41 = vrot.slane %v1378_v23, 5  ;;  %v1010_v55 = vld [vmem:[#allocation3 + $0x20] sm:$0xe] }
  0x62   :  { %v871_v7 = vshll.u32 %v2617_v52, 16  ;;  %v869_v44 = vrot.slane %v868_v6, 4  ;;  %v883_v35 = vrot.slane %v882_v18, 4  ;;  %v1367_v48 = vor.u32 %v1366_v32, %v1363_v31  ;;  %2291 = vmatpush.bf16.msra.mxu2 %v2610_v15  ;;  %v2228_v32 = vld [vmem:[#allocation3 + $0x24] sm:$0xf0] }
  0x63   :  { %v1354_v1 = vrot.slane %v1353_v61, 4  ;;  %v330_v27 = vsel %vm2467_vm5, %v325_v30, %v2615_v51  ;;  %v1384_v45 = vshll.u32 %v2647_v36, 16  ;;  %v2247_v61 = vld [vmem:[#allocation6 + $0x200] sm:$0xff]  ;;  %v354_v56 = vunpack.c.l.b16 %v316_v43 }
  0x64   :  { %v873_v10 = vrot.slane %v871_v7, 5  ;;  %v355_v51 = vunpack.c.l.b16 %v330_v27  ;;  %v888_v62 = vsel %vm2467_vm5, %v883_v35, %v887_v47  ;;  %v1368_v15 = vrot.slane %v1367_v48, 4  ;;  %v2680_v27 = vld [vmem:[#allocation3 + $0x34] sm:$0x1]  ;;  %v2682_v48 = vld [vmem:[#allocation3 + $0x3c] sm:$0x1] }
  0x65   :  { %1150 = vmatpush.bf16.msra.mxu1 %v2220_v16  ;;  %v1359_v24 = vsel %vm2467_vm5, %v1354_v1, %v1358_v54  ;;  %v1375_v16 = vshrl.u32 %v1322_v11, 16  ;;  %1705 = vmatpush.bf16.msra.mxu0 %v2620_v0  ;;  %v1372_v63 = vrot.slane %v1370_v49, 5  ;;  %v1386_v50 = vrot.slane %v1384_v45, 5 }
  0x66   :  { %v1462_v14 = vunpack.c.l.b16 %v1359_v24  ;;  %v874_v57 = vsel %vm2467_vm5, %v869_v44, %v873_v10  ;;  %2292 = vmatpush.bf16.msra.mxu2 %v2620_v0  ;;  %v1041_v1 = vrot.slane %v2505_v53, 5  ;;  %v2014_v4 = vrot.slane %v1010_v55, 9 }
  0x67   :  { %v1377_v40 = vrot.slane %v1375_v16, 4  ;;  %v1045_v5 = vrot.slane %v2509_v60, 5  ;;  %v912_v6 = vunpack.c.l.b16 %v874_v57  ;;  %v913_v7 = vunpack.c.l.b16 %v888_v62  ;;  %v1563_v60 = vld [vmem:[#allocation3 + $0x18] sm:$0xe] }
  0x68   :  { %v1469_v28 = vpack.c.b16 %v1462_v14, %v1461_v33  ;;  %v1042_v20 = vsel %vm2421_vm2, %v2013_v9, %v1041_v1  ;;  %v359_v0 = vpack.c.b16 %v355_v51, %v354_v56  ;;  %v1373_v26 = vsel %vm2467_vm5, %v1368_v15, %v1372_v63  ;;  %v1326_v16 = vld [vmem:[#allocation3 + $0x38] sm:$0xf]  ;;  %v2061_v63 = vld [vmem:[#allocation3 + $0x30] sm:$0xf] }
  0x69   :  { %1151 = vmatpush.bf16.msra.mxu1 %v2219_v42  ;;  %v2054_v42 = vor.u32 %v2227_v39, %v2053_v17  ;;  %v1381_v54 = vor.u32 %v1380_v41, %v1377_v40  ;;  %1706 = vmatpush.bf16.msra.mxu0 %v2247_v61  ;;  %v1046_v37 = vsel %vm2421_vm2, %v2014_v4, %v1045_v5  ;;  %v1082_v11 = vunpack.c.l.b16 %v1042_v20  ;;  %v2057_v17 = vld [vmem:[#allocation3 + $0x20] sm:$0xf]  ;;  %v1012_v1 = vld [vmem:[#allocation3 + $0x30] sm:$0xe] }
  0x6a   :  { %v1083_v24 = vunpack.c.l.b16 %v1046_v37  ;;  %2293 = vmatpush.bf16.msra.mxu2 %v2247_v61  ;;  %v1389_v18 = vshrl.u32 %v1324_v21, 16  ;;  %v1392_v22 = vshll.u32 %v1324_v21, 16  ;;  %v1403_v23 = vshrl.u32 %v1326_v16, 16  ;;  %v1328_v4 = vld [vmem:[#allocation3 + $0x40] sm:$0xf] }
  0x6b   :  { %v1588_v30 = vrot.slane %v2593_v2, 5  ;;  %v1592_v31 = vrot.slane %v2599_v13, 5  ;;  %v1406_v33 = vshll.u32 %v1326_v16, 16  ;;  %v1463_v14 = vunpack.c.l.b16 %v1373_v26  ;;  %v1330_v37 = vld [vmem:[#allocation3 + $0x48] sm:$0xf] }
  0x6c   :  { %430 = vmatmul.bf16.gmra.mxu1 %v358_v8  ;;  %988 = vmatmul.bf16.gmra.mxu0 %v916_v29  ;;  %v1382_v8 = vrot.slane %v1381_v54, 4  ;;  %v2676_v39 = vpack.c.b16 %v1083_v24, %v1082_v11  ;;  %v917_v29 = vpack.c.b16 %v913_v7, %v912_v6  ;;  %v2131_v41 = vrot.slane %v1562_v38, 9  ;;  %v2229_v38 = vld [vmem:[#allocation3 + $0x34] sm:$0xf0]  ;;  %v1564_v21 = vld [vmem:[#allocation3 + $0x20] sm:$0xe] }
  0x6d   :  { %v1391_v43 = vrot.slane %v1389_v18, 4  ;;  %v1394_v44 = vrot.slane %v1392_v22, 5  ;;  %v1405_v10 = vrot.slane %v1403_v23, 4  ;;  %v1408_v35 = vrot.slane %v1406_v33, 5  ;;  %v1565_v18 = vld [vmem:[#allocation3 + $0x28] sm:$0xe] }
  0x6e   :  { %1533 = vmatmul.bf16.vlgmr.msrb.gmra.mxu3 %v1469_v28  ;;  %v1387_v53 = vsel %vm2467_vm5, %v1382_v8, %v1386_v50  ;;  %v2058_v47 = vor.u32 %v2228_v32, %v2057_v17  ;;  %v1589_v2 = vsel %vm2421_vm2, %v2131_v41, %v1588_v30  ;;  %v1398_v28 = vshll.u32 %v2680_v27, 16  ;;  %v1011_v8 = vld [vmem:[#allocation3 + $0x28] sm:$0xe]  ;;  %v2700_v30 = vld [vmem:[#allocation3 + $0x44] sm:$0x1] }
  0x6f   :  { %1287 = vmatmul.bf16.vlgmr.msrb.gmra.mxu2 %v2054_v42  ;;  %v1464_v40 = vunpack.c.l.b16 %v1387_v53  ;;  %v2132_v42 = vrot.slane %v1563_v60, 9  ;;  %v1395_v45 = vor.u32 %v1394_v44, %v1391_v43  ;;  %v1409_v61 = vor.u32 %v1408_v35, %v1405_v10 }
  0x70   :  { %v1412_v54 = vshll.u32 %v2682_v48, 16  ;;  %v1635_v3 = vunpack.c.l.b16 %v1589_v2  ;;  %v1400_v51 = vrot.slane %v1398_v28, 5  ;;  %v2015_v5 = vrot.slane %v1011_v8, 9 }
  0x71   :  { %v1470_v49 = vpack.c.b16 %v1464_v40, %v1463_v14  ;;  %v1593_v13 = vsel %vm2421_vm2, %v2132_v42, %v1592_v31  ;;  %v1396_v56 = vrot.slane %v1395_v45, 4  ;;  %v1410_v57 = vrot.slane %v1409_v61, 4  ;;  %v2702_v31 = vld [vmem:[#allocation3 + $0x4c] sm:$0x1] }
  0x72   :  { %v1636_v55 = vunpack.c.l.b16 %v1593_v13  ;;  %v1414_v62 = vrot.slane %v1412_v54, 5  ;;  %v1049_v6 = vrot.slane %v2550_v46, 5  ;;  %v2016_v7 = vrot.slane %v1012_v1, 9 }
  0x73   :  { %v1401_v50 = vsel %vm2467_vm5, %v1396_v56, %v1400_v51  ;;  %v1053_v20 = vrot.slane %v2563_v12, 5  ;;  %v1417_v11 = vshrl.u32 %v1328_v4, 16  ;;  %v1420_v24 = vshll.u32 %v1328_v4, 16  ;;  %v1014_v56 = vld [vmem:[#allocation3 + $0x40] sm:$0xe] }
  0x74   :  { %v1643_v15 = vpack.c.b16 %v1636_v55, %v1635_v3  ;;  %v1415_v9 = vsel %vm2467_vm5, %v1410_v57, %v1414_v62  ;;  %v1434_v26 = vshll.u32 %v1330_v37, 16  ;;  %v1465_v53 = vunpack.c.l.b16 %v1401_v50  ;;  %v1013_v55 = vld [vmem:[#allocation3 + $0x38] sm:$0xe]  ;;  %v2230_v50 = vld [vmem:[#allocation3 + $0x44] sm:$0xf0] }
  0x75   :  { %v1466_v60 = vunpack.c.l.b16 %v1415_v9  ;;  %v1050_v16 = vsel %vm2421_vm2, %v2015_v5, %v1049_v6  ;;  %v1054_v17 = vsel %vm2421_vm2, %v2016_v7, %v1053_v20  ;;  %v1419_v23 = vrot.slane %v1417_v11, 4  ;;  %v1566_v20 = vld [vmem:[#allocation3 + $0x30] sm:$0xe]  ;;  %v1569_v11 = vld [vmem:[#allocation3 + $0x48] sm:$0xe] }
  0x76   :  { %v1084_v46 = vunpack.c.l.b16 %v1050_v16  ;;  %v1085_v22 = vunpack.c.l.b16 %v1054_v17  ;;  %v1422_v12 = vrot.slane %v1420_v24, 5  ;;  %v1436_v33 = vrot.slane %v1434_v26, 5 }
  0x77   :  { %v2133_v14 = vrot.slane %v1564_v21, 9  ;;  %v1471_v41 = vpack.c.b16 %v1466_v60, %v1465_v53  ;;  %v1596_v42 = vrot.slane %v2645_v34, 5  ;;  %v2134_v43 = vrot.slane %v1565_v18, 9 }
  0x78   :  { %v2704_v40 = vpack.c.b16 %v1085_v22, %v1084_v46  ;;  %v1600_v44 = vrot.slane %v2647_v36, 5  ;;  %v1423_v10 = vor.u32 %v1422_v12, %v1419_v23  ;;  %v1426_v35 = vshll.u32 %v2700_v30, 16 }
  0x79   :  { %v1597_v2 = vsel %vm2421_vm2, %v2133_v14, %v1596_v42  ;;  %v2017_v51 = vrot.slane %v1013_v55, 9  ;;  %v1057_v57 = vrot.slane %v2617_v52, 5  ;;  %v2018_v62 = vrot.slane %v1014_v56, 9 }
  0x7a   :  { %v1601_v13 = vsel %vm2421_vm2, %v2134_v43, %v1600_v44  ;;  %v1424_v34 = vrot.slane %v1423_v10, 4  ;;  %v1428_v45 = vrot.slane %v1426_v35, 5  ;;  %v2135_v24 = vrot.slane %v1566_v20, 9 }
  0x7b   :  { %v1638_v61 = vunpack.c.l.b16 %v1601_v13  ;;  %v1058_v8 = vsel %vm2421_vm2, %v2017_v51, %v1057_v57  ;;  %v1608_v53 = vrot.slane %v2682_v48, 5  ;;  %v1612_v60 = vrot.slane %v2700_v30, 5 }
  0x7c   :  { %435 = vmatmul.bf16.gmra.mxu1 %v359_v0  ;;  %993 = vmatmul.bf16.gmra.mxu0 %v917_v29  ;;  %v1431_v0 = vshrl.u32 %v1330_v37, 16  ;;  %v2062_v29 = vor.u32 %v2229_v38, %v2061_v63  ;;  %v1429_v54 = vsel %vm2467_vm5, %v1424_v34, %v1428_v45  ;;  %v2065_v63 = vld [vmem:[#allocation3 + $0x40] sm:$0xf]  ;;  %v1086_v5 = vunpack.c.l.b16 %v1058_v8  ;;  %v1567_v37 = vld [vmem:[#allocation3 + $0x38] sm:$0xe] }
  0x7d   :  { %v1467_v4 = vunpack.c.l.b16 %v1429_v54  ;;  %v2066_v7 = vor.u32 %v2230_v50, %v2065_v63  ;;  %v1568_v38 = vld [vmem:[#allocation3 + $0x40] sm:$0xe]  ;;  %v2136_v26 = vrot.slane %v1567_v37, 9  ;;  %v1616_v21 = vrot.slane %v2702_v31, 5 }
  0x7e   :  { %1538 = vmatmul.bf16.gmra.mxu3 %v1470_v49  ;;  %v1433_v32 = vrot.slane %v1431_v0, 4  ;;  %v1440_v49 = vshll.u32 %v2702_v31, 16  ;;  %v1604_v0 = vrot.slane %v2680_v27, 5  ;;  %v2137_v16 = vrot.slane %v1568_v38, 9 }
  0x7f   :  { %1292 = vmatmul.bf16.gmra.mxu2 %v2058_v47  ;;  %v2138_v17 = vrot.slane %v1569_v11, 9 }
  0x80   :  { %v1437_v47 = vor.u32 %v1436_v33, %v1433_v32  ;;  %v1442_v28 = vrot.slane %v1440_v49, 5  ;;  %v1605_v18 = vsel %vm2421_vm2, %v2135_v24, %v1604_v0  ;;  %v1613_v46 = vsel %vm2421_vm2, %v2137_v16, %v1612_v60 }
  0x81   :  { %v1617_v27 = vsel %vm2421_vm2, %v2138_v17, %v1616_v21  ;;  %v1639_v48 = vunpack.c.l.b16 %v1605_v18  ;;  %v1641_v23 = vunpack.c.l.b16 %v1613_v46 }
  0x82   :  { %v1438_v36 = vrot.slane %v1437_v47, 4  ;;  %v1642_v12 = vunpack.c.l.b16 %v1617_v27 }
  0x84   :  { %v1443_v3 = vsel %vm2467_vm5, %v1438_v36, %v1442_v28  ;;  %v1646_v32 = vpack.c.b16 %v1642_v12, %v1641_v23 }
  0x85   :  { %v1468_v59 = vunpack.c.l.b16 %v1443_v3 }
  0x8c   :  { %1152 = vmatmul.bf16.vlgmr.msra.gmra.mxu1 %v2640_v19  ;;  %1707 = vmatmul.bf16.vlgmr.msra.gmra.mxu0 %v1643_v15  ;;  %v1637_v19 = vunpack.c.l.b16 %v1597_v2  ;;  %v1061_v15 = vrot.slane %v2626_v58, 5  ;;  %v1472_v58 = vpack.c.b16 %v1468_v59, %v1467_v4 }
  0x8e   :  { %1543 = vmatmul.bf16.gmra.mxu3 %v1471_v41  ;;  %v1644_v9 = vpack.c.b16 %v1638_v61, %v1637_v19  ;;  %v1062_v1 = vsel %vm2421_vm2, %v2018_v62, %v1061_v15 }
  0x8f   :  { %1297 = vmatmul.bf16.gmra.mxu2 %v2062_v29  ;;  %v1087_v6 = vunpack.c.l.b16 %v1062_v1 }
  0x91   :  { %v1091_v52 = vpack.c.b16 %v1087_v6, %v1086_v5 }
  0x9c   :  { %1157 = vmatmul.bf16.gmra.mxu1 %v2676_v39  ;;  %1712 = vmatmul.bf16.gmra.mxu0 %v1644_v9  ;;  %v1609_v39 = vsel %vm2421_vm2, %v2136_v26, %v1608_v53 }
  0x9d   :  { %v1640_v22 = vunpack.c.l.b16 %v1609_v39 }
  0x9e   :  { %1548 = vmatmul.bf16.gmra.mxu3 %v1472_v58 }
  0x9f   :  { %1302 = vmatmul.bf16.gmra.mxu2 %v2066_v7  ;;  %v1645_v29 = vpack.c.b16 %v1640_v22, %v1639_v48 }
  0xa9   :  { %v182_v30 = vpop.f32.mrf.mxu1  ;;  %v172_v31 = vpop.f32.mrf.mxu0 }
  0xac   :  { %1162 = vmatmul.bf16.gmra.mxu1 %v2704_v40  ;;  %1717 = vmatmul.bf16.gmra.mxu0 %v1645_v29 }
  0xaf   :  { %1722 = vmatmul.bf16.vlgmr.msra.gmra.mxu2 %v1646_v32 }
  0xb1   :  { %v184_v14 = vpop.f32.mrf.mxu1  ;;  %v174_v41 = vpop.f32.mrf.mxu0 }
  0xb2   :  { %v598_v33 = vpop.f32.mrf.mxu2  ;;  %v733_v42 = vpop.f32.mrf.mxu3 }
  0xb9   :  { %v187_v44 = vpop.f32.mrf.mxu1  ;;  %v177_v25 = vpop.f32.mrf.mxu0 }
  0xba   :  { %v600_v43 = vpop.f32.mrf.mxu2  ;;  %v2739_v10 = vpop.f32.mrf.mxu3 }
  0xbc   :  { %1167 = vmatmul.bf16.gmra.mxu1 %v1091_v52 }
  0xc1   :  { %v189_v47 = vpop.f32.mrf.mxu1  ;;  %v179_v49 = vpop.f32.mrf.mxu0 }
  0xc2   :  { %v603_v35 = vpop.f32.mrf.mxu2  ;;  %v738_v2 = vpop.f32.mrf.mxu3 }
  0xc9   :  { %v421_v34 = vpop.f32.mrf.mxu1  ;;  %v979_v45 = vpop.f32.mrf.mxu0 }
  0xca   :  { %v605_v13 = vpop.f32.mrf.mxu2  ;;  %v441_v40 = vadd.f32 %v421_v34, %v172_v31  ;;  %v2741_v28 = vpop.f32.mrf.mxu3 }
  0xcc   :  { %v618_v36 = vadd.f32 %v598_v33, %v441_v40 }
  0xce   :  { %v753_v19 = vadd.f32 %v733_v42, %v618_v36 }
  0xd0   :  { %v999_v61 = vadd.f32 %v979_v45, %v753_v19 }
  0xd1   :  { %v423_v3 = vpop.f32.mrf.mxu1  ;;  %v981_v55 = vpop.f32.mrf.mxu0 }
  0xd2   :  { %v608_v54 = vpop.f32.mrf.mxu2  ;;  %v442_v56 = vadd.f32 %v423_v3, %v174_v41  ;;  %v743_v57 = vpop.f32.mrf.mxu3 }
  0xd4   :  { %v619_v51 = vadd.f32 %v600_v43, %v442_v56 }
  0xd9   :  { %v426_v15 = vpop.f32.mrf.mxu1  ;;  %v984_v63 = vpop.f32.mrf.mxu0 }
  0xda   :  { %v610_v62 = vpop.f32.mrf.mxu2  ;;  %v443_v50 = vadd.f32 %v426_v15, %v177_v25  ;;  %v2743_v59 = vpop.f32.mrf.mxu3 }
  0xdc   :  { %v620_v9 = vadd.f32 %v603_v35, %v443_v50 }
  0xde   :  { %v755_v8 = vadd.f32 %v738_v2, %v620_v9 }
  0xe0   :  { %v1001_v1 = vadd.f32 %v984_v63, %v755_v8 }
  0xe1   :  { %v428_v5 = vpop.f32.mrf.mxu1  ;;  %v986_v6 = vpop.f32.mrf.mxu0 }
  0xe2   :  { %v613_v4 = vpop.f32.mrf.mxu2  ;;  %v444_v7 = vadd.f32 %v428_v5, %v179_v49  ;;  %v748_v58 = vpop.f32.mrf.mxu3  ;;  %v754_v49 = vadd.f32 %v2739_v10, %v619_v51 }
  0xe4   :  { %v621_v20 = vadd.f32 %v605_v13, %v444_v7  ;;  %v1000_v2 = vadd.f32 %v981_v55, %v754_v49 }
  0xe6   :  { %v756_v15 = vadd.f32 %v2741_v28, %v621_v20 }
  0xe8   :  { %v1002_v7 = vadd.f32 %v986_v6, %v756_v15 }
  0xe9   :  { %v431_v52 = vpop.f32.mrf.mxu1  ;;  %v989_v38 = vpop.f32.mrf.mxu0 }
  0xea   :  { %v615_v37 = vpop.f32.mrf.mxu2  ;;  %v445_v11 = vadd.f32 %v431_v52, %v182_v30  ;;  %v2751_v18 = vpop.f32.mrf.mxu3 }
  0xec   :  { %v622_v24 = vadd.f32 %v608_v54, %v445_v11 }
  0xee   :  { %v757_v0 = vadd.f32 %v743_v57, %v622_v24 }
  0xf0   :  { %v2745_v26 = vadd.f32 %v989_v38, %v757_v0 }
  0xf1   :  { %v433_v60 = vpop.f32.mrf.mxu1  ;;  %v2747_v21 = vpop.f32.mrf.mxu0 }
  0xf2   :  { %v1288_v53 = vpop.f32.mrf.mxu2  ;;  %v446_v16 = vadd.f32 %v433_v60, %v184_v14  ;;  %v1534_v12 = vpop.f32.mrf.mxu3 }
  0xf4   :  { %v2749_v17 = vadd.f32 %v610_v62, %v446_v16 }
  0xf6   :  { %v758_v6 = vadd.f32 %v2743_v59, %v2749_v17 }
  0xf9   :  { %v436_v46 = vpop.f32.mrf.mxu1  ;;  %v994_v27 = vpop.f32.mrf.mxu0 }
  0xfa   :  { %v1290_v39 = vpop.f32.mrf.mxu2  ;;  %v447_v48 = vadd.f32 %v436_v46, %v187_v44  ;;  %v1536_v14 = vpop.f32.mrf.mxu3 }
  0xfc   :  { %v624_v22 = vadd.f32 %v613_v4, %v447_v48 }
  0xfe   :  { %v759_v23 = vadd.f32 %v748_v58, %v624_v22 }
 0x100   :  { %v2753_v29 = vadd.f32 %v994_v27, %v759_v23 }
 0x101   :  { %v438_v31 = vpop.f32.mrf.mxu1  ;;  %v2755_v32 = vpop.f32.mrf.mxu0 }
 0x102   :  { %v1293_v30 = vpop.f32.mrf.mxu2  ;;  %v448_v33 = vadd.f32 %v438_v31, %v189_v47  ;;  %v1539_v36 = vpop.f32.mrf.mxu3  ;;  %v2763_v47 = vld [vmem:[%s2790_s2] ss:$0 sm:$0xff]  ;;  %s2382_s2 = smov [#allocation8]  }
 0x103   :  { %s1795_s24 = sshll.u32 %s2382_s2, 4  ;;  %s1796_s24 = int_to_ptr.vmem [resolvable:$true] %s1795_s24 }
 0x104   :  { %v2757_v41 = vadd.f32 %v615_v37, %v448_v33 }
 0x109   :  { %v1153_v42 = vpop.f32.mrf.mxu1  ;;  %v1708_v43 = vpop.f32.mrf.mxu0 }
 0x10a   :  { %v1173_v25 = vadd.f32 %v1153_v42, %v999_v61  ;;  %v1295_v35 = vpop.f32.mrf.mxu2  ;;  %v1541_v8 = vpop.f32.mrf.mxu3 }
 0x10c   :  { %v1308_v44 = vadd.f32 %v1288_v53, %v1173_v25 }
 0x10e   :  { %v1554_v13 = vadd.f32 %v1534_v12, %v1308_v44  ;;  %v1004_v12 = vadd.f32 %v2747_v21, %v758_v6  ;;  %v760_v21 = vadd.f32 %v2751_v18, %v2757_v41 }
 0x110   :  { %v1728_v19 = vadd.f32 %v1708_v43, %v1554_v13 }
 0x111   :  { %v1155_v34 = vpop.f32.mrf.mxu1  ;;  %v1710_v45 = vpop.f32.mrf.mxu0 }
 0x112   :  { %v1174_v40 = vadd.f32 %v1155_v34, %v1000_v2  ;;  %v1298_v3 = vpop.f32.mrf.mxu2  ;;  %v1759_v61 = vadd.f32 %v2763_v47, %v1728_v19  ;;  %v1544_v53 = vpop.f32.mrf.mxu3 }
 0x114   :  { %v1309_v54 = vadd.f32 %v1290_v39, %v1174_v40  ;;  %v1767_v63 = vmax.f32 %v1759_v61, 0.0 }
 0x116   :  { %v1555_v56 = vadd.f32 %v1536_v14, %v1309_v54  ;;  %v1006_v54 = vadd.f32 %v2755_v32, %v760_v21 }
 0x118   :  { %v1729_v57 = vadd.f32 %v1710_v45, %v1555_v56 }
 0x119   :  { %v1158_v10 = vpop.f32.mrf.mxu1  ;;  %v1713_v51 = vpop.f32.mrf.mxu0 }
 0x11a   :  { %v1760_v55 = vadd.f32 %v2763_v47, %v1729_v57  ;;  %v1175_v62 = vadd.f32 %v1158_v10, %v1001_v1  ;;  %v1300_v5 = vpop.f32.mrf.mxu2  ;;  %v1546_v31 = vpop.f32.mrf.mxu3 }
 0x11c   :  { %v1768_v50 = vmax.f32 %v1760_v55, 0.0  ;;  %v1310_v9 = vadd.f32 %v1293_v30, %v1175_v62 }
 0x11e   :  { %v2258_v4 = vpack.c.bf16 %v1768_v50, %v1767_v63  ;;  %v1556_v37 = vadd.f32 %v1539_v36, %v1310_v9 }
 0x120   :  { %2259 = vst [vmem:[#allocation8] sm:$0xff] %v2258_v4   ;;  %v1730_v58 = vadd.f32 %v1713_v51, %v1556_v37 }
 0x121   :  { %v1160_v52 = vpop.f32.mrf.mxu1  ;;  %v1715_v38 = vpop.f32.mrf.mxu0 }
 0x122   :  { %v1176_v11 = vadd.f32 %v1160_v52, %v1002_v7  ;;  %v1761_v1 = vadd.f32 %v2763_v47, %v1730_v58  ;;  %v1303_v28 = vpop.f32.mrf.mxu2  ;;  %v1549_v13 = vpop.f32.mrf.mxu3 }
 0x124   :  { %v1311_v24 = vadd.f32 %v1295_v35, %v1176_v11  ;;  %v1769_v27 = vmax.f32 %v1761_v1, 0.0 }
 0x126   :  { %v1557_v0 = vadd.f32 %v1541_v8, %v1311_v24 }
 0x128   :  { %v1731_v60 = vadd.f32 %v1715_v38, %v1557_v0 }
 0x129   :  { %v1163_v20 = vpop.f32.mrf.mxu1  ;;  %v1718_v46 = vpop.f32.mrf.mxu0 }
 0x12a   :  { %v1762_v16 = vadd.f32 %v2763_v47, %v1731_v60  ;;  %v1177_v39 = vadd.f32 %v1163_v20, %v2745_v26  ;;  %v1305_v42 = vpop.f32.mrf.mxu2  ;;  %v1551_v51 = vpop.f32.mrf.mxu3 }
 0x12c   :  { %v1770_v48 = vmax.f32 %v1762_v16, 0.0  ;;  %v1312_v22 = vadd.f32 %v1298_v3, %v1177_v39 }
 0x12e   :  { %v2263_v23 = vpack.c.bf16 %v1770_v48, %v1769_v27  ;;  %v1558_v30 = vadd.f32 %v1544_v53, %v1312_v22 }
 0x130   :  { %2275 = vst [vmem:[#allocation8 + $0x8] sm:$0xff] %v2263_v23   ;;  %v1732_v43 = vadd.f32 %v1718_v46, %v1558_v30 }
 0x131   :  { %v1165_v33 = vpop.f32.mrf.mxu1  ;;  %v1720_v35 = vpop.f32.mrf.mxu0 }
 0x132   :  { %v1178_v14 = vadd.f32 %v1165_v33, %v1004_v12  ;;  %v1763_v49 = vadd.f32 %v2763_v47, %v1732_v43  ;;  %v1723_v36 = vpop.f32.mrf.mxu2 }
 0x134   :  { %v1313_v25 = vadd.f32 %v1300_v5, %v1178_v14  ;;  %v1771_v34 = vmax.f32 %v1763_v49, 0.0 }
 0x136   :  { %v1559_v26 = vadd.f32 %v1546_v31, %v1313_v25 }
 0x138   :  { %v1733_v44 = vadd.f32 %v1720_v35, %v1559_v26 }
 0x139   :  { %v1168_v59 = vpop.f32.mrf.mxu1 }
 0x13a   :  { %v1764_v17 = vadd.f32 %v2763_v47, %v1733_v44  ;;  %v1179_v2 = vadd.f32 %v1168_v59, %v2753_v29  ;;  %v1725_v29 = vpop.f32.mrf.mxu2 }
 0x13c   :  { %v1772_v45 = vmax.f32 %v1764_v17, 0.0  ;;  %v1314_v40 = vadd.f32 %v1303_v28, %v1179_v2 }
 0x13e   :  { %v2268_v19 = vpack.c.bf16 %v1772_v45, %v1771_v34  ;;  %v1560_v3 = vadd.f32 %v1549_v13, %v1314_v40 }
 0x140   :  { %2276 = vst [vmem:[#allocation8 + $0x10] sm:$0xff] %v2268_v19   ;;  %v1734_v57 = vadd.f32 %v1723_v36, %v1560_v3 }
 0x141   :  { %v1170_v56 = vpop.f32.mrf.mxu1 }
 0x142   :  { %v1180_v61 = vadd.f32 %v1170_v56, %v1006_v54  ;;  %v1765_v62 = vadd.f32 %v2763_v47, %v1734_v57 }
 0x144   :  { %v1315_v10 = vadd.f32 %v1305_v42, %v1180_v61  ;;  %v1773_v32 = vmax.f32 %v1765_v62, 0.0 }
 0x146   :  { %v1561_v55 = vadd.f32 %v1551_v51, %v1315_v10 }
 0x148   :  { %v1735_v15 = vadd.f32 %v1725_v29, %v1561_v55 }
 0x14a   :  { %v1766_v18 = vadd.f32 %v2763_v47, %v1735_v15 }
 0x14c   :  { %v1774_v41 = vmax.f32 %v1766_v18, 0.0 }
 0x14e   :  { %v2273_v63 = vpack.c.bf16 %v1774_v41, %v1773_v32 }
 0x150   :  { %2277 = vst [vmem:[#allocation8 + $0x18] sm:$0xff] %v2273_v63  }
 0x151   :  { %1803 = dma.vmem_to_hbm [thread:$0]  %s1796_s24, 512, %s1798_s27, [#allocation5], %s2379_s20, %s2379_s20, %s2380_s21  }
 0x152   :  { %2376 = dma.done.wait [#allocation5], 512  }
 0x153   :  { %2377 = vsyncadd [#allocation5], 4294966784 }
 0x154   :  { %1808 = vsyncpa [#allocation4], 1 }
 0x155   :  { %1809 = vsyncpa [#allocation7], 1 }
 0x156   :  { %1810 = vsyncpa [#allocation5], 1 }

// kernel: resnet101_forward.12
= control target key start
LH: loop header
LB: loop body
LE: loop exit
PB: predicated region body
PF: predicated region fallthrough
CT: control target
= control target key end

     0   :  { %s1613_s12 = smov 0   ;;  %s1615_s13 = smov 0   ;;  %s1822_s0 = inlined_call_operand.vmem [shape: bf16[512,256], index: 0, kind: input, shape index: {}]   ;;  %s1823_s1 = inlined_call_operand.vmem [shape: bf16[256,128], index: 1, kind: input, shape index: {}]   ;;  %s1824_s2 = inlined_call_operand.vmem [shape: f32[1,128], index: 2, kind: input, shape index: {}]   ;;  %s1825_s3 = inlined_call_operand.vmem [shape: bf16[512,128], index: 3, kind: output, shape index: {}]  }
   0x1   :  { %s1617_s14 = smov 0  }
   0x2 LB: > { %s32_s15 = sadd.s32 1, %s1587_s13  ;;  %p1184_p0 = scmp.ge.s32.totalorder %s1591_s14, 1  ;;  %s1591_s14 = sphi %s1617_s14, %s13_s14   ;;  %s1587_s13 = sphi %s1615_s13, %s1827_s13   ;;  %s1583_s12 = sphi %s1613_s12, %s1826_s12  }
   0x3   : > { %p34_p1 = scmp.ge.s32.totalorder %s32_s15, 2  ;;  %p191_p2 = scmp.lt.s32.totalorder %s1591_s14, 3 }
   0x5   : > { %s1829_s15 = smov (%p34_p1, %s32_s15), 0  ;;  %p192_p3 = pnand %p1184_p0, %p191_p2 }
   0x6   : > { %s1185_s28 = sshll.u32 (!%p192_p3), %s1583_s12, 5 }
   0x7   : > { %195 = sbr.rel (%p192_p3) target bundleno = 306 (0x132), region = 32  ;;  %p236_p4 = scmp.lt.s32.totalorder (!%p192_p3), %s1185_s28, 63 }
   0xc   : > { %v1424_v0 = vld [vmem:[%s1823_s1 + $0x38] sm:$0xff]  ;;  %v1423_v2 = vld [vmem:[%s1823_s1 + $0x30] sm:$0xff]  ;;  %v1422_v4 = vld [vmem:[%s1823_s1 + $0x28] sm:$0xff]  ;;  %s1831_s28 = smov (!%p236_p4, %s1185_s28), 63 }
   0xd   : > { %v1432_v1 = vld [vmem:[%s1823_s1 + $0x78] sm:$0xff]  ;;  %655 = vmatpush.bf16.msra.mxu0 %v1424_v0  ;;  %1528 = vmatpush.bf16.msra.mxu2 %v1424_v0  ;;  %v1431_v3 = vld [vmem:[%s1823_s1 + $0x70] sm:$0xff]  ;;  %v1430_v5 = vld [vmem:[%s1823_s1 + $0x68] sm:$0xff]  ;;  %s1384_s17 = sshll.u32 %s1831_s28, 3  ;;  %s1189_s5 = sshll.u32 %s1831_s28, 2 }
   0xe   : > { %744 = vmatpush.bf16.msra.mxu1 %v1432_v1  ;;  %1536 = vmatpush.bf16.msra.mxu3 %v1432_v1  ;;  %v1421_v6 = vld [vmem:[%s1823_s1 + $0x20] sm:$0xff]  ;;  %v1420_v8 = vld [vmem:[%s1823_s1 + $0x18] sm:$0xff]  ;;  %v1419_v10 = vld [vmem:[%s1823_s1 + $0x10] sm:$0xff]  ;;  %s1679_s22 = scalar_lea.vmem %s1822_s0, %s1384_s17  ;;  %s1765_s8 = scalar_lea.vmem %s1825_s3, %s1189_s5 }
   0xf   : > { %v1429_v7 = vld [vmem:[%s1823_s1 + $0x60] sm:$0xff]  ;;  %v1428_v9 = vld [vmem:[%s1823_s1 + $0x58] sm:$0xff]  ;;  %v1427_v11 = vld [vmem:[%s1823_s1 + $0x50] sm:$0xff] }
  0x10   : > { %v1418_v12 = vld [vmem:[%s1823_s1 + $0x8] sm:$0xff]  ;;  %v1417_v14 = vld [vmem:[%s1823_s1] sm:$0xff]  ;;  %v1200_v28 = vld [vmem:[%s1679_s22 + $0x10] sm:$0xf] }
  0x11   : > { %656 = vmatpush.bf16.msra.mxu0 %v1423_v2  ;;  %1529 = vmatpush.bf16.msra.mxu2 %v1423_v2  ;;  %v1426_v13 = vld [vmem:[%s1823_s1 + $0x48] sm:$0xff]  ;;  %v1425_v15 = vld [vmem:[%s1823_s1 + $0x40] sm:$0xff]  ;;  %v1388_v29 = vld [vmem:[%s1679_s22 + $0x14] sm:$0xf0] }
  0x12   : > { %745 = vmatpush.bf16.msra.mxu1 %v1431_v3  ;;  %1537 = vmatpush.bf16.msra.mxu3 %v1431_v3  ;;  %v1192_v16 = vld [vmem:[%s1679_s22] sm:$0xf]  ;;  %v1386_v17 = vld [vmem:[%s1679_s22 + $0x4] sm:$0xf0]  ;;  %v1385_v20 = vld [vmem:[%s1679_s22 + $0x4] sm:$0xf]  ;;  %v1201_v36 = vor.u32 %v1388_v29, %v1200_v28 }
  0x13   : > { %v1256_v18 = vld [vmem:[%s1679_s22 + $0x80] sm:$0xf]  ;;  %v1402_v19 = vld [vmem:[%s1679_s22 + $0x84] sm:$0xf0]  ;;  %v1194_v21 = vld [vmem:[%s1679_s22 + $0x8] sm:$0xf0]  ;;  %v1193_v24 = vor.u32 %v1386_v17, %v1192_v16 }
  0x14   : > { %v1401_v22 = vld [vmem:[%s1679_s22 + $0x84] sm:$0xf]  ;;  %v1258_v23 = vld [vmem:[%s1679_s22 + $0x88] sm:$0xf0]  ;;  %v1257_v25 = vor.u32 %v1402_v19, %v1256_v18  ;;  %v1197_v26 = vor.u32 %v1385_v20, %v1194_v21  ;;  %v1264_v30 = vld [vmem:[%s1679_s22 + $0x90] sm:$0xf] }
  0x15   : > { %657 = vmatpush.bf16.msra.mxu0 %v1422_v4  ;;  %1530 = vmatpush.bf16.msra.mxu2 %v1422_v4  ;;  %v1261_v27 = vor.u32 %v1401_v22, %v1258_v23  ;;  %v1404_v31 = vld [vmem:[%s1679_s22 + $0x94] sm:$0xf0]  ;;  %v1387_v32 = vld [vmem:[%s1679_s22 + $0x14] sm:$0xf]  ;;  %v1202_v33 = vld [vmem:[%s1679_s22 + $0x18] sm:$0xf0] }
  0x16   : > { %746 = vmatpush.bf16.msra.mxu1 %v1430_v5  ;;  %1538 = vmatpush.bf16.msra.mxu3 %v1430_v5  ;;  %v1403_v34 = vld [vmem:[%s1679_s22 + $0x94] sm:$0xf]  ;;  %v1266_v35 = vld [vmem:[%s1679_s22 + $0x98] sm:$0xf0]  ;;  %v1265_v37 = vor.u32 %v1404_v31, %v1264_v30  ;;  %v1205_v38 = vor.u32 %v1387_v32, %v1202_v33  ;;  %v1208_v40 = vld [vmem:[%s1679_s22 + $0x20] sm:$0xf] }
  0x17   : > { %v1269_v39 = vor.u32 %v1403_v34, %v1266_v35  ;;  %v1390_v41 = vld [vmem:[%s1679_s22 + $0x24] sm:$0xf0]  ;;  %v1272_v42 = vld [vmem:[%s1679_s22 + $0xa0] sm:$0xf]  ;;  %v1389_v44 = vld [vmem:[%s1679_s22 + $0x24] sm:$0xf] }
  0x18   : > { %v1406_v43 = vld [vmem:[%s1679_s22 + $0xa4] sm:$0xf0]  ;;  %v1210_v45 = vld [vmem:[%s1679_s22 + $0x28] sm:$0xf0]  ;;  %v1405_v46 = vld [vmem:[%s1679_s22 + $0xa4] sm:$0xf]  ;;  %v1209_v48 = vor.u32 %v1390_v41, %v1208_v40 }
  0x19   : > { %658 = vmatpush.bf16.msra.mxu0 %v1421_v6  ;;  %1531 = vmatpush.bf16.msra.mxu2 %v1421_v6  ;;  %v1274_v47 = vld [vmem:[%s1679_s22 + $0xa8] sm:$0xf0]  ;;  %v1273_v49 = vor.u32 %v1406_v43, %v1272_v42  ;;  %v1213_v50 = vor.u32 %v1389_v44, %v1210_v45  ;;  %v1216_v52 = vld [vmem:[%s1679_s22 + $0x30] sm:$0xf]  ;;  %v1392_v53 = vld [vmem:[%s1679_s22 + $0x34] sm:$0xf0] }
  0x1a   : > { %747 = vmatpush.bf16.msra.mxu1 %v1429_v7  ;;  %1539 = vmatpush.bf16.msra.mxu3 %v1429_v7  ;;  %v1277_v51 = vor.u32 %v1405_v46, %v1274_v47  ;;  %v1280_v54 = vld [vmem:[%s1679_s22 + $0xb0] sm:$0xf]  ;;  %v1408_v55 = vld [vmem:[%s1679_s22 + $0xb4] sm:$0xf0]  ;;  %v1391_v56 = vld [vmem:[%s1679_s22 + $0x34] sm:$0xf]  ;;  %v1217_v60 = vor.u32 %v1392_v53, %v1216_v52 }
  0x1b   : > { %v1218_v57 = vld [vmem:[%s1679_s22 + $0x38] sm:$0xf0]  ;;  %v1407_v58 = vld [vmem:[%s1679_s22 + $0xb4] sm:$0xf]  ;;  %v1281_v61 = vor.u32 %v1408_v55, %v1280_v54  ;;  %v1224_v0 = vld [vmem:[%s1679_s22 + $0x40] sm:$0xf] }
  0x1c   : > { %v1282_v59 = vld [vmem:[%s1679_s22 + $0xb8] sm:$0xf0]  ;;  %v1221_v62 = vor.u32 %v1391_v56, %v1218_v57  ;;  %v1394_v1 = vld [vmem:[%s1679_s22 + $0x44] sm:$0xf0]  ;;  %v1288_v2 = vld [vmem:[%s1679_s22 + $0xc0] sm:$0xf] }
  0x1d   : > { %659 = vmatpush.bf16.msra.mxu0 %v1420_v8  ;;  %1532 = vmatpush.bf16.msra.mxu2 %v1420_v8  ;;  %v1285_v63 = vor.u32 %v1407_v58, %v1282_v59  ;;  %v1410_v3 = vld [vmem:[%s1679_s22 + $0xc4] sm:$0xf0]  ;;  %v1393_v4 = vld [vmem:[%s1679_s22 + $0x44] sm:$0xf]  ;;  %v1226_v5 = vld [vmem:[%s1679_s22 + $0x48] sm:$0xf0]  ;;  %v1225_v8 = vor.u32 %v1394_v1, %v1224_v0 }
  0x1e   : > { %748 = vmatpush.bf16.msra.mxu1 %v1428_v9  ;;  %1540 = vmatpush.bf16.msra.mxu3 %v1428_v9  ;;  %v1409_v6 = vld [vmem:[%s1679_s22 + $0xc4] sm:$0xf]  ;;  %v1290_v7 = vld [vmem:[%s1679_s22 + $0xc8] sm:$0xf0]  ;;  %v1289_v9 = vor.u32 %v1410_v3, %v1288_v2  ;;  %v1395_v16 = vld [vmem:[%s1679_s22 + $0x54] sm:$0xf] }
  0x1f   : > { %v1234_v17 = vld [vmem:[%s1679_s22 + $0x58] sm:$0xf0]  ;;  %v1411_v18 = vld [vmem:[%s1679_s22 + $0xd4] sm:$0xf]  ;;  %v1397_v28 = vld [vmem:[%s1679_s22 + $0x64] sm:$0xf] }
  0x20   : > { %v1298_v19 = vld [vmem:[%s1679_s22 + $0xd8] sm:$0xf0]  ;;  %v1237_v22 = vor.u32 %v1395_v16, %v1234_v17  ;;  %v1242_v29 = vld [vmem:[%s1679_s22 + $0x68] sm:$0xf0]  ;;  %v1413_v30 = vld [vmem:[%s1679_s22 + $0xe4] sm:$0xf] }
  0x21   : > { %660 = vmatpush.bf16.msra.mxu0 %v1419_v10  ;;  %1533 = vmatpush.bf16.msra.mxu2 %v1419_v10  ;;  %v1229_v10 = vor.u32 %v1393_v4, %v1226_v5  ;;  %v1301_v23 = vor.u32 %v1411_v18, %v1298_v19  ;;  %v1306_v31 = vld [vmem:[%s1679_s22 + $0xe8] sm:$0xf0]  ;;  %v1245_v34 = vor.u32 %v1397_v28, %v1242_v29  ;;  %v1399_v40 = vld [vmem:[%s1679_s22 + $0x74] sm:$0xf]  ;;  %v1250_v41 = vld [vmem:[%s1679_s22 + $0x78] sm:$0xf0] }
  0x22   : > { %749 = vmatpush.bf16.msra.mxu1 %v1427_v11  ;;  %1541 = vmatpush.bf16.msra.mxu3 %v1427_v11  ;;  %v1293_v11 = vor.u32 %v1409_v6, %v1290_v7  ;;  %v1309_v35 = vor.u32 %v1413_v30, %v1306_v31  ;;  %v1415_v42 = vld [vmem:[%s1679_s22 + $0xf4] sm:$0xf]  ;;  %v1314_v43 = vld [vmem:[%s1679_s22 + $0xf8] sm:$0xf0]  ;;  %v1253_v46 = vor.u32 %v1399_v40, %v1250_v41 }
  0x23   : > { %v1317_v47 = vor.u32 %v1415_v42, %v1314_v43 }
  0x25   : > { %661 = vmatpush.bf16.msra.mxu0 %v1418_v12  ;;  %1534 = vmatpush.bf16.msra.mxu2 %v1418_v12  ;;  %v1232_v12 = vld [vmem:[%s1679_s22 + $0x50] sm:$0xf] }
  0x26   : > { %750 = vmatpush.bf16.msra.mxu1 %v1426_v13  ;;  %1542 = vmatpush.bf16.msra.mxu3 %v1426_v13  ;;  %v1396_v13 = vld [vmem:[%s1679_s22 + $0x54] sm:$0xf0] }
  0x27   : > { %v1233_v20 = vor.u32 %v1396_v13, %v1232_v12 }
  0x29   : > { %662 = vmatpush.bf16.msra.mxu0 %v1417_v14  ;;  %1535 = vmatpush.bf16.msra.mxu2 %v1417_v14  ;;  %v1296_v14 = vld [vmem:[%s1679_s22 + $0xd0] sm:$0xf] }
  0x2a   : > { %751 = vmatpush.bf16.msra.mxu1 %v1425_v15  ;;  %1543 = vmatpush.bf16.msra.mxu3 %v1425_v15  ;;  %v1412_v15 = vld [vmem:[%s1679_s22 + $0xd4] sm:$0xf0] }
  0x2b   : > { %v1297_v21 = vor.u32 %v1412_v15, %v1296_v14 }
  0x2c   : > { %663 = vmatmul.bf16.vlgmr.msra.gmra.mxu0 %v1193_v24  ;;  %703 = vmatmul.bf16.vlgmr.msra.gmra.mxu2 %v1257_v25  ;;  %v1240_v24 = vld [vmem:[%s1679_s22 + $0x60] sm:$0xf]  ;;  %v1398_v25 = vld [vmem:[%s1679_s22 + $0x64] sm:$0xf0] }
  0x2d   : > { %752 = vmatmul.bf16.vlgmr.msra.gmra.mxu1 %v1197_v26  ;;  %792 = vmatmul.bf16.vlgmr.msra.gmra.mxu3 %v1261_v27  ;;  %v1304_v26 = vld [vmem:[%s1679_s22 + $0xe0] sm:$0xf]  ;;  %v1414_v27 = vld [vmem:[%s1679_s22 + $0xe4] sm:$0xf0]  ;;  %v1241_v32 = vor.u32 %v1398_v25, %v1240_v24 }
  0x2e   : > { %v1305_v33 = vor.u32 %v1414_v27, %v1304_v26 }
  0x3c   : > { %668 = vmatmul.bf16.gmra.mxu0 %v1201_v36  ;;  %708 = vmatmul.bf16.gmra.mxu2 %v1265_v37  ;;  %v1248_v36 = vld [vmem:[%s1679_s22 + $0x70] sm:$0xf]  ;;  %v1400_v37 = vld [vmem:[%s1679_s22 + $0x74] sm:$0xf0] }
  0x3d   : > { %757 = vmatmul.bf16.gmra.mxu1 %v1205_v38  ;;  %797 = vmatmul.bf16.gmra.mxu3 %v1269_v39  ;;  %v1312_v38 = vld [vmem:[%s1679_s22 + $0xf0] sm:$0xf]  ;;  %v1416_v39 = vld [vmem:[%s1679_s22 + $0xf4] sm:$0xf0]  ;;  %v1249_v44 = vor.u32 %v1400_v37, %v1248_v36 }
  0x3e   : > { %v1313_v45 = vor.u32 %v1416_v39, %v1312_v38 }
  0x4c   : > { %673 = vmatmul.bf16.gmra.mxu0 %v1209_v48  ;;  %713 = vmatmul.bf16.gmra.mxu2 %v1273_v49 }
  0x4d   : > { %762 = vmatmul.bf16.gmra.mxu1 %v1213_v50  ;;  %802 = vmatmul.bf16.gmra.mxu3 %v1277_v51  ;;  %v1757_v51 = vld [vmem:[%s1824_s2] ss:$0 sm:$0xff] }
  0x5c   : > { %678 = vmatmul.bf16.gmra.mxu0 %v1217_v60  ;;  %718 = vmatmul.bf16.gmra.mxu2 %v1281_v61 }
  0x5d   : > { %767 = vmatmul.bf16.gmra.mxu1 %v1221_v62  ;;  %807 = vmatmul.bf16.gmra.mxu3 %v1285_v63 }
  0x6c   : > { %683 = vmatmul.bf16.gmra.mxu0 %v1225_v8  ;;  %723 = vmatmul.bf16.gmra.mxu2 %v1289_v9 }
  0x6d   : > { %772 = vmatmul.bf16.gmra.mxu1 %v1229_v10  ;;  %812 = vmatmul.bf16.gmra.mxu3 %v1293_v11 }
  0x7c   : > { %688 = vmatmul.bf16.gmra.mxu0 %v1233_v20  ;;  %728 = vmatmul.bf16.gmra.mxu2 %v1297_v21 }
  0x7d   : > { %777 = vmatmul.bf16.gmra.mxu1 %v1237_v22  ;;  %817 = vmatmul.bf16.gmra.mxu3 %v1301_v23 }
  0x8c   : > { %693 = vmatmul.bf16.gmra.mxu0 %v1241_v32  ;;  %733 = vmatmul.bf16.gmra.mxu2 %v1305_v33 }
  0x8d   : > { %782 = vmatmul.bf16.gmra.mxu1 %v1245_v34  ;;  %822 = vmatmul.bf16.gmra.mxu3 %v1309_v35 }
  0x9c   : > { %698 = vmatmul.bf16.gmra.mxu0 %v1249_v44  ;;  %738 = vmatmul.bf16.gmra.mxu2 %v1313_v45 }
  0x9d   : > { %787 = vmatmul.bf16.gmra.mxu1 %v1253_v46  ;;  %827 = vmatmul.bf16.gmra.mxu3 %v1317_v47 }
  0xa9   : > { %v664_v48 = vpop.f32.mrf.mxu0 }
  0xaa   : > { %v753_v49 = vpop.f32.mrf.mxu1 }
  0xab   : > { %v754_v50 = vadd.f32 %v753_v49, %v664_v48 }
  0xad   : > { %v936_v56 = vadd.f32 %v1757_v51, %v754_v50 }
  0xaf   : > { %v704_v52 = vpop.f32.mrf.mxu2  ;;  %v968_v60 = vmax.f32 %v936_v56, 0.0 }
  0xb0   : > { %v793_v53 = vpop.f32.mrf.mxu3 }
  0xb1   : > { %v666_v54 = vpop.f32.mrf.mxu0  ;;  %v794_v58 = vadd.f32 %v793_v53, %v704_v52 }
  0xb2   : > { %v755_v55 = vpop.f32.mrf.mxu1 }
  0xb3   : > { %v756_v57 = vadd.f32 %v755_v55, %v666_v54  ;;  %v952_v0 = vadd.f32 %v1757_v51, %v794_v58 }
  0xb5   : > { %v937_v59 = vadd.f32 %v1757_v51, %v756_v57  ;;  %v984_v6 = vmax.f32 %v952_v0, 0.0 }
  0xb7   : > { %v969_v61 = vmax.f32 %v937_v59, 0.0  ;;  %v706_v62 = vpop.f32.mrf.mxu2 }
  0xb8   : > { %v795_v63 = vpop.f32.mrf.mxu3 }
  0xb9   : > { %v1436_v1 = vpack.c.bf16 %v969_v61, %v968_v60  ;;  %v796_v2 = vadd.f32 %v795_v63, %v706_v62  ;;  %v669_v3 = vpop.f32.mrf.mxu0 }
  0xba   : > { %v758_v4 = vpop.f32.mrf.mxu1 }
  0xbb   : > { %1437 = vst [vmem:[%s1765_s8] sm:$0xff] %v1436_v1   ;;  %v953_v5 = vadd.f32 %v1757_v51, %v796_v2  ;;  %v759_v9 = vadd.f32 %v758_v4, %v669_v3 }
  0xbd   : > { %v985_v7 = vmax.f32 %v953_v5, 0.0  ;;  %v938_v14 = vadd.f32 %v1757_v51, %v759_v9 }
  0xbf   : > { %v1476_v8 = vpack.c.bf16 %v985_v7, %v984_v6  ;;  %v709_v10 = vpop.f32.mrf.mxu2  ;;  %v970_v18 = vmax.f32 %v938_v14, 0.0 }
  0xc0   : > { %v798_v11 = vpop.f32.mrf.mxu3 }
  0xc1   : > { %1520 = vst [vmem:[%s1765_s8 + $0x40] sm:$0xff] %v1476_v8   ;;  %v671_v12 = vpop.f32.mrf.mxu0  ;;  %v799_v16 = vadd.f32 %v798_v11, %v709_v10 }
  0xc2   : > { %v760_v13 = vpop.f32.mrf.mxu1 }
  0xc3   : > { %v761_v15 = vadd.f32 %v760_v13, %v671_v12  ;;  %v954_v22 = vadd.f32 %v1757_v51, %v799_v16 }
  0xc5   : > { %v939_v17 = vadd.f32 %v1757_v51, %v761_v15  ;;  %v986_v28 = vmax.f32 %v954_v22, 0.0 }
  0xc7   : > { %v971_v19 = vmax.f32 %v939_v17, 0.0  ;;  %v711_v20 = vpop.f32.mrf.mxu2 }
  0xc8   : > { %v800_v21 = vpop.f32.mrf.mxu3 }
  0xc9   : > { %v1441_v23 = vpack.c.bf16 %v971_v19, %v970_v18  ;;  %v801_v24 = vadd.f32 %v800_v21, %v711_v20  ;;  %v674_v25 = vpop.f32.mrf.mxu0 }
  0xca   : > { %v763_v26 = vpop.f32.mrf.mxu1 }
  0xcb   : > { %1513 = vst [vmem:[%s1765_s8 + $0x8] sm:$0xff] %v1441_v23   ;;  %v955_v27 = vadd.f32 %v1757_v51, %v801_v24  ;;  %v764_v31 = vadd.f32 %v763_v26, %v674_v25 }
  0xcd   : > { %v987_v29 = vmax.f32 %v955_v27, 0.0  ;;  %v940_v36 = vadd.f32 %v1757_v51, %v764_v31 }
  0xcf   : > { %v1481_v30 = vpack.c.bf16 %v987_v29, %v986_v28  ;;  %v714_v32 = vpop.f32.mrf.mxu2  ;;  %v972_v40 = vmax.f32 %v940_v36, 0.0 }
  0xd0   : > { %v803_v33 = vpop.f32.mrf.mxu3 }
  0xd1   : > { %1521 = vst [vmem:[%s1765_s8 + $0x48] sm:$0xff] %v1481_v30   ;;  %v676_v34 = vpop.f32.mrf.mxu0  ;;  %v804_v38 = vadd.f32 %v803_v33, %v714_v32 }
  0xd2   : > { %v765_v35 = vpop.f32.mrf.mxu1 }
  0xd3   : > { %v766_v37 = vadd.f32 %v765_v35, %v676_v34  ;;  %v956_v44 = vadd.f32 %v1757_v51, %v804_v38 }
  0xd5   : > { %v941_v39 = vadd.f32 %v1757_v51, %v766_v37  ;;  %v988_v50 = vmax.f32 %v956_v44, 0.0 }
  0xd7   : > { %v973_v41 = vmax.f32 %v941_v39, 0.0  ;;  %v716_v42 = vpop.f32.mrf.mxu2 }
  0xd8   : > { %v805_v43 = vpop.f32.mrf.mxu3 }
  0xd9   : > { %v1446_v45 = vpack.c.bf16 %v973_v41, %v972_v40  ;;  %v806_v46 = vadd.f32 %v805_v43, %v716_v42  ;;  %v679_v47 = vpop.f32.mrf.mxu0 }
  0xda   : > { %v768_v48 = vpop.f32.mrf.mxu1 }
  0xdb   : > { %1514 = vst [vmem:[%s1765_s8 + $0x10] sm:$0xff] %v1446_v45   ;;  %v957_v49 = vadd.f32 %v1757_v51, %v806_v46  ;;  %v769_v54 = vadd.f32 %v768_v48, %v679_v47 }
  0xdd   : > { %v989_v52 = vmax.f32 %v957_v49, 0.0  ;;  %v942_v59 = vadd.f32 %v1757_v51, %v769_v54 }
  0xdf   : > { %v1486_v53 = vpack.c.bf16 %v989_v52, %v988_v50  ;;  %v719_v55 = vpop.f32.mrf.mxu2  ;;  %v974_v63 = vmax.f32 %v942_v59, 0.0 }
  0xe0   : > { %v808_v56 = vpop.f32.mrf.mxu3 }
  0xe1   : > { %1522 = vst [vmem:[%s1765_s8 + $0x50] sm:$0xff] %v1486_v53   ;;  %v681_v57 = vpop.f32.mrf.mxu0  ;;  %v809_v61 = vadd.f32 %v808_v56, %v719_v55 }
  0xe2   : > { %v770_v58 = vpop.f32.mrf.mxu1 }
  0xe3   : > { %v771_v60 = vadd.f32 %v770_v58, %v681_v57  ;;  %v958_v3 = vadd.f32 %v1757_v51, %v809_v61 }
  0xe5   : > { %v943_v62 = vadd.f32 %v1757_v51, %v771_v60  ;;  %v990_v9 = vmax.f32 %v958_v3, 0.0 }
  0xe7   : > { %v975_v0 = vmax.f32 %v943_v62, 0.0  ;;  %v721_v1 = vpop.f32.mrf.mxu2 }
  0xe8   : > { %v810_v2 = vpop.f32.mrf.mxu3 }
  0xe9   : > { %v1451_v4 = vpack.c.bf16 %v975_v0, %v974_v63  ;;  %v811_v5 = vadd.f32 %v810_v2, %v721_v1  ;;  %v684_v6 = vpop.f32.mrf.mxu0 }
  0xea   : > { %v773_v7 = vpop.f32.mrf.mxu1 }
  0xeb   : > { %1515 = vst [vmem:[%s1765_s8 + $0x18] sm:$0xff] %v1451_v4   ;;  %v959_v8 = vadd.f32 %v1757_v51, %v811_v5  ;;  %v774_v12 = vadd.f32 %v773_v7, %v684_v6 }
  0xed   : > { %v991_v10 = vmax.f32 %v959_v8, 0.0  ;;  %v944_v17 = vadd.f32 %v1757_v51, %v774_v12 }
  0xef   : > { %v1491_v11 = vpack.c.bf16 %v991_v10, %v990_v9  ;;  %v724_v13 = vpop.f32.mrf.mxu2  ;;  %v976_v21 = vmax.f32 %v944_v17, 0.0 }
  0xf0   : > { %v813_v14 = vpop.f32.mrf.mxu3 }
  0xf1   : > { %1523 = vst [vmem:[%s1765_s8 + $0x58] sm:$0xff] %v1491_v11   ;;  %v686_v15 = vpop.f32.mrf.mxu0  ;;  %v814_v19 = vadd.f32 %v813_v14, %v724_v13 }
  0xf2   : > { %v775_v16 = vpop.f32.mrf.mxu1 }
  0xf3   : > { %v776_v18 = vadd.f32 %v775_v16, %v686_v15  ;;  %v960_v25 = vadd.f32 %v1757_v51, %v814_v19 }
  0xf5   : > { %v945_v20 = vadd.f32 %v1757_v51, %v776_v18  ;;  %v992_v31 = vmax.f32 %v960_v25, 0.0 }
  0xf7   : > { %v977_v22 = vmax.f32 %v945_v20, 0.0  ;;  %v726_v23 = vpop.f32.mrf.mxu2 }
  0xf8   : > { %v815_v24 = vpop.f32.mrf.mxu3 }
  0xf9   : > { %v1456_v26 = vpack.c.bf16 %v977_v22, %v976_v21  ;;  %v816_v27 = vadd.f32 %v815_v24, %v726_v23  ;;  %v689_v28 = vpop.f32.mrf.mxu0 }
  0xfa   : > { %v778_v29 = vpop.f32.mrf.mxu1 }
  0xfb   : > { %1516 = vst [vmem:[%s1765_s8 + $0x20] sm:$0xff] %v1456_v26   ;;  %v961_v30 = vadd.f32 %v1757_v51, %v816_v27  ;;  %v779_v34 = vadd.f32 %v778_v29, %v689_v28 }
  0xfd   : > { %v993_v32 = vmax.f32 %v961_v30, 0.0  ;;  %v946_v39 = vadd.f32 %v1757_v51, %v779_v34 }
  0xff   : > { %v1496_v33 = vpack.c.bf16 %v993_v32, %v992_v31  ;;  %v729_v35 = vpop.f32.mrf.mxu2  ;;  %v978_v43 = vmax.f32 %v946_v39, 0.0 }
 0x100   : > { %v818_v36 = vpop.f32.mrf.mxu3 }
 0x101   : > { %1524 = vst [vmem:[%s1765_s8 + $0x60] sm:$0xff] %v1496_v33   ;;  %v691_v37 = vpop.f32.mrf.mxu0  ;;  %v819_v41 = vadd.f32 %v818_v36, %v729_v35 }
 0x102   : > { %v780_v38 = vpop.f32.mrf.mxu1 }
 0x103   : > { %v781_v40 = vadd.f32 %v780_v38, %v691_v37  ;;  %v962_v47 = vadd.f32 %v1757_v51, %v819_v41 }
 0x105   : > { %v947_v42 = vadd.f32 %v1757_v51, %v781_v40  ;;  %v994_v54 = vmax.f32 %v962_v47, 0.0 }
 0x107   : > { %v979_v44 = vmax.f32 %v947_v42, 0.0  ;;  %v731_v45 = vpop.f32.mrf.mxu2 }
 0x108   : > { %v820_v46 = vpop.f32.mrf.mxu3 }
 0x109   : > { %v1461_v48 = vpack.c.bf16 %v979_v44, %v978_v43  ;;  %v821_v49 = vadd.f32 %v820_v46, %v731_v45  ;;  %v694_v50 = vpop.f32.mrf.mxu0 }
 0x10a   : > { %v783_v52 = vpop.f32.mrf.mxu1 }
 0x10b   : > { %1517 = vst [vmem:[%s1765_s8 + $0x28] sm:$0xff] %v1461_v48   ;;  %v963_v53 = vadd.f32 %v1757_v51, %v821_v49  ;;  %v784_v57 = vadd.f32 %v783_v52, %v694_v50 }
 0x10d   : > { %v995_v55 = vmax.f32 %v963_v53, 0.0  ;;  %v948_v62 = vadd.f32 %v1757_v51, %v784_v57 }
 0x10f   : > { %v1501_v56 = vpack.c.bf16 %v995_v55, %v994_v54  ;;  %v734_v58 = vpop.f32.mrf.mxu2  ;;  %v980_v2 = vmax.f32 %v948_v62, 0.0 }
 0x110   : > { %v823_v59 = vpop.f32.mrf.mxu3 }
 0x111   : > { %1525 = vst [vmem:[%s1765_s8 + $0x68] sm:$0xff] %v1501_v56   ;;  %v696_v60 = vpop.f32.mrf.mxu0  ;;  %v824_v0 = vadd.f32 %v823_v59, %v734_v58 }
 0x112   : > { %v785_v61 = vpop.f32.mrf.mxu1 }
 0x113   : > { %v786_v63 = vadd.f32 %v785_v61, %v696_v60  ;;  %v964_v6 = vadd.f32 %v1757_v51, %v824_v0 }
 0x115   : > { %v949_v1 = vadd.f32 %v1757_v51, %v786_v63  ;;  %v996_v12 = vmax.f32 %v964_v6, 0.0 }
 0x117   : > { %v981_v3 = vmax.f32 %v949_v1, 0.0  ;;  %v736_v4 = vpop.f32.mrf.mxu2 }
 0x118   : > { %v825_v5 = vpop.f32.mrf.mxu3 }
 0x119   : > { %v1466_v7 = vpack.c.bf16 %v981_v3, %v980_v2  ;;  %v826_v8 = vadd.f32 %v825_v5, %v736_v4  ;;  %v699_v9 = vpop.f32.mrf.mxu0 }
 0x11a   : > { %v788_v10 = vpop.f32.mrf.mxu1 }
 0x11b   : > { %1518 = vst [vmem:[%s1765_s8 + $0x30] sm:$0xff] %v1466_v7   ;;  %v965_v11 = vadd.f32 %v1757_v51, %v826_v8  ;;  %v789_v15 = vadd.f32 %v788_v10, %v699_v9 }
 0x11d   : > { %v997_v13 = vmax.f32 %v965_v11, 0.0  ;;  %v950_v20 = vadd.f32 %v1757_v51, %v789_v15 }
 0x11f   : > { %v1506_v14 = vpack.c.bf16 %v997_v13, %v996_v12  ;;  %v739_v16 = vpop.f32.mrf.mxu2  ;;  %v982_v24 = vmax.f32 %v950_v20, 0.0 }
 0x120   : > { %v828_v17 = vpop.f32.mrf.mxu3 }
 0x121   : > { %1526 = vst [vmem:[%s1765_s8 + $0x70] sm:$0xff] %v1506_v14   ;;  %v701_v18 = vpop.f32.mrf.mxu0  ;;  %v829_v22 = vadd.f32 %v828_v17, %v739_v16 }
 0x122   : > { %v790_v19 = vpop.f32.mrf.mxu1 }
 0x123   : > { %v791_v21 = vadd.f32 %v790_v19, %v701_v18  ;;  %v966_v28 = vadd.f32 %v1757_v51, %v829_v22 }
 0x125   : > { %v951_v23 = vadd.f32 %v1757_v51, %v791_v21  ;;  %v998_v32 = vmax.f32 %v966_v28, 0.0 }
 0x127   : > { %v983_v25 = vmax.f32 %v951_v23, 0.0  ;;  %v741_v26 = vpop.f32.mrf.mxu2 }
 0x128   : > { %v830_v27 = vpop.f32.mrf.mxu3 }
 0x129   : > { %v1471_v29 = vpack.c.bf16 %v983_v25, %v982_v24  ;;  %v831_v30 = vadd.f32 %v830_v27, %v741_v26 }
 0x12b   : > { %1519 = vst [vmem:[%s1765_s8 + $0x38] sm:$0xff] %v1471_v29   ;;  %v967_v31 = vadd.f32 %v1757_v51, %v831_v30 }
 0x12d   : > { %v999_v33 = vmax.f32 %v967_v31, 0.0 }
 0x12f   : > { %v1511_v34 = vpack.c.bf16 %v999_v33, %v998_v32 }
 0x131   : > { %1527 = vst [vmem:[%s1765_s8 + $0x78] sm:$0xff] %v1511_v34  }
 0x132 PF: > { %s13_s14 = sadd.s32 1, %s1591_s14   ;;  %s1826_s12 = smov %s1587_s13 }
 0x133   : > { %p10_p5 = scmp.ge.s32.totalorder %s13_s14, 4   ;;  %s1827_s13 = smov %s1829_s15 }
 0x135   :  { %12 = sbr.rel (!%p10_p5) target bundleno = 2 (0x2), region = 76 }

// kernel: resnet101_forward.14
= control target key start
LH: loop header
LB: loop body
LE: loop exit
PB: predicated region body
PF: predicated region fallthrough
CT: control target
= control target key end

     0   :  { %s597_s1 = inlined_call_operand.vmem [shape: bf16[128,128], index: 1, kind: input, shape index: {}]   ;;  %s598_s2 = inlined_call_operand.vmem [shape: f32[1,128], index: 2, kind: input, shape index: {}]   ;;  %s599_s0 = inlined_call_operand.vmem [shape: bf16[128,128], index: 0, kind: input, shape index: {}]   ;;  %s600_s3 = inlined_call_operand.vmem [shape: bf16[128,128], index: 3, kind: output, shape index: {}]  }
   0x1   :  { %v429_v0 = vld [vmem:[%s597_s1 + $0x38] sm:$0xff]  ;;  %v428_v1 = vld [vmem:[%s597_s1 + $0x30] sm:$0xff]  ;;  %v427_v2 = vld [vmem:[%s597_s1 + $0x28] sm:$0xff] }
   0x2   :  { %178 = vmatpush.bf16.msra.mxu0 %v429_v0  ;;  %477 = vmatpush.bf16.msra.mxu1 %v429_v0  ;;  %v426_v3 = vld [vmem:[%s597_s1 + $0x20] sm:$0xff]  ;;  %v425_v4 = vld [vmem:[%s597_s1 + $0x18] sm:$0xff]  ;;  %v424_v5 = vld [vmem:[%s597_s1 + $0x10] sm:$0xff] }
   0x3   :  { %478 = vmatpush.bf16.msra.mxu2 %v429_v0  ;;  %479 = vmatpush.bf16.msra.mxu3 %v429_v0  ;;  %v423_v6 = vld [vmem:[%s597_s1 + $0x8] sm:$0xff]  ;;  %v422_v7 = vld [vmem:[%s597_s1] sm:$0xff]  ;;  %v416_v9 = vld [vmem:[%s599_s0 + $0x10] sm:$0xff] }
   0x4   :  { %v414_v8 = vld [vmem:[%s599_s0] sm:$0xff]  ;;  %v420_v11 = vld [vmem:[%s599_s0 + $0x30] sm:$0xff]  ;;  %v415_v12 = vld [vmem:[%s599_s0 + $0x8] sm:$0xff] }
   0x5   :  { %v418_v10 = vld [vmem:[%s599_s0 + $0x20] sm:$0xff]  ;;  %v417_v13 = vld [vmem:[%s599_s0 + $0x18] sm:$0xff]  ;;  %v419_v14 = vld [vmem:[%s599_s0 + $0x28] sm:$0xff] }
   0x6   :  { %179 = vmatpush.bf16.msra.mxu0 %v428_v1  ;;  %480 = vmatpush.bf16.msra.mxu1 %v428_v1  ;;  %v421_v15 = vld [vmem:[%s599_s0 + $0x38] sm:$0xff]  ;;  %v501_v18 = vld [vmem:[%s598_s2] ss:$0 sm:$0xff] }
   0x7   :  { %481 = vmatpush.bf16.msra.mxu2 %v428_v1  ;;  %482 = vmatpush.bf16.msra.mxu3 %v428_v1 }
   0xa   :  { %180 = vmatpush.bf16.msra.mxu0 %v427_v2  ;;  %483 = vmatpush.bf16.msra.mxu1 %v427_v2 }
   0xb   :  { %484 = vmatpush.bf16.msra.mxu2 %v427_v2  ;;  %485 = vmatpush.bf16.msra.mxu3 %v427_v2 }
   0xe   :  { %181 = vmatpush.bf16.msra.mxu0 %v426_v3  ;;  %486 = vmatpush.bf16.msra.mxu1 %v426_v3 }
   0xf   :  { %487 = vmatpush.bf16.msra.mxu2 %v426_v3  ;;  %488 = vmatpush.bf16.msra.mxu3 %v426_v3 }
  0x12   :  { %182 = vmatpush.bf16.msra.mxu0 %v425_v4  ;;  %489 = vmatpush.bf16.msra.mxu1 %v425_v4 }
  0x13   :  { %490 = vmatpush.bf16.msra.mxu2 %v425_v4  ;;  %491 = vmatpush.bf16.msra.mxu3 %v425_v4 }
  0x16   :  { %183 = vmatpush.bf16.msra.mxu0 %v424_v5  ;;  %492 = vmatpush.bf16.msra.mxu1 %v424_v5 }
  0x17   :  { %493 = vmatpush.bf16.msra.mxu2 %v424_v5  ;;  %494 = vmatpush.bf16.msra.mxu3 %v424_v5 }
  0x1a   :  { %184 = vmatpush.bf16.msra.mxu0 %v423_v6  ;;  %495 = vmatpush.bf16.msra.mxu1 %v423_v6 }
  0x1b   :  { %496 = vmatpush.bf16.msra.mxu2 %v423_v6  ;;  %497 = vmatpush.bf16.msra.mxu3 %v423_v6 }
  0x1e   :  { %185 = vmatpush.bf16.msra.mxu0 %v422_v7  ;;  %498 = vmatpush.bf16.msra.mxu1 %v422_v7 }
  0x1f   :  { %499 = vmatpush.bf16.msra.mxu2 %v422_v7  ;;  %500 = vmatpush.bf16.msra.mxu3 %v422_v7 }
  0x21   :  { %186 = vmatmul.bf16.vlgmr.msra.gmra.mxu0 %v414_v8  ;;  %196 = vmatmul.bf16.vlgmr.msra.gmra.mxu1 %v416_v9 }
  0x22   :  { %206 = vmatmul.bf16.vlgmr.msra.gmra.mxu2 %v418_v10  ;;  %216 = vmatmul.bf16.vlgmr.msra.gmra.mxu3 %v420_v11 }
  0x31   :  { %191 = vmatmul.bf16.gmra.mxu0 %v415_v12  ;;  %201 = vmatmul.bf16.gmra.mxu1 %v417_v13 }
  0x32   :  { %211 = vmatmul.bf16.gmra.mxu2 %v419_v14  ;;  %221 = vmatmul.bf16.gmra.mxu3 %v421_v15 }
  0x9e   :  { %v187_v16 = vpop.f32.mrf.mxu0  ;;  %v197_v17 = vpop.f32.mrf.mxu1 }
  0x9f   :  { %v282_v19 = vadd.f32 %v501_v18, %v187_v16  ;;  %v286_v20 = vadd.f32 %v501_v18, %v197_v17 }
  0xa1   :  { %v298_v27 = vmax.f32 %v282_v19, 0.0  ;;  %v302_v28 = vmax.f32 %v286_v20, 0.0 }
  0xa5   :  { %v207_v21 = vpop.f32.mrf.mxu2  ;;  %v217_v22 = vpop.f32.mrf.mxu3 }
  0xa6   :  { %v189_v23 = vpop.f32.mrf.mxu0  ;;  %v199_v24 = vpop.f32.mrf.mxu1  ;;  %v290_v33 = vadd.f32 %v501_v18, %v207_v21  ;;  %v294_v34 = vadd.f32 %v501_v18, %v217_v22 }
  0xa7   :  { %v283_v25 = vadd.f32 %v501_v18, %v189_v23  ;;  %v287_v26 = vadd.f32 %v501_v18, %v199_v24 }
  0xa8   :  { %v306_v41 = vmax.f32 %v290_v33, 0.0  ;;  %v310_v42 = vmax.f32 %v294_v34, 0.0 }
  0xa9   :  { %v299_v29 = vmax.f32 %v283_v25, 0.0  ;;  %v303_v30 = vmax.f32 %v287_v26, 0.0 }
  0xab   :  { %v433_v31 = vpack.c.bf16 %v299_v29, %v298_v27  ;;  %v443_v32 = vpack.c.bf16 %v303_v30, %v302_v28 }
  0xad   :  { %434 = vst [vmem:[%s600_s3] sm:$0xff] %v433_v31   ;;  %v209_v35 = vpop.f32.mrf.mxu2  ;;  %v219_v36 = vpop.f32.mrf.mxu3 }
  0xae   :  { %471 = vst [vmem:[%s600_s3 + $0x10] sm:$0xff] %v443_v32   ;;  %v291_v37 = vadd.f32 %v501_v18, %v209_v35  ;;  %v295_v38 = vadd.f32 %v501_v18, %v219_v36  ;;  %v192_v39 = vpop.f32.mrf.mxu0  ;;  %v202_v40 = vpop.f32.mrf.mxu1 }
  0xaf   :  { %v284_v47 = vadd.f32 %v501_v18, %v192_v39  ;;  %v288_v48 = vadd.f32 %v501_v18, %v202_v40 }
  0xb0   :  { %v307_v43 = vmax.f32 %v291_v37, 0.0  ;;  %v311_v44 = vmax.f32 %v295_v38, 0.0 }
  0xb1   :  { %v300_v55 = vmax.f32 %v284_v47, 0.0  ;;  %v304_v56 = vmax.f32 %v288_v48, 0.0 }
  0xb2   :  { %v453_v45 = vpack.c.bf16 %v307_v43, %v306_v41  ;;  %v463_v46 = vpack.c.bf16 %v311_v44, %v310_v42 }
  0xb4   :  { %473 = vst [vmem:[%s600_s3 + $0x20] sm:$0xff] %v453_v45  }
  0xb5   :  { %475 = vst [vmem:[%s600_s3 + $0x30] sm:$0xff] %v463_v46   ;;  %v212_v49 = vpop.f32.mrf.mxu2  ;;  %v222_v50 = vpop.f32.mrf.mxu3 }
  0xb6   :  { %v194_v51 = vpop.f32.mrf.mxu0  ;;  %v204_v52 = vpop.f32.mrf.mxu1  ;;  %v292_v61 = vadd.f32 %v501_v18, %v212_v49  ;;  %v296_v62 = vadd.f32 %v501_v18, %v222_v50 }
  0xb7   :  { %v285_v53 = vadd.f32 %v501_v18, %v194_v51  ;;  %v289_v54 = vadd.f32 %v501_v18, %v204_v52 }
  0xb8   :  { %v308_v3 = vmax.f32 %v292_v61, 0.0  ;;  %v312_v4 = vmax.f32 %v296_v62, 0.0 }
  0xb9   :  { %v301_v57 = vmax.f32 %v285_v53, 0.0  ;;  %v305_v58 = vmax.f32 %v289_v54, 0.0 }
  0xbb   :  { %v438_v59 = vpack.c.bf16 %v301_v57, %v300_v55  ;;  %v448_v60 = vpack.c.bf16 %v305_v58, %v304_v56 }
  0xbd   :  { %470 = vst [vmem:[%s600_s3 + $0x8] sm:$0xff] %v438_v59   ;;  %v214_v63 = vpop.f32.mrf.mxu2  ;;  %v224_v0 = vpop.f32.mrf.mxu3 }
  0xbe   :  { %472 = vst [vmem:[%s600_s3 + $0x18] sm:$0xff] %v448_v60   ;;  %v293_v1 = vadd.f32 %v501_v18, %v214_v63  ;;  %v297_v2 = vadd.f32 %v501_v18, %v224_v0 }
  0xc0   :  { %v309_v5 = vmax.f32 %v293_v1, 0.0  ;;  %v313_v6 = vmax.f32 %v297_v2, 0.0 }
  0xc2   :  { %v458_v7 = vpack.c.bf16 %v309_v5, %v308_v3  ;;  %v468_v8 = vpack.c.bf16 %v313_v6, %v312_v4 }
  0xc4   :  { %474 = vst [vmem:[%s600_s3 + $0x28] sm:$0xff] %v458_v7  }
  0xc5   :  { %476 = vst [vmem:[%s600_s3 + $0x38] sm:$0xff] %v468_v8  }

// kernel: resnet101_forward.13
= control target key start
LH: loop header
LB: loop body
LE: loop exit
PB: predicated region body
PF: predicated region fallthrough
CT: control target
= control target key end

     0   :  { %s1137_s12 = smov 0   ;;  %s1139_s13 = smov 0   ;;  %s1304_s0 = inlined_call_operand.vmem [shape: bf16[128,128], index: 0, kind: input, shape index: {}]   ;;  %s1305_s1 = inlined_call_operand.vmem [shape: bf16[128,256], index: 1, kind: input, shape index: {}]   ;;  %s1306_s2 = inlined_call_operand.vmem [shape: f32[1,256], index: 2, kind: input, shape index: {}]   ;;  %s1307_s3 = inlined_call_operand.vmem [shape: bf16[128,256], index: 3, kind: output, shape index: {}]  }
   0x1   :  { %s1141_s14 = smov 0   ;;  %s1143_s15 = smov 0  }
   0x2   :  { %s1145_s16 = smov 0  }
   0x3 LB: > { %s28_s17 = sadd.s32 1, %s1111_s15  ;;  %s871_s18 = sadd.s32 4294967295, %s1115_s16   ;;  %s1115_s16 = sphi %s1145_s16, %s13_s16   ;;  %s1111_s15 = sphi %s1143_s15, %s1312_s15   ;;  %s1107_s14 = sphi %s1141_s14, %s1311_s14   ;;  %s1103_s13 = sphi %s1139_s13, %s1310_s13   ;;  %s1099_s12 = sphi %s1137_s12, %s1309_s12  }
   0x4   : > { %p30_p0 = scmp.ge.s32.totalorder %s28_s17, 2  ;;  %p76_p1 = scmp.ne.s32.totalorder %s1103_s13, %s1099_s12 }
   0x5   : > { %p77_p2 = scmp.eq.s32.totalorder %s1115_s16, 0  ;;  %p134_p4 = scmp.eq.s32.totalorder %s871_s18, 1 }
   0x6   : > { %s1314_s17 = smov (%p30_p0, %s28_s17), 0  ;;  %s69_s20 = sadd.s32 1, %s1103_s13 }
   0x7   : > { %p78_p3 = por %p77_p2, %p76_p1  ;;  %s65_s19 = ssub.s32 %s1111_s15, %s1314_s17 }
   0x8   : > { %p67_p5 = scmp.eq.s32.totalorder %s65_s19, 0  ;;  %p1172_p6 = por %p134_p4, %p76_p1 }
   0x9   : > { %p875_p7 = scmp.ge.s32.totalorder %s1115_s16, 2 }
   0xa   : > { %s1177_s22 = scalar_select %p67_p5, %s1103_s13, %s69_s20  }
   0xb   : > { %168 = sbr.rel (%p875_p7) target bundleno = 36 (0x24), region = 20 }
  0x10   : > { %171 = sbr.rel (!%p78_p3) target bundleno = 36 (0x24), region = 24  ;;  %s173_s23 = sand.u32 (%p78_p3), 1, %s1103_s13  }
  0x11   : > { %s877_s24 = sshll.u32 (%p78_p3), %s1111_s15, 2  ;;  %s876_s25 = sshll.u32 (%p78_p3), %s173_s23, 6 }
  0x12   : > { %s1185_s28 = scalar_lea.vmem (%p78_p3), %s1305_s1, %s877_s24  ;;  %s175_s29 = scalar_lea.vmem (%p78_p3), [#allocation3], %s876_s25 }
  0x13   : > { %v197_v0 = vld [vmem:[%s1185_s28] sm:$0xf] (%p78_p3)  ;;  %v199_v1 = vld [vmem:[%s1185_s28 + $0x8] sm:$0xf] (%p78_p3)  ;;  %v201_v2 = vld [vmem:[%s1185_s28 + $0x10] sm:$0xf] (%p78_p3) }
  0x14   : > { %198 = vst [vmem:[%s175_s29] sm:$0xf] (%p78_p3), %v197_v0  ;;  %v203_v3 = vld [vmem:[%s1185_s28 + $0x18] sm:$0xf] (%p78_p3)  ;;  %v205_v4 = vld [vmem:[%s1185_s28 + $0x20] sm:$0xf] (%p78_p3) }
  0x15   : > { %200 = vst [vmem:[%s175_s29 + $0x4] sm:$0xf] %v199_v1  ;;  %v207_v5 = vld [vmem:[%s1185_s28 + $0x28] sm:$0xf]  ;;  %v209_v6 = vld [vmem:[%s1185_s28 + $0x30] sm:$0xf] }
  0x16   : > { %202 = vst [vmem:[%s175_s29 + $0x8] sm:$0xf] %v201_v2  ;;  %v211_v7 = vld [vmem:[%s1185_s28 + $0x38] sm:$0xf]  ;;  %v213_v8 = vld [vmem:[%s1185_s28 + $0x40] sm:$0xf] }
  0x17   : > { %204 = vst [vmem:[%s175_s29 + $0xc] sm:$0xf] %v203_v3  ;;  %v215_v9 = vld [vmem:[%s1185_s28 + $0x48] sm:$0xf]  ;;  %v217_v10 = vld [vmem:[%s1185_s28 + $0x50] sm:$0xf] }
  0x18   : > { %206 = vst [vmem:[%s175_s29 + $0x10] sm:$0xf] %v205_v4  ;;  %v219_v11 = vld [vmem:[%s1185_s28 + $0x58] sm:$0xf]  ;;  %v221_v12 = vld [vmem:[%s1185_s28 + $0x60] sm:$0xf] }
  0x19   : > { %208 = vst [vmem:[%s175_s29 + $0x14] sm:$0xf] %v207_v5  ;;  %v223_v13 = vld [vmem:[%s1185_s28 + $0x68] sm:$0xf]  ;;  %v225_v14 = vld [vmem:[%s1185_s28 + $0x70] sm:$0xf] }
  0x1a   : > { %210 = vst [vmem:[%s175_s29 + $0x18] sm:$0xf] %v209_v6  ;;  %v227_v15 = vld [vmem:[%s1185_s28 + $0x78] sm:$0xf] }
  0x1b   : > { %212 = vst [vmem:[%s175_s29 + $0x1c] sm:$0xf] %v211_v7 }
  0x1c   : > { %214 = vst [vmem:[%s175_s29 + $0x20] sm:$0xf] %v213_v8 }
  0x1d   : > { %216 = vst [vmem:[%s175_s29 + $0x24] sm:$0xf] %v215_v9 }
  0x1e   : > { %218 = vst [vmem:[%s175_s29 + $0x28] sm:$0xf] %v217_v10 }
  0x1f   : > { %220 = vst [vmem:[%s175_s29 + $0x2c] sm:$0xf] %v219_v11 }
  0x20   : > { %222 = vst [vmem:[%s175_s29 + $0x30] sm:$0xf] %v221_v12 }
  0x21   : > { %224 = vst [vmem:[%s175_s29 + $0x34] sm:$0xf] %v223_v13 }
  0x22   : > { %226 = vst [vmem:[%s175_s29 + $0x38] sm:$0xf] %v225_v14 }
  0x23   : > { %228 = vst [vmem:[%s175_s29 + $0x3c] sm:$0xf] %v227_v15 }
  0x24 PF: > { %p878_p8 = scmp.ge.s32.totalorder %s1115_s16, 1  ;;  %p289_p9 = scmp.lt.s32.totalorder %s1115_s16, 3 }
  0x26   : > { %p290_p10 = pnand %p878_p8, %p289_p9 }
  0x27   : > { %s296_s30 = sand.u32 (!%p290_p10), 1, %s1099_s12   ;;  %p339_p11 = scmp.lt.s32.totalorder (!%p290_p10), %s1107_s14, 1 }
  0x28   : > { %293 = sbr.rel (%p290_p10) target bundleno = 250 (0xfa), region = 69  ;;  %s1207_s4 = sshll.u32 (!%p290_p10), %s296_s30, 6 }
  0x29   : > { %s1210_s5 = scalar_lea.vmem (!%p290_p10), [#allocation3], %s1207_s4  ;;  %s1257_s11 = scalar_lea.vmem (!%p290_p10), [#allocation4], %s1207_s4 }
  0x2d   : > { %v964_v16 = vld [vmem:[%s1210_s5 + $0x38] sm:$0xff]  ;;  %s1214_s6 = scalar_select %p339_p11, %s1107_s14, 1  ;;  %v963_v17 = vld [vmem:[%s1210_s5 + $0x30] sm:$0xff]  ;;  %v962_v18 = vld [vmem:[%s1210_s5 + $0x28] sm:$0xff] }
  0x2e   : > { %507 = vmatpush.bf16.msra.mxu0 %v964_v16  ;;  %1012 = vmatpush.bf16.msra.mxu1 %v964_v16  ;;  %v961_v19 = vld [vmem:[%s1210_s5 + $0x20] sm:$0xff]  ;;  %v960_v20 = vld [vmem:[%s1210_s5 + $0x18] sm:$0xff]  ;;  %v959_v21 = vld [vmem:[%s1210_s5 + $0x10] sm:$0xff]  ;;  %s946_s4 = sshll.u32 (%p1172_p6), %s1107_s14, 2 }
  0x2f   : > { %1013 = vmatpush.bf16.msra.mxu2 %v964_v16  ;;  %1014 = vmatpush.bf16.msra.mxu3 %v964_v16  ;;  %s341_s9 = scalar_lea.vmem %s1306_s2, %s1214_s6  ;;  %v958_v22 = vld [vmem:[%s1210_s5 + $0x8] sm:$0xff]  ;;  %v957_v23 = vld [vmem:[%s1210_s5] sm:$0xff]  ;;  %v951_v25 = vld [vmem:[%s1304_s0 + $0x10] sm:$0xff]  ;;  %s670_s12 = scalar_lea.vmem (%p1172_p6), %s1307_s3, %s946_s4 }
  0x30   : > { %v949_v24 = vld [vmem:[%s1304_s0] sm:$0xff]  ;;  %v955_v27 = vld [vmem:[%s1304_s0 + $0x30] sm:$0xff]  ;;  %v950_v28 = vld [vmem:[%s1304_s0 + $0x8] sm:$0xff] }
  0x31   : > { %v953_v26 = vld [vmem:[%s1304_s0 + $0x20] sm:$0xff]  ;;  %v952_v29 = vld [vmem:[%s1304_s0 + $0x18] sm:$0xff]  ;;  %v954_v30 = vld [vmem:[%s1304_s0 + $0x28] sm:$0xff] }
  0x32   : > { %508 = vmatpush.bf16.msra.mxu0 %v963_v17  ;;  %1015 = vmatpush.bf16.msra.mxu1 %v963_v17  ;;  %v956_v31 = vld [vmem:[%s1304_s0 + $0x38] sm:$0xff]  ;;  %v1076_v34 = vld [vmem:[%s341_s9] ss:$0 sm:$0xff] }
  0x33   : > { %1016 = vmatpush.bf16.msra.mxu2 %v963_v17  ;;  %1017 = vmatpush.bf16.msra.mxu3 %v963_v17 }
  0x36   : > { %509 = vmatpush.bf16.msra.mxu0 %v962_v18  ;;  %1018 = vmatpush.bf16.msra.mxu1 %v962_v18 }
  0x37   : > { %1019 = vmatpush.bf16.msra.mxu2 %v962_v18  ;;  %1020 = vmatpush.bf16.msra.mxu3 %v962_v18 }
  0x3a   : > { %510 = vmatpush.bf16.msra.mxu0 %v961_v19  ;;  %1021 = vmatpush.bf16.msra.mxu1 %v961_v19 }
  0x3b   : > { %1022 = vmatpush.bf16.msra.mxu2 %v961_v19  ;;  %1023 = vmatpush.bf16.msra.mxu3 %v961_v19 }
  0x3e   : > { %511 = vmatpush.bf16.msra.mxu0 %v960_v20  ;;  %1024 = vmatpush.bf16.msra.mxu1 %v960_v20 }
  0x3f   : > { %1025 = vmatpush.bf16.msra.mxu2 %v960_v20  ;;  %1026 = vmatpush.bf16.msra.mxu3 %v960_v20 }
  0x42   : > { %512 = vmatpush.bf16.msra.mxu0 %v959_v21  ;;  %1027 = vmatpush.bf16.msra.mxu1 %v959_v21 }
  0x43   : > { %1028 = vmatpush.bf16.msra.mxu2 %v959_v21  ;;  %1029 = vmatpush.bf16.msra.mxu3 %v959_v21 }
  0x46   : > { %513 = vmatpush.bf16.msra.mxu0 %v958_v22  ;;  %1030 = vmatpush.bf16.msra.mxu1 %v958_v22 }
  0x47   : > { %1031 = vmatpush.bf16.msra.mxu2 %v958_v22  ;;  %1032 = vmatpush.bf16.msra.mxu3 %v958_v22 }
  0x4a   : > { %514 = vmatpush.bf16.msra.mxu0 %v957_v23  ;;  %1033 = vmatpush.bf16.msra.mxu1 %v957_v23 }
  0x4b   : > { %1034 = vmatpush.bf16.msra.mxu2 %v957_v23  ;;  %1035 = vmatpush.bf16.msra.mxu3 %v957_v23 }
  0x4d   : > { %515 = vmatmul.bf16.vlgmr.msra.gmra.mxu0 %v949_v24  ;;  %525 = vmatmul.bf16.vlgmr.msra.gmra.mxu1 %v951_v25 }
  0x4e   : > { %535 = vmatmul.bf16.vlgmr.msra.gmra.mxu2 %v953_v26  ;;  %545 = vmatmul.bf16.vlgmr.msra.gmra.mxu3 %v955_v27 }
  0x5d   : > { %520 = vmatmul.bf16.gmra.mxu0 %v950_v28  ;;  %530 = vmatmul.bf16.gmra.mxu1 %v952_v29 }
  0x5e   : > { %540 = vmatmul.bf16.gmra.mxu2 %v954_v30  ;;  %550 = vmatmul.bf16.gmra.mxu3 %v956_v31 }
  0xca   : > { %v516_v32 = vpop.f32.mrf.mxu0  ;;  %v526_v33 = vpop.f32.mrf.mxu1 }
  0xcb   : > { %v611_v39 = vadd.f32 %v1076_v34, %v516_v32  ;;  %v615_v40 = vadd.f32 %v1076_v34, %v526_v33 }
  0xd1   : > { %v536_v35 = vpop.f32.mrf.mxu2  ;;  %v546_v36 = vpop.f32.mrf.mxu3 }
  0xd2   : > { %v518_v37 = vpop.f32.mrf.mxu0  ;;  %v528_v38 = vpop.f32.mrf.mxu1  ;;  %v619_v47 = vadd.f32 %v1076_v34, %v536_v35  ;;  %v623_v48 = vadd.f32 %v1076_v34, %v546_v36 }
  0xd3   : > { %v612_v41 = vadd.f32 %v1076_v34, %v518_v37  ;;  %v616_v42 = vadd.f32 %v1076_v34, %v528_v38 }
  0xd5   : > { %v968_v43 = vpack.c.bf16 %v612_v41, %v611_v39  ;;  %v978_v44 = vpack.c.bf16 %v616_v42, %v615_v40 }
  0xd7   : > { %969 = vst [vmem:[%s1257_s11] sm:$0xff] %v968_v43  }
  0xd8   : > { %1006 = vst [vmem:[%s1257_s11 + $0x10] sm:$0xff] %v978_v44  }
  0xd9   : > { %v538_v45 = vpop.f32.mrf.mxu2  ;;  %v548_v46 = vpop.f32.mrf.mxu3 }
  0xda   : > { %v620_v49 = vadd.f32 %v1076_v34, %v538_v45  ;;  %v624_v50 = vadd.f32 %v1076_v34, %v548_v46  ;;  %v521_v51 = vpop.f32.mrf.mxu0  ;;  %v531_v52 = vpop.f32.mrf.mxu1 }
  0xdb   : > { %v613_v59 = vadd.f32 %v1076_v34, %v521_v51  ;;  %v617_v60 = vadd.f32 %v1076_v34, %v531_v52 }
  0xdc   : > { %v988_v53 = vpack.c.bf16 %v620_v49, %v619_v47  ;;  %v998_v54 = vpack.c.bf16 %v624_v50, %v623_v48 }
  0xde   : > { %1008 = vst [vmem:[%s1257_s11 + $0x20] sm:$0xff] %v988_v53   ;;  %v687_v9 = vld [vmem:[%s1257_s11] sm:$0xf] (%p1172_p6)  ;;  %v689_v10 = vld [vmem:[%s1257_s11 + $0x4] sm:$0xf] (%p1172_p6) }
  0xdf   : > { %1010 = vst [vmem:[%s1257_s11 + $0x30] sm:$0xff] %v998_v54   ;;  %v695_v13 = vld [vmem:[%s1257_s11 + $0x10] sm:$0xf] (%p1172_p6)  ;;  %v697_v14 = vld [vmem:[%s1257_s11 + $0x14] sm:$0xf] (%p1172_p6) }
  0xe0   : > { %688 = vst [vmem:[%s670_s12] sm:$0xf] (%p1172_p6), %v687_v9 }
  0xe1   : > { %v541_v55 = vpop.f32.mrf.mxu2  ;;  %v551_v56 = vpop.f32.mrf.mxu3  ;;  %690 = vst [vmem:[%s670_s12 + $0x8] sm:$0xf] (%p1172_p6), %v689_v10 }
  0xe2   : > { %v523_v57 = vpop.f32.mrf.mxu0  ;;  %v533_v58 = vpop.f32.mrf.mxu1  ;;  %v621_v3 = vadd.f32 %v1076_v34, %v541_v55  ;;  %v625_v4 = vadd.f32 %v1076_v34, %v551_v56  ;;  %696 = vst [vmem:[%s670_s12 + $0x20] sm:$0xf] (%p1172_p6), %v695_v13 }
  0xe3   : > { %v614_v61 = vadd.f32 %v1076_v34, %v523_v57  ;;  %v618_v62 = vadd.f32 %v1076_v34, %v533_v58  ;;  %698 = vst [vmem:[%s670_s12 + $0x28] sm:$0xf] (%p1172_p6), %v697_v14 }
  0xe5   : > { %v973_v63 = vpack.c.bf16 %v614_v61, %v613_v59  ;;  %v983_v0 = vpack.c.bf16 %v618_v62, %v617_v60  ;;  %v703_v17 = vld [vmem:[%s1257_s11 + $0x20] sm:$0xf] (%p1172_p6)  ;;  %v705_v18 = vld [vmem:[%s1257_s11 + $0x24] sm:$0xf] (%p1172_p6) }
  0xe6   : > { %704 = vst [vmem:[%s670_s12 + $0x40] sm:$0xf] (%p1172_p6), %v703_v17  ;;  %v711_v21 = vld [vmem:[%s1257_s11 + $0x30] sm:$0xf] (%p1172_p6)  ;;  %v713_v22 = vld [vmem:[%s1257_s11 + $0x34] sm:$0xf] (%p1172_p6) }
  0xe7   : > { %1005 = vst [vmem:[%s1257_s11 + $0x8] sm:$0xff] %v973_v63  }
  0xe8   : > { %1007 = vst [vmem:[%s1257_s11 + $0x18] sm:$0xff] %v983_v0  }
  0xe9   : > { %v543_v1 = vpop.f32.mrf.mxu2  ;;  %v553_v2 = vpop.f32.mrf.mxu3  ;;  %706 = vst [vmem:[%s670_s12 + $0x48] sm:$0xf] (%p1172_p6), %v705_v18 }
  0xea   : > { %v622_v5 = vadd.f32 %v1076_v34, %v543_v1  ;;  %v626_v6 = vadd.f32 %v1076_v34, %v553_v2  ;;  %712 = vst [vmem:[%s670_s12 + $0x60] sm:$0xf] (%p1172_p6), %v711_v21 }
  0xeb   : > { %665 = sbr.rel (!%p1172_p6) target bundleno = 250 (0xfa), region = 85  ;;  %714 = vst [vmem:[%s670_s12 + $0x68] sm:$0xf] (%p1172_p6), %v713_v22 }
  0xec   : > { %v993_v7 = vpack.c.bf16 %v622_v5, %v621_v3  ;;  %v1003_v8 = vpack.c.bf16 %v626_v6, %v625_v4 }
  0xee   : > { %1009 = vst [vmem:[%s1257_s11 + $0x28] sm:$0xff] %v993_v7   ;;  %v691_v11 = vld [vmem:[%s1257_s11 + $0x8] sm:$0xf] (%p1172_p6)  ;;  %v693_v12 = vld [vmem:[%s1257_s11 + $0xc] sm:$0xf] (%p1172_p6) }
  0xef   : > { %1011 = vst [vmem:[%s1257_s11 + $0x38] sm:$0xff] %v1003_v8   ;;  %v699_v15 = vld [vmem:[%s1257_s11 + $0x18] sm:$0xf] (%p1172_p6)  ;;  %v701_v16 = vld [vmem:[%s1257_s11 + $0x1c] sm:$0xf] (%p1172_p6) }
  0xf0   : > { %692 = vst [vmem:[%s670_s12 + $0x10] sm:$0xf] %v691_v11 }
  0xf1   : > { %694 = vst [vmem:[%s670_s12 + $0x18] sm:$0xf] %v693_v12 }
  0xf2   : > { %700 = vst [vmem:[%s670_s12 + $0x30] sm:$0xf] %v699_v15 }
  0xf3   : > { %702 = vst [vmem:[%s670_s12 + $0x38] sm:$0xf] %v701_v16 }
  0xf5   : > { %v707_v19 = vld [vmem:[%s1257_s11 + $0x28] sm:$0xf]  ;;  %v709_v20 = vld [vmem:[%s1257_s11 + $0x2c] sm:$0xf] }
  0xf6   : > { %708 = vst [vmem:[%s670_s12 + $0x50] sm:$0xf] %v707_v19  ;;  %v715_v23 = vld [vmem:[%s1257_s11 + $0x38] sm:$0xf]  ;;  %v717_v24 = vld [vmem:[%s1257_s11 + $0x3c] sm:$0xf] }
  0xf7   : > { %710 = vst [vmem:[%s670_s12 + $0x58] sm:$0xf] %v709_v20 }
  0xf8   : > { %716 = vst [vmem:[%s670_s12 + $0x70] sm:$0xf] %v715_v23 }
  0xf9   : > { %718 = vst [vmem:[%s670_s12 + $0x78] sm:$0xf] %v717_v24 }
  0xfa PF: > { %s13_s16 = sadd.s32 1, %s1115_s16   ;;  %s1309_s12 = smov %s1103_s13 }
  0xfb   : > { %p10_p12 = scmp.ge.s32.totalorder %s13_s16, 4   ;;  %s1310_s13 = smov %s1177_s22 }
  0xfc   : > { %s1311_s14 = smov %s1111_s15  ;;  %s1312_s15 = smov %s1314_s17 }
  0xfd   :  { %12 = sbr.rel (!%p10_p12) target bundleno = 3 (0x3), region = 163 }

// kernel: resnet101_forward.15
= control target key start
LH: loop header
LB: loop body
LE: loop exit
PB: predicated region body
PF: predicated region fallthrough
CT: control target
= control target key end

     0   :  { %s3227_s1 = inlined_call_operand.vmem [shape: bf16[1152,128], index: 1, kind: input, shape index: {}]   ;;  %s3228_s0 = inlined_call_operand.vmem [shape: bf16[128,1152], index: 0, kind: input, shape index: {}]   ;;  %s3229_s2 = inlined_call_operand.vmem [shape: f32[1,128], index: 2, kind: input, shape index: {}]   ;;  %s3230_s3 = inlined_call_operand.vmem [shape: bf16[128,128], index: 3, kind: output, shape index: {}]  }
   0x1   :  { %v2293_v0 = vld [vmem:[%s3227_s1 + $0x38] sm:$0xff]  ;;  %v2292_v1 = vld [vmem:[%s3227_s1 + $0x30] sm:$0xff]  ;;  %v2291_v2 = vld [vmem:[%s3227_s1 + $0x28] sm:$0xff] }
   0x2   :  { %2405 = vmatpush.bf16.msra.mxu1 %v2293_v0  ;;  %2406 = vmatpush.bf16.msra.mxu2 %v2293_v0  ;;  %v2290_v3 = vld [vmem:[%s3227_s1 + $0x20] sm:$0xff]  ;;  %v2289_v4 = vld [vmem:[%s3227_s1 + $0x18] sm:$0xff]  ;;  %v2288_v5 = vld [vmem:[%s3227_s1 + $0x10] sm:$0xff] }
   0x3   :  { %2407 = vmatpush.bf16.msra.mxu3 %v2293_v0  ;;  %1074 = vmatpush.bf16.msra.mxu0 %v2293_v0  ;;  %v2287_v6 = vld [vmem:[%s3227_s1 + $0x8] sm:$0xff]  ;;  %v2286_v7 = vld [vmem:[%s3227_s1] sm:$0xff]  ;;  %v1712_v8 = vld [vmem:[%s3228_s0 + $0x90] sm:$0xf] }
   0x4   :  { %v2236_v9 = vld [vmem:[%s3228_s0 + $0xb0] sm:$0xf0]  ;;  %v1784_v10 = vld [vmem:[%s3228_s0 + $0x120] sm:$0xf]  ;;  %v2254_v11 = vld [vmem:[%s3228_s0 + $0x140] sm:$0xf0] }
   0x5   :  { %v1856_v12 = vld [vmem:[%s3228_s0 + $0x1b0] sm:$0xf]  ;;  %v2272_v13 = vld [vmem:[%s3228_s0 + $0x1d0] sm:$0xf0]  ;;  %v1640_v14 = vld [vmem:[%s3228_s0] sm:$0xf]  ;;  %v1713_v18 = vor.u32 %v2236_v9, %v1712_v8  ;;  %v1785_v19 = vor.u32 %v2254_v11, %v1784_v10 }
   0x6   :  { %2408 = vmatpush.bf16.msra.mxu1 %v2292_v1  ;;  %2409 = vmatpush.bf16.msra.mxu2 %v2292_v1  ;;  %v2218_v15 = vld [vmem:[%s3228_s0 + $0x20] sm:$0xf0]  ;;  %v2309_v16 = vld [vmem:[%s3227_s1 + $0xb8] sm:$0xff]  ;;  %v1857_v20 = vor.u32 %v2272_v13, %v1856_v12  ;;  %v2308_v24 = vld [vmem:[%s3227_s1 + $0xb0] sm:$0xff] }
   0x7   :  { %2410 = vmatpush.bf16.msra.mxu3 %v2292_v1  ;;  %1075 = vmatpush.bf16.msra.mxu0 %v2292_v1  ;;  %v2301_v17 = vld [vmem:[%s3227_s1 + $0x78] sm:$0xff]  ;;  %v1641_v21 = vor.u32 %v2218_v15, %v1640_v14  ;;  %v2300_v25 = vld [vmem:[%s3227_s1 + $0x70] sm:$0xff]  ;;  %v2307_v28 = vld [vmem:[%s3227_s1 + $0xa8] sm:$0xff] }
   0x8   :  { %v2317_v22 = vld [vmem:[%s3227_s1 + $0xf8] sm:$0xff]  ;;  %v2316_v26 = vld [vmem:[%s3227_s1 + $0xf0] sm:$0xff]  ;;  %v2299_v29 = vld [vmem:[%s3227_s1 + $0x68] sm:$0xff] }
   0x9   :  { %v2325_v23 = vld [vmem:[%s3227_s1 + $0x138] sm:$0xff]  ;;  %v2324_v27 = vld [vmem:[%s3227_s1 + $0x130] sm:$0xff]  ;;  %v2315_v30 = vld [vmem:[%s3227_s1 + $0xe8] sm:$0xff] }
   0xa   :  { %2411 = vmatpush.bf16.msra.mxu1 %v2291_v2  ;;  %2412 = vmatpush.bf16.msra.mxu2 %v2291_v2  ;;  %v2323_v31 = vld [vmem:[%s3227_s1 + $0x128] sm:$0xff]  ;;  %v2306_v32 = vld [vmem:[%s3227_s1 + $0xa0] sm:$0xff]  ;;  %v1748_v36 = vld [vmem:[%s3228_s0 + $0xd8] sm:$0xf] }
   0xb   :  { %2413 = vmatpush.bf16.msra.mxu3 %v2291_v2  ;;  %1076 = vmatpush.bf16.msra.mxu0 %v2291_v2  ;;  %v2298_v33 = vld [vmem:[%s3227_s1 + $0x60] sm:$0xff]  ;;  %v2245_v37 = vld [vmem:[%s3228_s0 + $0xf8] sm:$0xf0]  ;;  %v1820_v38 = vld [vmem:[%s3228_s0 + $0x168] sm:$0xf] }
   0xc   :  { %v2314_v34 = vld [vmem:[%s3227_s1 + $0xe0] sm:$0xff]  ;;  %v2263_v39 = vld [vmem:[%s3228_s0 + $0x188] sm:$0xf0]  ;;  %v1892_v40 = vld [vmem:[%s3228_s0 + $0x1f8] sm:$0xf]  ;;  %v1749_v46 = vor.u32 %v2245_v37, %v1748_v36 }
   0xd   :  { %v2322_v35 = vld [vmem:[%s3227_s1 + $0x120] sm:$0xff]  ;;  %v2281_v41 = vld [vmem:[%s3228_s0 + $0x218] sm:$0xf0]  ;;  %v1676_v42 = vld [vmem:[%s3228_s0 + $0x48] sm:$0xf]  ;;  %v1821_v47 = vor.u32 %v2263_v39, %v1820_v38 }
   0xe   :  { %2414 = vmatpush.bf16.msra.mxu1 %v2290_v3  ;;  %2415 = vmatpush.bf16.msra.mxu2 %v2290_v3  ;;  %v2227_v43 = vld [vmem:[%s3228_s0 + $0x68] sm:$0xf0]  ;;  %v2305_v44 = vld [vmem:[%s3227_s1 + $0x98] sm:$0xff]  ;;  %v1893_v48 = vor.u32 %v2281_v41, %v1892_v40  ;;  %v2304_v52 = vld [vmem:[%s3227_s1 + $0x90] sm:$0xff] }
   0xf   :  { %2416 = vmatpush.bf16.msra.mxu3 %v2290_v3  ;;  %1077 = vmatpush.bf16.msra.mxu0 %v2290_v3  ;;  %v2297_v45 = vld [vmem:[%s3227_s1 + $0x58] sm:$0xff]  ;;  %v1677_v49 = vor.u32 %v2227_v43, %v1676_v42  ;;  %v2296_v53 = vld [vmem:[%s3227_s1 + $0x50] sm:$0xff]  ;;  %v2303_v56 = vld [vmem:[%s3227_s1 + $0x88] sm:$0xff] }
  0x10   :  { %v2313_v50 = vld [vmem:[%s3227_s1 + $0xd8] sm:$0xff]  ;;  %v2312_v54 = vld [vmem:[%s3227_s1 + $0xd0] sm:$0xff]  ;;  %v2295_v57 = vld [vmem:[%s3227_s1 + $0x48] sm:$0xff] }
  0x11   :  { %v2321_v51 = vld [vmem:[%s3227_s1 + $0x118] sm:$0xff]  ;;  %v2320_v55 = vld [vmem:[%s3227_s1 + $0x110] sm:$0xff]  ;;  %v2311_v58 = vld [vmem:[%s3227_s1 + $0xc8] sm:$0xff] }
  0x12   :  { %2417 = vmatpush.bf16.msra.mxu1 %v2289_v4  ;;  %2418 = vmatpush.bf16.msra.mxu2 %v2289_v4  ;;  %v2319_v59 = vld [vmem:[%s3227_s1 + $0x108] sm:$0xff]  ;;  %v2302_v60 = vld [vmem:[%s3227_s1 + $0x80] sm:$0xff]  ;;  %v2341_v2 = vld [vmem:[%s3227_s1 + $0x1b8] sm:$0xff] }
  0x13   :  { %2419 = vmatpush.bf16.msra.mxu3 %v2289_v4  ;;  %1078 = vmatpush.bf16.msra.mxu0 %v2289_v4  ;;  %v2294_v61 = vld [vmem:[%s3227_s1 + $0x40] sm:$0xff]  ;;  %v1642_v1 = vld [vmem:[%s3228_s0 + $0x24] sm:$0xf0]  ;;  %v2333_v3 = vld [vmem:[%s3227_s1 + $0x178] sm:$0xff] }
  0x14   :  { %v2214_v62 = vld [vmem:[%s3228_s0 + $0x4] sm:$0xf]  ;;  %v1648_v4 = vld [vmem:[%s3228_s0 + $0x8] sm:$0xf]  ;;  %v1656_v8 = vld [vmem:[%s3228_s0 + $0x10] sm:$0xf] }
  0x15   :  { %v2310_v63 = vld [vmem:[%s3227_s1 + $0xc0] sm:$0xff]  ;;  %v2220_v9 = vld [vmem:[%s3228_s0 + $0x30] sm:$0xf0]  ;;  %v2349_v10 = vld [vmem:[%s3227_s1 + $0x1f8] sm:$0xff]  ;;  %v1645_v12 = vor.u32 %v2214_v62, %v1642_v1 }
  0x16   :  { %2420 = vmatpush.bf16.msra.mxu1 %v2288_v5  ;;  %2421 = vmatpush.bf16.msra.mxu2 %v2288_v5  ;;  %v2318_v0 = vld [vmem:[%s3227_s1 + $0x100] sm:$0xff]  ;;  %v2357_v11 = vld [vmem:[%s3227_s1 + $0x238] sm:$0xff]  ;;  %v1657_v15 = vor.u32 %v2220_v9, %v1656_v8  ;;  %v2232_v40 = vld [vmem:[%s3228_s0 + $0x94] sm:$0xf] }
  0x17   :  { %2422 = vmatpush.bf16.msra.mxu3 %v2288_v5  ;;  %1079 = vmatpush.bf16.msra.mxu0 %v2288_v5  ;;  %v2219_v5 = vld [vmem:[%s3228_s0 + $0x28] sm:$0xf0]  ;;  %v2338_v36 = vld [vmem:[%s3227_s1 + $0x1a0] sm:$0xff]  ;;  %v1714_v41 = vld [vmem:[%s3228_s0 + $0xb4] sm:$0xf0] }
  0x18   :  { %v1649_v13 = vor.u32 %v2219_v5, %v1648_v4  ;;  %v2346_v37 = vld [vmem:[%s3227_s1 + $0x1e0] sm:$0xff]  ;;  %v1720_v42 = vld [vmem:[%s3228_s0 + $0x98] sm:$0xf]  ;;  %v2237_v43 = vld [vmem:[%s3228_s0 + $0xb8] sm:$0xf0] }
  0x19   :  { %v2330_v38 = vld [vmem:[%s3227_s1 + $0x160] sm:$0xff]  ;;  %v1764_v62 = vld [vmem:[%s3228_s0 + $0xe8] sm:$0xf]  ;;  %v2336_v4 = vld [vmem:[%s3227_s1 + $0x190] sm:$0xff] }
  0x1a   :  { %2423 = vmatpush.bf16.msra.mxu1 %v2287_v6  ;;  %2424 = vmatpush.bf16.msra.mxu2 %v2287_v6  ;;  %v2354_v39 = vld [vmem:[%s3227_s1 + $0x220] sm:$0xff]  ;;  %v2344_v5 = vld [vmem:[%s3227_s1 + $0x1d0] sm:$0xff]  ;;  %v1786_v9 = vld [vmem:[%s3228_s0 + $0x144] sm:$0xf0] }
  0x1b   :  { %2425 = vmatpush.bf16.msra.mxu3 %v2287_v6  ;;  %1080 = vmatpush.bf16.msra.mxu0 %v2287_v6  ;;  %v2215_v6 = vld [vmem:[%s3228_s0 + $0xc] sm:$0xf]  ;;  %v2250_v8 = vld [vmem:[%s3228_s0 + $0x124] sm:$0xf] }
  0x1e   :  { %2426 = vmatpush.bf16.msra.mxu1 %v2286_v7  ;;  %2427 = vmatpush.bf16.msra.mxu2 %v2286_v7 }
  0x1f   :  { %2428 = vmatpush.bf16.msra.mxu3 %v2286_v7  ;;  %1081 = vmatpush.bf16.msra.mxu0 %v2286_v7  ;;  %v1650_v7 = vld [vmem:[%s3228_s0 + $0x2c] sm:$0xf0] }
  0x20   :  { %v1653_v14 = vor.u32 %v2215_v6, %v1650_v7  ;;  %v2328_v6 = vld [vmem:[%s3227_s1 + $0x150] sm:$0xff] }
  0x21   :  { %1092 = vmatmul.bf16.vlgmr.msra.gmra.mxu1 %v1713_v18  ;;  %1102 = vmatmul.bf16.vlgmr.msra.gmra.mxu2 %v1785_v19  ;;  %v2348_v18 = vld [vmem:[%s3227_s1 + $0x1f0] sm:$0xff] }
  0x22   :  { %1172 = vmatpush.bf16.msrb.mxu2 %v2309_v16  ;;  %1123 = vmatpush.bf16.msrb.mxu1 %v2301_v17  ;;  %v2340_v16 = vld [vmem:[%s3227_s1 + $0x1b0] sm:$0xff] }
  0x23   :  { %1112 = vmatmul.bf16.vlgmr.msra.gmra.mxu3 %v1857_v20  ;;  %1082 = vmatmul.bf16.vlgmr.msra.gmra.mxu0 %v1641_v21  ;;  %v2332_v17 = vld [vmem:[%s3227_s1 + $0x170] sm:$0xff]  ;;  %v2339_v20 = vld [vmem:[%s3227_s1 + $0x1a8] sm:$0xff] }
  0x24   :  { %1221 = vmatpush.bf16.msrb.mxu3 %v2317_v22  ;;  %1270 = vmatpush.bf16.msrb.mxu0 %v2325_v23  ;;  %v2356_v19 = vld [vmem:[%s3227_s1 + $0x230] sm:$0xff]  ;;  %v2331_v21 = vld [vmem:[%s3227_s1 + $0x168] sm:$0xff] }
  0x25   :  { %v2347_v22 = vld [vmem:[%s3227_s1 + $0x1e8] sm:$0xff]  ;;  %v2352_v7 = vld [vmem:[%s3227_s1 + $0x210] sm:$0xff] }
  0x26   :  { %1173 = vmatpush.bf16.msrb.mxu2 %v2308_v24  ;;  %1124 = vmatpush.bf16.msrb.mxu1 %v2300_v25  ;;  %v2355_v23 = vld [vmem:[%s3227_s1 + $0x228] sm:$0xff]  ;;  %v1678_v25 = vld [vmem:[%s3228_s0 + $0x6c] sm:$0xf0] }
  0x27   :  { %v2223_v24 = vld [vmem:[%s3228_s0 + $0x4c] sm:$0xf] }
  0x28   :  { %1222 = vmatpush.bf16.msrb.mxu3 %v2316_v26  ;;  %1271 = vmatpush.bf16.msrb.mxu0 %v2324_v27  ;;  %v1684_v26 = vld [vmem:[%s3228_s0 + $0x50] sm:$0xf]  ;;  %v2228_v27 = vld [vmem:[%s3228_s0 + $0x70] sm:$0xf0] }
  0x2a   :  { %1174 = vmatpush.bf16.msrb.mxu2 %v2307_v28  ;;  %1125 = vmatpush.bf16.msrb.mxu1 %v2299_v29  ;;  %v2224_v28 = vld [vmem:[%s3228_s0 + $0x54] sm:$0xf]  ;;  %v1686_v29 = vld [vmem:[%s3228_s0 + $0x74] sm:$0xf0] }
  0x2c   :  { %1223 = vmatpush.bf16.msrb.mxu3 %v2315_v30  ;;  %1272 = vmatpush.bf16.msrb.mxu0 %v2323_v31  ;;  %v1692_v30 = vld [vmem:[%s3228_s0 + $0x58] sm:$0xf]  ;;  %v2229_v31 = vld [vmem:[%s3228_s0 + $0x78] sm:$0xf0] }
  0x2e   :  { %1175 = vmatpush.bf16.msrb.mxu2 %v2306_v32  ;;  %1126 = vmatpush.bf16.msrb.mxu1 %v2298_v33  ;;  %v1681_v32 = vor.u32 %v2223_v24, %v1678_v25  ;;  %v1685_v33 = vor.u32 %v2228_v27, %v1684_v26  ;;  %v2259_v24 = vld [vmem:[%s3228_s0 + $0x16c] sm:$0xf]  ;;  %v1822_v25 = vld [vmem:[%s3228_s0 + $0x18c] sm:$0xf0]  ;;  %v2264_v27 = vld [vmem:[%s3228_s0 + $0x190] sm:$0xf0] }
  0x2f   :  { %v1828_v26 = vld [vmem:[%s3228_s0 + $0x170] sm:$0xf] }
  0x30   :  { %1224 = vmatpush.bf16.msrb.mxu3 %v2314_v34  ;;  %1273 = vmatpush.bf16.msrb.mxu0 %v2322_v35  ;;  %v1689_v34 = vor.u32 %v2224_v28, %v1686_v29  ;;  %v1693_v35 = vor.u32 %v2229_v31, %v1692_v30  ;;  %v2260_v28 = vld [vmem:[%s3228_s0 + $0x174] sm:$0xf]  ;;  %v1830_v29 = vld [vmem:[%s3228_s0 + $0x194] sm:$0xf0]  ;;  %v2265_v31 = vld [vmem:[%s3228_s0 + $0x198] sm:$0xf0] }
  0x31   :  { %1097 = vmatmul.bf16.gmra.mxu1 %v1749_v46  ;;  %1107 = vmatmul.bf16.gmra.mxu2 %v1821_v47  ;;  %v1728_v46 = vld [vmem:[%s3228_s0 + $0xa0] sm:$0xf]  ;;  %v2238_v47 = vld [vmem:[%s3228_s0 + $0xc0] sm:$0xf0]  ;;  %v1836_v30 = vld [vmem:[%s3228_s0 + $0x178] sm:$0xf] }
  0x32   :  { %1176 = vmatpush.bf16.msrb.mxu2 %v2305_v44  ;;  %1127 = vmatpush.bf16.msrb.mxu1 %v2297_v45  ;;  %v2233_v44 = vld [vmem:[%s3228_s0 + $0x9c] sm:$0xf]  ;;  %v1722_v45 = vld [vmem:[%s3228_s0 + $0xbc] sm:$0xf0] }
  0x33   :  { %1117 = vmatmul.bf16.gmra.mxu3 %v1893_v48  ;;  %1087 = vmatmul.bf16.gmra.mxu0 %v1677_v49  ;;  %v1717_v48 = vor.u32 %v2232_v40, %v1714_v41  ;;  %v1721_v49 = vor.u32 %v2237_v43, %v1720_v42  ;;  %v2268_v40 = vld [vmem:[%s3228_s0 + $0x1b4] sm:$0xf]  ;;  %v1858_v41 = vld [vmem:[%s3228_s0 + $0x1d4] sm:$0xf0]  ;;  %v2273_v43 = vld [vmem:[%s3228_s0 + $0x1d8] sm:$0xf0] }
  0x34   :  { %1225 = vmatpush.bf16.msrb.mxu3 %v2313_v50  ;;  %1274 = vmatpush.bf16.msrb.mxu0 %v2321_v51  ;;  %v1725_v50 = vor.u32 %v2233_v44, %v1722_v45  ;;  %v1729_v51 = vor.u32 %v2238_v47, %v1728_v46  ;;  %v1864_v42 = vld [vmem:[%s3228_s0 + $0x1b8] sm:$0xf]  ;;  %v2269_v44 = vld [vmem:[%s3228_s0 + $0x1bc] sm:$0xf]  ;;  %v1866_v45 = vld [vmem:[%s3228_s0 + $0x1dc] sm:$0xf0] }
  0x35   :  { %v1872_v46 = vld [vmem:[%s3228_s0 + $0x1c0] sm:$0xf]  ;;  %v2274_v47 = vld [vmem:[%s3228_s0 + $0x1e0] sm:$0xf0] }
  0x36   :  { %1177 = vmatpush.bf16.msrb.mxu2 %v2304_v52  ;;  %1128 = vmatpush.bf16.msrb.mxu1 %v2296_v53  ;;  %v2337_v52 = vld [vmem:[%s3227_s1 + $0x198] sm:$0xff] }
  0x37   :  { %v2345_v53 = vld [vmem:[%s3227_s1 + $0x1d8] sm:$0xff] }
  0x38   :  { %1226 = vmatpush.bf16.msrb.mxu3 %v2312_v54  ;;  %1275 = vmatpush.bf16.msrb.mxu0 %v2320_v55  ;;  %v2329_v54 = vld [vmem:[%s3227_s1 + $0x158] sm:$0xff] }
  0x39   :  { %v2353_v55 = vld [vmem:[%s3227_s1 + $0x218] sm:$0xff] }
  0x3a   :  { %1178 = vmatpush.bf16.msrb.mxu2 %v2303_v56  ;;  %1129 = vmatpush.bf16.msrb.mxu1 %v2295_v57  ;;  %v2241_v56 = vld [vmem:[%s3228_s0 + $0xdc] sm:$0xf]  ;;  %v1750_v57 = vld [vmem:[%s3228_s0 + $0xfc] sm:$0xf0] }
  0x3c   :  { %1227 = vmatpush.bf16.msrb.mxu3 %v2311_v58  ;;  %1276 = vmatpush.bf16.msrb.mxu0 %v2319_v59  ;;  %v1756_v58 = vld [vmem:[%s3228_s0 + $0xe0] sm:$0xf]  ;;  %v2246_v59 = vld [vmem:[%s3228_s0 + $0x100] sm:$0xf0] }
  0x3d   :  { %v1757_v1 = vor.u32 %v2246_v59, %v1756_v58  ;;  %v2277_v58 = vld [vmem:[%s3228_s0 + $0x1fc] sm:$0xf]  ;;  %v1894_v59 = vld [vmem:[%s3228_s0 + $0x21c] sm:$0xf0] }
  0x3e   :  { %1179 = vmatpush.bf16.msrb.mxu2 %v2302_v60  ;;  %1130 = vmatpush.bf16.msrb.mxu1 %v2294_v61  ;;  %v2242_v60 = vld [vmem:[%s3228_s0 + $0xe4] sm:$0xf]  ;;  %v1758_v61 = vld [vmem:[%s3228_s0 + $0x104] sm:$0xf0] }
  0x40   :  { %1228 = vmatpush.bf16.msrb.mxu3 %v2310_v63  ;;  %1277 = vmatpush.bf16.msrb.mxu0 %v2318_v0  ;;  %v2247_v63 = vld [vmem:[%s3228_s0 + $0x108] sm:$0xf0]  ;;  %v1753_v0 = vor.u32 %v2241_v56, %v1750_v57 }
  0x41   :  { %1131 = vmatmul.bf16.vlgmr.msrb.gmra.mxu1 %v1645_v12  ;;  %1180 = vmatmul.bf16.vlgmr.msrb.gmra.mxu2 %v1649_v13  ;;  %v2251_v12 = vld [vmem:[%s3228_s0 + $0x12c] sm:$0xf]  ;;  %v1794_v13 = vld [vmem:[%s3228_s0 + $0x14c] sm:$0xf0] }
  0x42   :  { %1368 = vmatpush.bf16.msra.mxu2 %v2341_v2  ;;  %1319 = vmatpush.bf16.msra.mxu1 %v2333_v3  ;;  %v1761_v2 = vor.u32 %v2242_v60, %v1758_v61  ;;  %v1765_v3 = vor.u32 %v2247_v63, %v1764_v62  ;;  %v1900_v60 = vld [vmem:[%s3228_s0 + $0x200] sm:$0xf]  ;;  %v2282_v61 = vld [vmem:[%s3228_s0 + $0x220] sm:$0xf0]  ;;  %v1902_v63 = vld [vmem:[%s3228_s0 + $0x224] sm:$0xf0] }
  0x43   :  { %1229 = vmatmul.bf16.vlgmr.msrb.gmra.mxu3 %v1653_v14  ;;  %1278 = vmatmul.bf16.vlgmr.msrb.gmra.mxu0 %v1657_v15  ;;  %v1800_v14 = vld [vmem:[%s3228_s0 + $0x130] sm:$0xf]  ;;  %v2256_v15 = vld [vmem:[%s3228_s0 + $0x150] sm:$0xf0]  ;;  %v2278_v62 = vld [vmem:[%s3228_s0 + $0x204] sm:$0xf] }
  0x44   :  { %1417 = vmatpush.bf16.msra.mxu3 %v2349_v10  ;;  %1466 = vmatpush.bf16.msra.mxu0 %v2357_v11  ;;  %v1792_v10 = vld [vmem:[%s3228_s0 + $0x128] sm:$0xf]  ;;  %v2255_v11 = vld [vmem:[%s3228_s0 + $0x148] sm:$0xf0] }
  0x46   :  { %1369 = vmatpush.bf16.msra.mxu2 %v2340_v16  ;;  %1320 = vmatpush.bf16.msra.mxu1 %v2332_v17  ;;  %v1789_v16 = vor.u32 %v2250_v8, %v1786_v9  ;;  %v1793_v17 = vor.u32 %v2255_v11, %v1792_v10 }
  0x48   :  { %1418 = vmatpush.bf16.msra.mxu3 %v2348_v18  ;;  %1467 = vmatpush.bf16.msra.mxu0 %v2356_v19  ;;  %v1797_v18 = vor.u32 %v2251_v12, %v1794_v13  ;;  %v1801_v19 = vor.u32 %v2256_v15, %v1800_v14  ;;  %v2216_v14 = vld [vmem:[%s3228_s0 + $0x14] sm:$0xf]  ;;  %v1658_v15 = vld [vmem:[%s3228_s0 + $0x34] sm:$0xf0] }
  0x4a   :  { %1370 = vmatpush.bf16.msra.mxu2 %v2339_v20  ;;  %1321 = vmatpush.bf16.msra.mxu1 %v2331_v21  ;;  %v2335_v20 = vld [vmem:[%s3227_s1 + $0x188] sm:$0xff] }
  0x4b   :  { %v2343_v21 = vld [vmem:[%s3227_s1 + $0x1c8] sm:$0xff] }
  0x4c   :  { %1419 = vmatpush.bf16.msra.mxu3 %v2347_v22  ;;  %1468 = vmatpush.bf16.msra.mxu0 %v2355_v23  ;;  %v2327_v22 = vld [vmem:[%s3227_s1 + $0x148] sm:$0xff] }
  0x4d   :  { %v2351_v23 = vld [vmem:[%s3227_s1 + $0x208] sm:$0xff] }
  0x4e   :  { %1371 = vmatpush.bf16.msra.mxu2 %v2338_v36  ;;  %1322 = vmatpush.bf16.msra.mxu1 %v2330_v38  ;;  %v2334_v36 = vld [vmem:[%s3227_s1 + $0x180] sm:$0xff] }
  0x4f   :  { %v2326_v38 = vld [vmem:[%s3227_s1 + $0x140] sm:$0xff] }
  0x50   :  { %1420 = vmatpush.bf16.msra.mxu3 %v2346_v37  ;;  %1469 = vmatpush.bf16.msra.mxu0 %v2354_v39  ;;  %v2342_v37 = vld [vmem:[%s3227_s1 + $0x1c0] sm:$0xff] }
  0x51   :  { %1136 = vmatmul.bf16.gmra.mxu1 %v1681_v32  ;;  %1185 = vmatmul.bf16.gmra.mxu2 %v1685_v33  ;;  %v1825_v32 = vor.u32 %v2259_v24, %v1822_v25  ;;  %v1829_v33 = vor.u32 %v2264_v27, %v1828_v26  ;;  %v2350_v39 = vld [vmem:[%s3227_s1 + $0x200] sm:$0xff]  ;;  %v1661_v24 = vor.u32 %v2216_v14, %v1658_v15 }
  0x52   :  { %1372 = vmatpush.bf16.msra.mxu2 %v2337_v52  ;;  %1323 = vmatpush.bf16.msra.mxu1 %v2329_v54  ;;  %v1873_v52 = vor.u32 %v2274_v47, %v1872_v46  ;;  %v2231_v46 = vld [vmem:[%s3228_s0 + $0x88] sm:$0xf0]  ;;  %v2234_v14 = vld [vmem:[%s3228_s0 + $0xa4] sm:$0xf] }
  0x53   :  { %1234 = vmatmul.bf16.gmra.mxu3 %v1689_v34  ;;  %1283 = vmatmul.bf16.gmra.mxu0 %v1693_v35  ;;  %v1833_v34 = vor.u32 %v2260_v28, %v1830_v29  ;;  %v1837_v35 = vor.u32 %v2265_v31, %v1836_v30 }
  0x54   :  { %1421 = vmatpush.bf16.msra.mxu3 %v2345_v53  ;;  %1470 = vmatpush.bf16.msra.mxu0 %v2353_v55 }
  0x56   :  { %1373 = vmatpush.bf16.msra.mxu2 %v2336_v4  ;;  %1324 = vmatpush.bf16.msra.mxu1 %v2328_v6  ;;  %v1897_v4 = vor.u32 %v2277_v58, %v1894_v59 }
  0x58   :  { %1422 = vmatpush.bf16.msra.mxu3 %v2344_v5  ;;  %1471 = vmatpush.bf16.msra.mxu0 %v2352_v7  ;;  %v1901_v5 = vor.u32 %v2282_v61, %v1900_v60  ;;  %v1905_v7 = vor.u32 %v2278_v62, %v1902_v63 }
  0x5a   :  { %1374 = vmatpush.bf16.msra.mxu2 %v2335_v20  ;;  %1325 = vmatpush.bf16.msra.mxu1 %v2327_v22  ;;  %v1672_v20 = vld [vmem:[%s3228_s0 + $0x20] sm:$0xf] }
  0x5c   :  { %1423 = vmatpush.bf16.msra.mxu3 %v2343_v21  ;;  %1472 = vmatpush.bf16.msra.mxu0 %v2351_v23  ;;  %v2222_v21 = vld [vmem:[%s3228_s0 + $0x40] sm:$0xf0] }
  0x5d   :  { %v1673_v28 = vor.u32 %v2222_v21, %v1672_v20  ;;  %v2240_v20 = vld [vmem:[%s3228_s0 + $0xd0] sm:$0xf0] }
  0x5e   :  { %1375 = vmatpush.bf16.msra.mxu2 %v2334_v36  ;;  %1326 = vmatpush.bf16.msra.mxu1 %v2326_v38  ;;  %v2225_v38 = vld [vmem:[%s3228_s0 + $0x5c] sm:$0xf] }
  0x60   :  { %1424 = vmatpush.bf16.msra.mxu3 %v2342_v37  ;;  %1473 = vmatpush.bf16.msra.mxu0 %v2350_v39  ;;  %v1694_v39 = vld [vmem:[%s3228_s0 + $0x7c] sm:$0xf0] }
  0x61   :  { %1141 = vmatmul.bf16.gmra.mxu1 %v1717_v48  ;;  %1190 = vmatmul.bf16.gmra.mxu2 %v1721_v49  ;;  %v1861_v48 = vor.u32 %v2268_v40, %v1858_v41  ;;  %v1865_v49 = vor.u32 %v2273_v43, %v1864_v42  ;;  %v1700_v41 = vld [vmem:[%s3228_s0 + $0x60] sm:$0xf]  ;;  %v2230_v42 = vld [vmem:[%s3228_s0 + $0x80] sm:$0xf0] }
  0x62   :  { %v2226_v43 = vld [vmem:[%s3228_s0 + $0x64] sm:$0xf] }
  0x63   :  { %1239 = vmatmul.bf16.gmra.mxu3 %v1725_v50  ;;  %1288 = vmatmul.bf16.gmra.mxu0 %v1729_v51  ;;  %v1869_v51 = vor.u32 %v2269_v44, %v1866_v45  ;;  %v1702_v44 = vld [vmem:[%s3228_s0 + $0x84] sm:$0xf0] }
  0x64   :  { %v1708_v45 = vld [vmem:[%s3228_s0 + $0x68] sm:$0xf] }
  0x65   :  { %v1709_v58 = vor.u32 %v2231_v46, %v1708_v45  ;;  %v1772_v45 = vld [vmem:[%s3228_s0 + $0xf0] sm:$0xf]  ;;  %v2248_v46 = vld [vmem:[%s3228_s0 + $0x110] sm:$0xf0] }
  0x71   :  { %1146 = vmatmul.bf16.gmra.mxu1 %v1753_v0  ;;  %1195 = vmatmul.bf16.gmra.mxu2 %v1757_v1  ;;  %v1908_v0 = vld [vmem:[%s3228_s0 + $0x208] sm:$0xf]  ;;  %v2283_v1 = vld [vmem:[%s3228_s0 + $0x228] sm:$0xf0] }
  0x72   :  { %v1909_v8 = vor.u32 %v2283_v1, %v1908_v0 }
  0x73   :  { %1244 = vmatmul.bf16.gmra.mxu3 %v1761_v2  ;;  %1293 = vmatmul.bf16.gmra.mxu0 %v1765_v3 }
  0x81   :  { %1151 = vmatmul.bf16.gmra.mxu1 %v1789_v16  ;;  %1200 = vmatmul.bf16.gmra.mxu2 %v1793_v17  ;;  %v1664_v16 = vld [vmem:[%s3228_s0 + $0x18] sm:$0xf]  ;;  %v2221_v17 = vld [vmem:[%s3228_s0 + $0x38] sm:$0xf0] }
  0x82   :  { %v1665_v25 = vor.u32 %v2221_v17, %v1664_v16  ;;  %v1736_v16 = vld [vmem:[%s3228_s0 + $0xa8] sm:$0xf]  ;;  %v2239_v17 = vld [vmem:[%s3228_s0 + $0xc8] sm:$0xf0] }
  0x83   :  { %1249 = vmatmul.bf16.gmra.mxu3 %v1797_v18  ;;  %1298 = vmatmul.bf16.gmra.mxu0 %v1801_v19  ;;  %v2217_v18 = vld [vmem:[%s3228_s0 + $0x1c] sm:$0xf]  ;;  %v1666_v19 = vld [vmem:[%s3228_s0 + $0x3c] sm:$0xf0] }
  0x84   :  { %v1669_v27 = vor.u32 %v2217_v18, %v1666_v19  ;;  %v1738_v18 = vld [vmem:[%s3228_s0 + $0xcc] sm:$0xf0] }
  0x85   :  { %v1744_v19 = vld [vmem:[%s3228_s0 + $0xb0] sm:$0xf] }
  0x91   :  { %1156 = vmatmul.bf16.gmra.mxu1 %v1825_v32  ;;  %1205 = vmatmul.bf16.gmra.mxu2 %v1829_v33 }
  0x93   :  { %1254 = vmatmul.bf16.gmra.mxu3 %v1833_v34  ;;  %1303 = vmatmul.bf16.gmra.mxu0 %v1837_v35 }
  0x9e   :  { %v2882_v50 = vpop.f32.mrf.mxu1 }
  0xa0   :  { %v1083_v53 = vpop.f32.mrf.mxu0 }
  0xa1   :  { %1161 = vmatmul.bf16.gmra.mxu1 %v1861_v48  ;;  %1210 = vmatmul.bf16.gmra.mxu2 %v1865_v49 }
  0xa3   :  { %1259 = vmatmul.bf16.gmra.mxu3 %v1869_v51  ;;  %1308 = vmatmul.bf16.gmra.mxu0 %v1873_v52  ;;  %v1697_v51 = vor.u32 %v2225_v38, %v1694_v39  ;;  %v1701_v52 = vor.u32 %v2230_v42, %v1700_v41 }
  0xa4   :  { %v2884_v54 = vpop.f32.mrf.mxu2 }
  0xa6   :  { %v2886_v55 = vpop.f32.mrf.mxu3  ;;  %v2888_v56 = vpop.f32.mrf.mxu1 }
  0xa8   :  { %v1085_v57 = vpop.f32.mrf.mxu0 }
  0xac   :  { %v2914_v2 = vpop.f32.mrf.mxu2 }
  0xae   :  { %v2916_v3 = vpop.f32.mrf.mxu3  ;;  %v2918_v6 = vpop.f32.mrf.mxu1 }
  0xb0   :  { %v1088_v9 = vpop.f32.mrf.mxu0 }
  0xb1   :  { %1166 = vmatmul.bf16.gmra.mxu1 %v1897_v4  ;;  %1215 = vmatmul.bf16.gmra.mxu2 %v1901_v5 }
  0xb3   :  { %1264 = vmatmul.bf16.gmra.mxu3 %v1905_v7  ;;  %1313 = vmatmul.bf16.gmra.mxu0 %v1909_v8 }
  0xb4   :  { %v2920_v10 = vpop.f32.mrf.mxu2 }
  0xb6   :  { %v2922_v11 = vpop.f32.mrf.mxu3  ;;  %v2924_v12 = vpop.f32.mrf.mxu1 }
  0xb8   :  { %v1090_v13 = vpop.f32.mrf.mxu0 }
  0xbc   :  { %v2950_v22 = vpop.f32.mrf.mxu2 }
  0xbe   :  { %v2952_v23 = vpop.f32.mrf.mxu3  ;;  %v1132_v26 = vpop.f32.mrf.mxu1 }
  0xbf   :  { %v1133_v29 = vadd.f32 %v1132_v26, %v1083_v53 }
  0xc0   :  { %v1279_v30 = vpop.f32.mrf.mxu0 }
  0xc1   :  { %1327 = vmatmul.bf16.vlgmr.msra.gmra.mxu1 %v1661_v24  ;;  %1376 = vmatmul.bf16.vlgmr.msra.gmra.mxu2 %v1665_v25 }
  0xc3   :  { %1425 = vmatmul.bf16.vlgmr.msra.gmra.mxu3 %v1669_v27  ;;  %1474 = vmatmul.bf16.vlgmr.msra.gmra.mxu0 %v1673_v28  ;;  %v1737_v27 = vor.u32 %v2239_v17, %v1736_v16 }
  0xc4   :  { %v1181_v31 = vpop.f32.mrf.mxu2 }
  0xc5   :  { %v1182_v32 = vadd.f32 %v1181_v31, %v1133_v29 }
  0xc6   :  { %v1230_v33 = vpop.f32.mrf.mxu3  ;;  %v1134_v34 = vpop.f32.mrf.mxu1 }
  0xc7   :  { %v1231_v35 = vadd.f32 %v1230_v33, %v1182_v32  ;;  %v1135_v36 = vadd.f32 %v1134_v34, %v1085_v57  ;;  %v1705_v57 = vor.u32 %v2226_v43, %v1702_v44  ;;  %v2243_v43 = vld [vmem:[%s3228_s0 + $0xec] sm:$0xf] }
  0xc8   :  { %v1281_v37 = vpop.f32.mrf.mxu0 }
  0xc9   :  { %v2960_v40 = vadd.f32 %v1279_v30, %v1231_v35  ;;  %v1745_v30 = vor.u32 %v2240_v20, %v1744_v19  ;;  %v1808_v19 = vld [vmem:[%s3228_s0 + $0x138] sm:$0xf]  ;;  %v2257_v20 = vld [vmem:[%s3228_s0 + $0x158] sm:$0xf0] }
  0xcc   :  { %v1183_v47 = vpop.f32.mrf.mxu2 }
  0xcd   :  { %v1184_v48 = vadd.f32 %v1183_v47, %v1135_v36  ;;  %v1774_v47 = vld [vmem:[%s3228_s0 + $0x114] sm:$0xf0] }
  0xce   :  { %v1232_v49 = vpop.f32.mrf.mxu3  ;;  %v1137_v53 = vpop.f32.mrf.mxu1 }
  0xcf   :  { %v1233_v59 = vadd.f32 %v1232_v49, %v1184_v48  ;;  %v1138_v60 = vadd.f32 %v1137_v53, %v1088_v9  ;;  %v1730_v9 = vld [vmem:[%s3228_s0 + $0xc4] sm:$0xf0]  ;;  %v1780_v48 = vld [vmem:[%s3228_s0 + $0xf8] sm:$0xf]  ;;  %v2249_v49 = vld [vmem:[%s3228_s0 + $0x118] sm:$0xf0] }
  0xd0   :  { %v1284_v61 = vpop.f32.mrf.mxu0  ;;  %v1733_v26 = vor.u32 %v2234_v14, %v1730_v9 }
  0xd1   :  { %1332 = vmatmul.bf16.gmra.mxu1 %v1697_v51  ;;  %1381 = vmatmul.bf16.gmra.mxu2 %v1701_v52  ;;  %v2980_v62 = vadd.f32 %v1281_v37, %v1233_v59 }
  0xd3   :  { %1430 = vmatmul.bf16.gmra.mxu3 %v1705_v57  ;;  %1479 = vmatmul.bf16.gmra.mxu0 %v1709_v58  ;;  %v1773_v58 = vor.u32 %v2248_v46, %v1772_v45  ;;  %v2261_v46 = vld [vmem:[%s3228_s0 + $0x17c] sm:$0xf] }
  0xd4   :  { %v1186_v63 = vpop.f32.mrf.mxu2 }
  0xd5   :  { %v1187_v0 = vadd.f32 %v1186_v63, %v1138_v60 }
  0xd6   :  { %v1235_v1 = vpop.f32.mrf.mxu3  ;;  %v1139_v4 = vpop.f32.mrf.mxu1 }
  0xd7   :  { %v1236_v5 = vadd.f32 %v1235_v1, %v1187_v0  ;;  %v1140_v7 = vadd.f32 %v1139_v4, %v1090_v13  ;;  %v2235_v13 = vld [vmem:[%s3228_s0 + $0xac] sm:$0xf] }
  0xd8   :  { %v1286_v8 = vpop.f32.mrf.mxu0  ;;  %v1741_v29 = vor.u32 %v2235_v13, %v1738_v18  ;;  %v2252_v13 = vld [vmem:[%s3228_s0 + $0x134] sm:$0xf] }
  0xd9   :  { %v2988_v15 = vadd.f32 %v1284_v61, %v1236_v5  ;;  %v1781_v61 = vor.u32 %v2249_v49, %v1780_v48  ;;  %v2266_v48 = vld [vmem:[%s3228_s0 + $0x1a0] sm:$0xf0] }
  0xda   :  { %v2262_v49 = vld [vmem:[%s3228_s0 + $0x184] sm:$0xf] }
  0xdc   :  { %v1188_v21 = vpop.f32.mrf.mxu2 }
  0xdd   :  { %v1189_v24 = vadd.f32 %v1188_v21, %v1140_v7  ;;  %v1810_v21 = vld [vmem:[%s3228_s0 + $0x15c] sm:$0xf0] }
  0xde   :  { %v1237_v25 = vpop.f32.mrf.mxu3  ;;  %v1142_v28 = vpop.f32.mrf.mxu1 }
  0xdf   :  { %v1238_v31 = vadd.f32 %v1237_v25, %v1189_v24  ;;  %v1143_v32 = vadd.f32 %v1142_v28, %v2882_v50  ;;  %v1766_v50 = vld [vmem:[%s3228_s0 + $0x10c] sm:$0xf0]  ;;  %v1816_v24 = vld [vmem:[%s3228_s0 + $0x140] sm:$0xf]  ;;  %v2258_v25 = vld [vmem:[%s3228_s0 + $0x160] sm:$0xf0] }
  0xe0   :  { %v1289_v33 = vpop.f32.mrf.mxu0  ;;  %v1769_v57 = vor.u32 %v2243_v43, %v1766_v50 }
  0xe1   :  { %1337 = vmatmul.bf16.gmra.mxu1 %v1733_v26  ;;  %1386 = vmatmul.bf16.gmra.mxu2 %v1737_v27  ;;  %v3009_v34 = vadd.f32 %v1286_v8, %v1238_v31 }
  0xe3   :  { %1435 = vmatmul.bf16.gmra.mxu3 %v1741_v29  ;;  %1484 = vmatmul.bf16.gmra.mxu0 %v1745_v30  ;;  %v1809_v30 = vor.u32 %v2257_v20, %v1808_v19  ;;  %v2270_v20 = vld [vmem:[%s3228_s0 + $0x1c4] sm:$0xf] }
  0xe4   :  { %v1191_v35 = vpop.f32.mrf.mxu2 }
  0xe5   :  { %v1192_v36 = vadd.f32 %v1191_v35, %v1143_v32 }
  0xe6   :  { %v1240_v37 = vpop.f32.mrf.mxu3  ;;  %v1144_v38 = vpop.f32.mrf.mxu1 }
  0xe7   :  { %v1241_v39 = vadd.f32 %v1240_v37, %v1192_v36  ;;  %v1145_v41 = vadd.f32 %v1144_v38, %v2888_v56  ;;  %v2244_v56 = vld [vmem:[%s3228_s0 + $0xf4] sm:$0xf] }
  0xe8   :  { %v1291_v42 = vpop.f32.mrf.mxu0  ;;  %v1777_v60 = vor.u32 %v2244_v56, %v1774_v47  ;;  %v1838_v56 = vld [vmem:[%s3228_s0 + $0x19c] sm:$0xf0] }
  0xe9   :  { %v3018_v44 = vadd.f32 %v1289_v33, %v1241_v39  ;;  %v1817_v33 = vor.u32 %v2258_v25, %v1816_v24  ;;  %v2275_v24 = vld [vmem:[%s3228_s0 + $0x1e8] sm:$0xf0] }
  0xea   :  { %v2271_v25 = vld [vmem:[%s3228_s0 + $0x1cc] sm:$0xf] }
  0xec   :  { %v1193_v51 = vpop.f32.mrf.mxu2 }
  0xed   :  { %v1194_v52 = vadd.f32 %v1193_v51, %v1145_v41 }
  0xee   :  { %v1242_v53 = vpop.f32.mrf.mxu3  ;;  %v1147_v59 = vpop.f32.mrf.mxu1 }
  0xef   :  { %v1243_v63 = vadd.f32 %v1242_v53, %v1194_v52  ;;  %v1148_v0 = vadd.f32 %v1147_v59, %v2918_v6  ;;  %v1802_v6 = vld [vmem:[%s3228_s0 + $0x154] sm:$0xf0]  ;;  %v1846_v52 = vld [vmem:[%s3228_s0 + $0x1a4] sm:$0xf0] }
  0xf0   :  { %v1294_v1 = vpop.f32.mrf.mxu0  ;;  %v1805_v29 = vor.u32 %v2252_v13, %v1802_v6  ;;  %v1852_v53 = vld [vmem:[%s3228_s0 + $0x188] sm:$0xf] }
  0xf1   :  { %1342 = vmatmul.bf16.gmra.mxu1 %v1769_v57  ;;  %1391 = vmatmul.bf16.gmra.mxu2 %v1773_v58  ;;  %v3039_v4 = vadd.f32 %v1291_v42, %v1243_v63  ;;  %v2267_v57 = vld [vmem:[%s3228_s0 + $0x1a8] sm:$0xf0] }
  0xf3   :  { %1440 = vmatmul.bf16.gmra.mxu3 %v1777_v60  ;;  %1489 = vmatmul.bf16.gmra.mxu0 %v1781_v61  ;;  %v1841_v61 = vor.u32 %v2261_v46, %v1838_v56 }
  0xf4   :  { %v1196_v5 = vpop.f32.mrf.mxu2 }
  0xf5   :  { %v1197_v7 = vadd.f32 %v1196_v5, %v1148_v0 }
  0xf6   :  { %v1245_v8 = vpop.f32.mrf.mxu3  ;;  %v1149_v14 = vpop.f32.mrf.mxu1 }
  0xf7   :  { %v1246_v9 = vadd.f32 %v1245_v8, %v1197_v7  ;;  %v1150_v16 = vadd.f32 %v1149_v14, %v2924_v12  ;;  %v2253_v12 = vld [vmem:[%s3228_s0 + $0x13c] sm:$0xf] }
  0xf8   :  { %v1296_v17 = vpop.f32.mrf.mxu0  ;;  %v1813_v32 = vor.u32 %v2253_v12, %v1810_v21  ;;  %v1874_v12 = vld [vmem:[%s3228_s0 + $0x1e4] sm:$0xf0] }
  0xf9   :  { %v3048_v18 = vadd.f32 %v1294_v1, %v1246_v9  ;;  %v1849_v1 = vor.u32 %v2262_v49, %v1846_v52  ;;  %v2279_v49 = vld [vmem:[%s3228_s0 + $0x20c] sm:$0xf] }
  0xfc   :  { %v1198_v26 = vpop.f32.mrf.mxu2 }
  0xfd   :  { %v1199_v27 = vadd.f32 %v1198_v26, %v1150_v16 }
  0xfe   :  { %v1247_v28 = vpop.f32.mrf.mxu3  ;;  %v1152_v31 = vpop.f32.mrf.mxu1 }
  0xff   :  { %v1248_v35 = vadd.f32 %v1247_v28, %v1199_v27  ;;  %v1153_v38 = vadd.f32 %v1152_v31, %v2884_v54  ;;  %v1844_v54 = vld [vmem:[%s3228_s0 + $0x180] sm:$0xf]  ;;  %v1882_v27 = vld [vmem:[%s3228_s0 + $0x1ec] sm:$0xf0] }
 0x100   :  { %v1299_v36 = vpop.f32.mrf.mxu0  ;;  %v1845_v63 = vor.u32 %v2266_v48, %v1844_v54  ;;  %v1888_v28 = vld [vmem:[%s3228_s0 + $0x1d0] sm:$0xf] }
 0x101   :  { %1347 = vmatmul.bf16.gmra.mxu1 %v1805_v29  ;;  %1396 = vmatmul.bf16.gmra.mxu2 %v1809_v30  ;;  %v3068_v37 = vadd.f32 %v1296_v17, %v1248_v35  ;;  %v2276_v29 = vld [vmem:[%s3228_s0 + $0x1f0] sm:$0xf0] }
 0x103   :  { %1445 = vmatmul.bf16.gmra.mxu3 %v1813_v32  ;;  %1494 = vmatmul.bf16.gmra.mxu0 %v1817_v33  ;;  %v1877_v33 = vor.u32 %v2270_v20, %v1874_v12 }
 0x104   :  { %v1201_v39 = vpop.f32.mrf.mxu2 }
 0x105   :  { %v1202_v41 = vadd.f32 %v1201_v39, %v1153_v38  ;;  %v1885_v38 = vor.u32 %v2271_v25, %v1882_v27 }
 0x106   :  { %v1250_v42 = vpop.f32.mrf.mxu3  ;;  %v1154_v43 = vpop.f32.mrf.mxu1 }
 0x107   :  { %v1251_v50 = vadd.f32 %v1250_v42, %v1202_v41  ;;  %v1155_v51 = vadd.f32 %v1154_v43, %v2914_v2  ;;  %v1853_v2 = vor.u32 %v2267_v57, %v1852_v53  ;;  %v2284_v53 = vld [vmem:[%s3228_s0 + $0x230] sm:$0xf0] }
 0x108   :  { %v1301_v45 = vpop.f32.mrf.mxu0  ;;  %v2280_v57 = vld [vmem:[%s3228_s0 + $0x214] sm:$0xf] }
 0x109   :  { %v3077_v47 = vadd.f32 %v1299_v36, %v1251_v50 }
 0x10c   :  { %v1203_v58 = vpop.f32.mrf.mxu2 }
 0x10d   :  { %v1204_v59 = vadd.f32 %v1203_v58, %v1155_v51  ;;  %v1910_v51 = vld [vmem:[%s3228_s0 + $0x22c] sm:$0xf0] }
 0x10e   :  { %v1252_v60 = vpop.f32.mrf.mxu3  ;;  %v1157_v0 = vpop.f32.mrf.mxu1 }
 0x10f   :  { %v1253_v5 = vadd.f32 %v1252_v60, %v1204_v59  ;;  %v1158_v14 = vadd.f32 %v1157_v0, %v2920_v10  ;;  %v1880_v10 = vld [vmem:[%s3228_s0 + $0x1c8] sm:$0xf]  ;;  %v1918_v59 = vld [vmem:[%s3228_s0 + $0x234] sm:$0xf0] }
 0x110   :  { %v1304_v7 = vpop.f32.mrf.mxu0  ;;  %v1881_v35 = vor.u32 %v2275_v24, %v1880_v10  ;;  %v1924_v60 = vld [vmem:[%s3228_s0 + $0x218] sm:$0xf] }
 0x111   :  { %1352 = vmatmul.bf16.gmra.mxu1 %v1841_v61  ;;  %1401 = vmatmul.bf16.gmra.mxu2 %v1845_v63  ;;  %v3098_v8 = vadd.f32 %v1301_v45, %v1253_v5  ;;  %v2285_v61 = vld [vmem:[%s3228_s0 + $0x238] sm:$0xf0] }
 0x113   :  { %1450 = vmatmul.bf16.gmra.mxu3 %v1849_v1  ;;  %1499 = vmatmul.bf16.gmra.mxu0 %v1853_v2  ;;  %v1913_v2 = vor.u32 %v2279_v49, %v1910_v51 }
 0x114   :  { %v1206_v9 = vpop.f32.mrf.mxu2 }
 0x115   :  { %v1207_v16 = vadd.f32 %v1206_v9, %v1158_v14  ;;  %v1921_v14 = vor.u32 %v2280_v57, %v1918_v59 }
 0x116   :  { %v1255_v17 = vpop.f32.mrf.mxu3  ;;  %v1159_v13 = vpop.f32.mrf.mxu1 }
 0x117   :  { %v1256_v6 = vadd.f32 %v1255_v17, %v1207_v16  ;;  %v1160_v26 = vadd.f32 %v1159_v13, %v2950_v22  ;;  %v1889_v22 = vor.u32 %v2276_v29, %v1888_v28 }
 0x118   :  { %v1306_v19 = vpop.f32.mrf.mxu0 }
 0x119   :  { %v3107_v21 = vadd.f32 %v1304_v7, %v1256_v6 }
 0x11c   :  { %v1208_v30 = vpop.f32.mrf.mxu2 }
 0x11d   :  { %v1209_v31 = vadd.f32 %v1208_v30, %v1160_v26 }
 0x11e   :  { %v1257_v32 = vpop.f32.mrf.mxu3  ;;  %v1162_v36 = vpop.f32.mrf.mxu1 }
 0x11f   :  { %v1258_v39 = vadd.f32 %v1257_v32, %v1209_v31  ;;  %v1163_v43 = vadd.f32 %v1162_v36, %v2886_v55  ;;  %v1916_v55 = vld [vmem:[%s3228_s0 + $0x210] sm:$0xf] }
 0x120   :  { %v1309_v41 = vpop.f32.mrf.mxu0  ;;  %v1917_v5 = vor.u32 %v2284_v53, %v1916_v55 }
 0x121   :  { %1357 = vmatmul.bf16.gmra.mxu1 %v1877_v33  ;;  %1406 = vmatmul.bf16.gmra.mxu2 %v1881_v35  ;;  %v3128_v42 = vadd.f32 %v1306_v19, %v1258_v39 }
 0x123   :  { %1455 = vmatmul.bf16.gmra.mxu3 %v1885_v38  ;;  %1504 = vmatmul.bf16.gmra.mxu0 %v1889_v22 }
 0x124   :  { %v1211_v50 = vpop.f32.mrf.mxu2 }
 0x125   :  { %v1212_v45 = vadd.f32 %v1211_v50, %v1163_v43 }
 0x126   :  { %v1260_v46 = vpop.f32.mrf.mxu3  ;;  %v1164_v56 = vpop.f32.mrf.mxu1 }
 0x127   :  { %v1261_v54 = vadd.f32 %v1260_v46, %v1212_v45  ;;  %v1165_v58 = vadd.f32 %v1164_v56, %v2916_v3  ;;  %v1925_v3 = vor.u32 %v2285_v61, %v1924_v60  ;;  %v3171_v45 = vld [vmem:[%s3229_s2] ss:$0 sm:$0xff] }
 0x128   :  { %v1311_v48 = vpop.f32.mrf.mxu0 }
 0x129   :  { %v3137_v52 = vadd.f32 %v1309_v41, %v1261_v54 }
 0x12c   :  { %v1213_v63 = vpop.f32.mrf.mxu2 }
 0x12d   :  { %v1214_v0 = vadd.f32 %v1213_v63, %v1165_v58 }
 0x12e   :  { %v1262_v1 = vpop.f32.mrf.mxu3  ;;  %v1167_v7 = vpop.f32.mrf.mxu1 }
 0x12f   :  { %v1263_v9 = vadd.f32 %v1262_v1, %v1214_v0  ;;  %v1168_v13 = vadd.f32 %v1167_v7, %v2922_v11 }
 0x130   :  { %v1314_v16 = vpop.f32.mrf.mxu0 }
 0x131   :  { %1362 = vmatmul.bf16.gmra.mxu1 %v1913_v2  ;;  %1411 = vmatmul.bf16.gmra.mxu2 %v1917_v5  ;;  %v3158_v17 = vadd.f32 %v1311_v48, %v1263_v9 }
 0x133   :  { %1460 = vmatmul.bf16.gmra.mxu3 %v1921_v14  ;;  %1509 = vmatmul.bf16.gmra.mxu0 %v1925_v3 }
 0x134   :  { %v1216_v6 = vpop.f32.mrf.mxu2 }
 0x135   :  { %v1217_v19 = vadd.f32 %v1216_v6, %v1168_v13 }
 0x136   :  { %v1265_v20 = vpop.f32.mrf.mxu3  ;;  %v1169_v12 = vpop.f32.mrf.mxu1 }
 0x137   :  { %v1266_v10 = vadd.f32 %v1265_v20, %v1217_v19  ;;  %v1170_v26 = vadd.f32 %v1169_v12, %v2952_v23 }
 0x138   :  { %v1316_v24 = vpop.f32.mrf.mxu0 }
 0x139   :  { %v3161_v25 = vadd.f32 %v1314_v16, %v1266_v10 }
 0x13c   :  { %v1218_v27 = vpop.f32.mrf.mxu2 }
 0x13d   :  { %v1219_v28 = vadd.f32 %v1218_v27, %v1170_v26 }
 0x13e   :  { %v1267_v29 = vpop.f32.mrf.mxu3  ;;  %v1328_v30 = vpop.f32.mrf.mxu1 }
 0x13f   :  { %v1268_v31 = vadd.f32 %v1267_v29, %v1219_v28  ;;  %v1329_v11 = vadd.f32 %v1328_v30, %v2960_v40 }
 0x140   :  { %v1475_v32 = vpop.f32.mrf.mxu0 }
 0x141   :  { %v3164_v33 = vadd.f32 %v1316_v24, %v1268_v31 }
 0x144   :  { %v1377_v35 = vpop.f32.mrf.mxu2 }
 0x145   :  { %v1378_v36 = vadd.f32 %v1377_v35, %v1329_v11 }
 0x146   :  { %v1426_v38 = vpop.f32.mrf.mxu3  ;;  %v1330_v22 = vpop.f32.mrf.mxu1 }
 0x147   :  { %v1427_v41 = vadd.f32 %v1426_v38, %v1378_v36  ;;  %v1331_v43 = vadd.f32 %v1330_v22, %v2980_v62 }
 0x148   :  { %v1477_v39 = vpop.f32.mrf.mxu0 }
 0x149   :  { %v1476_v23 = vadd.f32 %v1475_v32, %v1427_v41 }
 0x14b   :  { %v1570_v49 = vadd.f32 %v3171_v45, %v1476_v23 }
 0x14c   :  { %v1379_v50 = vpop.f32.mrf.mxu2 }
 0x14d   :  { %v1380_v46 = vadd.f32 %v1379_v50, %v1331_v43  ;;  %v1586_v57 = vmax.f32 %v1570_v49, 0.0 }
 0x14e   :  { %v1428_v56 = vpop.f32.mrf.mxu3  ;;  %v1333_v54 = vpop.f32.mrf.mxu1 }
 0x14f   :  { %v1429_v48 = vadd.f32 %v1428_v56, %v1380_v46  ;;  %v1334_v53 = vadd.f32 %v1333_v54, %v2988_v15 }
 0x150   :  { %v1480_v40 = vpop.f32.mrf.mxu0 }
 0x151   :  { %v1478_v51 = vadd.f32 %v1477_v39, %v1429_v48 }
 0x153   :  { %v1571_v55 = vadd.f32 %v3171_v45, %v1478_v51 }
 0x154   :  { %v1382_v62 = vpop.f32.mrf.mxu2 }
 0x155   :  { %v1587_v58 = vmax.f32 %v1571_v55, 0.0  ;;  %v1383_v59 = vadd.f32 %v1382_v62, %v1334_v53 }
 0x156   :  { %v1431_v60 = vpop.f32.mrf.mxu3  ;;  %v1335_v61 = vpop.f32.mrf.mxu1 }
 0x157   :  { %v2361_v63 = vpack.c.bf16 %v1587_v58, %v1586_v57  ;;  %v1432_v1 = vadd.f32 %v1431_v60, %v1383_v59  ;;  %v1336_v2 = vadd.f32 %v1335_v61, %v3009_v34 }
 0x158   :  { %v1482_v0 = vpop.f32.mrf.mxu0 }
 0x159   :  { %2362 = vst [vmem:[%s3230_s3] sm:$0xff] %v2361_v63   ;;  %v1481_v7 = vadd.f32 %v1480_v40, %v1432_v1 }
 0x15b   :  { %v1572_v13 = vadd.f32 %v3171_v45, %v1481_v7 }
 0x15c   :  { %v1384_v5 = vpop.f32.mrf.mxu2 }
 0x15d   :  { %v1385_v14 = vadd.f32 %v1384_v5, %v1336_v2  ;;  %v1588_v10 = vmax.f32 %v1572_v13, 0.0 }
 0x15e   :  { %v1433_v3 = vpop.f32.mrf.mxu3  ;;  %v1338_v15 = vpop.f32.mrf.mxu1 }
 0x15f   :  { %v1434_v9 = vadd.f32 %v1433_v3, %v1385_v14  ;;  %v1339_v20 = vadd.f32 %v1338_v15, %v3018_v44 }
 0x160   :  { %v1485_v16 = vpop.f32.mrf.mxu0 }
 0x161   :  { %v1483_v6 = vadd.f32 %v1482_v0, %v1434_v9 }
 0x163   :  { %v1573_v19 = vadd.f32 %v3171_v45, %v1483_v6 }
 0x164   :  { %v1387_v12 = vpop.f32.mrf.mxu2 }
 0x165   :  { %v1589_v24 = vmax.f32 %v1573_v19, 0.0  ;;  %v1388_v26 = vadd.f32 %v1387_v12, %v1339_v20 }
 0x166   :  { %v1436_v27 = vpop.f32.mrf.mxu3  ;;  %v1340_v34 = vpop.f32.mrf.mxu1 }
 0x167   :  { %v2366_v28 = vpack.c.bf16 %v1589_v24, %v1588_v10  ;;  %v1437_v30 = vadd.f32 %v1436_v27, %v1388_v26  ;;  %v1341_v31 = vadd.f32 %v1340_v34, %v3039_v4 }
 0x168   :  { %v1487_v29 = vpop.f32.mrf.mxu0 }
 0x169   :  { %2398 = vst [vmem:[%s3230_s3 + $0x8] sm:$0xff] %v2366_v28   ;;  %v1486_v11 = vadd.f32 %v1485_v16, %v1437_v30 }
 0x16b   :  { %v1574_v39 = vadd.f32 %v3171_v45, %v1486_v11 }
 0x16c   :  { %v1389_v32 = vpop.f32.mrf.mxu2 }
 0x16d   :  { %v1390_v35 = vadd.f32 %v1389_v32, %v1341_v31  ;;  %v1590_v46 = vmax.f32 %v1574_v39, 0.0 }
 0x16e   :  { %v1438_v36 = vpop.f32.mrf.mxu3  ;;  %v1343_v44 = vpop.f32.mrf.mxu1 }
 0x16f   :  { %v1439_v38 = vadd.f32 %v1438_v36, %v1390_v35  ;;  %v1344_v50 = vadd.f32 %v1343_v44, %v3048_v18 }
 0x170   :  { %v1490_v22 = vpop.f32.mrf.mxu0 }
 0x171   :  { %v1488_v41 = vadd.f32 %v1487_v29, %v1439_v38 }
 0x173   :  { %v1575_v43 = vadd.f32 %v3171_v45, %v1488_v41 }
 0x174   :  { %v1392_v23 = vpop.f32.mrf.mxu2 }
 0x175   :  { %v1591_v56 = vmax.f32 %v1575_v43, 0.0  ;;  %v1393_v54 = vadd.f32 %v1392_v23, %v1344_v50 }
 0x176   :  { %v1441_v48 = vpop.f32.mrf.mxu3  ;;  %v1345_v4 = vpop.f32.mrf.mxu1 }
 0x177   :  { %v2371_v40 = vpack.c.bf16 %v1591_v56, %v1590_v46  ;;  %v1442_v51 = vadd.f32 %v1441_v48, %v1393_v54  ;;  %v1346_v55 = vadd.f32 %v1345_v4, %v3068_v37 }
 0x178   :  { %v1492_v49 = vpop.f32.mrf.mxu0 }
 0x179   :  { %2399 = vst [vmem:[%s3230_s3 + $0x10] sm:$0xff] %v2371_v40   ;;  %v1491_v62 = vadd.f32 %v1490_v22, %v1442_v51 }
 0x17b   :  { %v1576_v61 = vadd.f32 %v3171_v45, %v1491_v62 }
 0x17c   :  { %v1394_v53 = vpop.f32.mrf.mxu2 }
 0x17d   :  { %v1395_v57 = vadd.f32 %v1394_v53, %v1346_v55  ;;  %v1592_v5 = vmax.f32 %v1576_v61, 0.0 }
 0x17e   :  { %v1443_v58 = vpop.f32.mrf.mxu3  ;;  %v1348_v18 = vpop.f32.mrf.mxu1 }
 0x17f   :  { %v1444_v59 = vadd.f32 %v1443_v58, %v1395_v57  ;;  %v1349_v1 = vadd.f32 %v1348_v18, %v3077_v47 }
 0x180   :  { %v1495_v60 = vpop.f32.mrf.mxu0 }
 0x181   :  { %v1493_v63 = vadd.f32 %v1492_v49, %v1444_v59 }
 0x183   :  { %v1577_v0 = vadd.f32 %v3171_v45, %v1493_v63 }
 0x184   :  { %v1397_v2 = vpop.f32.mrf.mxu2 }
 0x185   :  { %v1593_v7 = vmax.f32 %v1577_v0, 0.0  ;;  %v1398_v14 = vadd.f32 %v1397_v2, %v1349_v1 }
 0x186   :  { %v1446_v3 = vpop.f32.mrf.mxu3  ;;  %v1350_v37 = vpop.f32.mrf.mxu1 }
 0x187   :  { %v2376_v15 = vpack.c.bf16 %v1593_v7, %v1592_v5  ;;  %v1447_v16 = vadd.f32 %v1446_v3, %v1398_v14  ;;  %v1351_v13 = vadd.f32 %v1350_v37, %v3098_v8 }
 0x188   :  { %v1497_v9 = vpop.f32.mrf.mxu0 }
 0x189   :  { %2400 = vst [vmem:[%s3230_s3 + $0x18] sm:$0xff] %v2376_v15   ;;  %v1496_v19 = vadd.f32 %v1495_v60, %v1447_v16 }
 0x18b   :  { %v1578_v26 = vadd.f32 %v3171_v45, %v1496_v19 }
 0x18c   :  { %v1399_v6 = vpop.f32.mrf.mxu2 }
 0x18d   :  { %v1400_v20 = vadd.f32 %v1399_v6, %v1351_v13  ;;  %v1594_v30 = vmax.f32 %v1578_v26, 0.0 }
 0x18e   :  { %v1448_v12 = vpop.f32.mrf.mxu3  ;;  %v1353_v47 = vpop.f32.mrf.mxu1 }
 0x18f   :  { %v1449_v10 = vadd.f32 %v1448_v12, %v1400_v20  ;;  %v1354_v28 = vadd.f32 %v1353_v47, %v3107_v21 }
 0x190   :  { %v1500_v24 = vpop.f32.mrf.mxu0 }
 0x191   :  { %v1498_v27 = vadd.f32 %v1497_v9, %v1449_v10 }
 0x193   :  { %v1579_v34 = vadd.f32 %v3171_v45, %v1498_v27 }
 0x194   :  { %v1402_v29 = vpop.f32.mrf.mxu2 }
 0x195   :  { %v1595_v31 = vmax.f32 %v1579_v34, 0.0  ;;  %v1403_v32 = vadd.f32 %v1402_v29, %v1354_v28 }
 0x196   :  { %v1451_v11 = vpop.f32.mrf.mxu3  ;;  %v1355_v8 = vpop.f32.mrf.mxu1 }
 0x197   :  { %v2381_v35 = vpack.c.bf16 %v1595_v31, %v1594_v30  ;;  %v1452_v44 = vadd.f32 %v1451_v11, %v1403_v32  ;;  %v1356_v38 = vadd.f32 %v1355_v8, %v3128_v42 }
 0x198   :  { %v1502_v36 = vpop.f32.mrf.mxu0 }
 0x199   :  { %2401 = vst [vmem:[%s3230_s3 + $0x20] sm:$0xff] %v2381_v35   ;;  %v1501_v39 = vadd.f32 %v1500_v24, %v1452_v44 }
 0x19b   :  { %v1580_v23 = vadd.f32 %v3171_v45, %v1501_v39 }
 0x19c   :  { %v1404_v22 = vpop.f32.mrf.mxu2 }
 0x19d   :  { %v1405_v41 = vadd.f32 %v1404_v22, %v1356_v38  ;;  %v1596_v40 = vmax.f32 %v1580_v23, 0.0 }
 0x19e   :  { %v1453_v43 = vpop.f32.mrf.mxu3  ;;  %v1358_v21 = vpop.f32.mrf.mxu1 }
 0x19f   :  { %v1454_v50 = vadd.f32 %v1453_v43, %v1405_v41  ;;  %v1359_v48 = vadd.f32 %v1358_v21, %v3137_v52 }
 0x1a0   :  { %v1505_v56 = vpop.f32.mrf.mxu0 }
 0x1a1   :  { %v1503_v46 = vadd.f32 %v1502_v36, %v1454_v50 }
 0x1a3   :  { %v1581_v54 = vadd.f32 %v3171_v45, %v1503_v46 }
 0x1a4   :  { %v1407_v4 = vpop.f32.mrf.mxu2 }
 0x1a5   :  { %v1597_v49 = vmax.f32 %v1581_v54, 0.0  ;;  %v1408_v51 = vadd.f32 %v1407_v4, %v1359_v48 }
 0x1a6   :  { %v1456_v55 = vpop.f32.mrf.mxu3  ;;  %v1360_v42 = vpop.f32.mrf.mxu1 }
 0x1a7   :  { %v2386_v53 = vpack.c.bf16 %v1597_v49, %v1596_v40  ;;  %v1457_v62 = vadd.f32 %v1456_v55, %v1408_v51  ;;  %v1361_v57 = vadd.f32 %v1360_v42, %v3158_v17 }
 0x1a8   :  { %v1507_v58 = vpop.f32.mrf.mxu0 }
 0x1a9   :  { %2402 = vst [vmem:[%s3230_s3 + $0x28] sm:$0xff] %v2386_v53   ;;  %v1506_v59 = vadd.f32 %v1505_v56, %v1457_v62 }
 0x1ab   :  { %v1582_v0 = vadd.f32 %v3171_v45, %v1506_v59 }
 0x1ac   :  { %v1409_v18 = vpop.f32.mrf.mxu2 }
 0x1ad   :  { %v1410_v60 = vadd.f32 %v1409_v18, %v1361_v57  ;;  %v1598_v14 = vmax.f32 %v1582_v0, 0.0 }
 0x1ae   :  { %v1458_v61 = vpop.f32.mrf.mxu3  ;;  %v1363_v52 = vpop.f32.mrf.mxu1 }
 0x1af   :  { %v1459_v63 = vadd.f32 %v1458_v61, %v1410_v60  ;;  %v1364_v5 = vadd.f32 %v1363_v52, %v3161_v25 }
 0x1b0   :  { %v1510_v17 = vpop.f32.mrf.mxu0 }
 0x1b1   :  { %v1508_v1 = vadd.f32 %v1507_v58, %v1459_v63 }
 0x1b3   :  { %v1583_v2 = vadd.f32 %v3171_v45, %v1508_v1 }
 0x1b4   :  { %v1412_v7 = vpop.f32.mrf.mxu2 }
 0x1b5   :  { %v1599_v3 = vmax.f32 %v1583_v2, 0.0  ;;  %v1413_v37 = vadd.f32 %v1412_v7, %v1364_v5 }
 0x1b6   :  { %v1461_v15 = vpop.f32.mrf.mxu3  ;;  %v1365_v16 = vpop.f32.mrf.mxu1 }
 0x1b7   :  { %v2391_v9 = vpack.c.bf16 %v1599_v3, %v1598_v14  ;;  %v1462_v13 = vadd.f32 %v1461_v15, %v1413_v37  ;;  %v1366_v6 = vadd.f32 %v1365_v16, %v3164_v33 }
 0x1b8   :  { %v1512_v10 = vpop.f32.mrf.mxu0 }
 0x1b9   :  { %2403 = vst [vmem:[%s3230_s3 + $0x30] sm:$0xff] %v2391_v9   ;;  %v1511_v20 = vadd.f32 %v1510_v17, %v1462_v13 }
 0x1bb   :  { %v1584_v24 = vadd.f32 %v3171_v45, %v1511_v20 }
 0x1bc   :  { %v1414_v19 = vpop.f32.mrf.mxu2 }
 0x1bd   :  { %v1415_v12 = vadd.f32 %v1414_v19, %v1366_v6  ;;  %v1600_v34 = vmax.f32 %v1584_v24, 0.0 }
 0x1be   :  { %v1463_v47 = vpop.f32.mrf.mxu3 }
 0x1bf   :  { %v1464_v25 = vadd.f32 %v1463_v47, %v1415_v12 }
 0x1c1   :  { %v1513_v26 = vadd.f32 %v1512_v10, %v1464_v25 }
 0x1c3   :  { %v1585_v27 = vadd.f32 %v3171_v45, %v1513_v26 }
 0x1c5   :  { %v1601_v28 = vmax.f32 %v1585_v27, 0.0 }
 0x1c7   :  { %v2396_v29 = vpack.c.bf16 %v1601_v28, %v1600_v34 }
 0x1c9   :  { %2404 = vst [vmem:[%s3230_s3 + $0x38] sm:$0xff] %v2396_v29  }

// kernel: resnet101_forward.17
= control target key start
LH: loop header
LB: loop body
LE: loop exit
PB: predicated region body
PF: predicated region fallthrough
CT: control target
= control target key end

     0   :  { %s928_s1 = inlined_call_operand.vmem [shape: bf16[256,128], index: 1, kind: input, shape index: {}]   ;;  %s929_s0 = inlined_call_operand.vmem [shape: bf16[128,256], index: 0, kind: input, shape index: {}]   ;;  %s930_s2 = inlined_call_operand.vmem [shape: f32[1,128], index: 2, kind: input, shape index: {}]   ;;  %s931_s3 = inlined_call_operand.vmem [shape: bf16[128,128], index: 3, kind: output, shape index: {}]  }
   0x1   :  { %v646_v0 = vld [vmem:[%s928_s1 + $0x38] sm:$0xff]  ;;  %v645_v2 = vld [vmem:[%s928_s1 + $0x30] sm:$0xff]  ;;  %v644_v4 = vld [vmem:[%s928_s1 + $0x28] sm:$0xff] }
   0x2   :  { %v654_v1 = vld [vmem:[%s928_s1 + $0x78] sm:$0xff]  ;;  %274 = vmatpush.bf16.msra.mxu0 %v646_v0  ;;  %702 = vmatpush.bf16.msra.mxu2 %v646_v0  ;;  %v653_v3 = vld [vmem:[%s928_s1 + $0x70] sm:$0xff]  ;;  %v652_v5 = vld [vmem:[%s928_s1 + $0x68] sm:$0xff] }
   0x3   :  { %323 = vmatpush.bf16.msra.mxu1 %v654_v1  ;;  %710 = vmatpush.bf16.msra.mxu3 %v654_v1  ;;  %v643_v6 = vld [vmem:[%s928_s1 + $0x20] sm:$0xff]  ;;  %v642_v8 = vld [vmem:[%s928_s1 + $0x18] sm:$0xff]  ;;  %v641_v10 = vld [vmem:[%s928_s1 + $0x10] sm:$0xff] }
   0x4   :  { %v651_v7 = vld [vmem:[%s928_s1 + $0x60] sm:$0xff]  ;;  %v650_v9 = vld [vmem:[%s928_s1 + $0x58] sm:$0xff]  ;;  %v649_v11 = vld [vmem:[%s928_s1 + $0x50] sm:$0xff] }
   0x5   :  { %v640_v12 = vld [vmem:[%s928_s1 + $0x8] sm:$0xff]  ;;  %v639_v14 = vld [vmem:[%s928_s1] sm:$0xff]  ;;  %v505_v28 = vld [vmem:[%s929_s0 + $0x10] sm:$0xf] }
   0x6   :  { %275 = vmatpush.bf16.msra.mxu0 %v645_v2  ;;  %703 = vmatpush.bf16.msra.mxu2 %v645_v2  ;;  %v648_v13 = vld [vmem:[%s928_s1 + $0x48] sm:$0xff]  ;;  %v647_v15 = vld [vmem:[%s928_s1 + $0x40] sm:$0xff]  ;;  %v626_v29 = vld [vmem:[%s929_s0 + $0x14] sm:$0xf0] }
   0x7   :  { %324 = vmatpush.bf16.msra.mxu1 %v653_v3  ;;  %711 = vmatpush.bf16.msra.mxu3 %v653_v3  ;;  %v497_v16 = vld [vmem:[%s929_s0] sm:$0xf]  ;;  %v624_v17 = vld [vmem:[%s929_s0 + $0x4] sm:$0xf0]  ;;  %v623_v20 = vld [vmem:[%s929_s0 + $0x4] sm:$0xf]  ;;  %v506_v36 = vor.u32 %v626_v29, %v505_v28 }
   0x8   :  { %v529_v18 = vld [vmem:[%s929_s0 + $0x40] sm:$0xf]  ;;  %v632_v19 = vld [vmem:[%s929_s0 + $0x44] sm:$0xf0]  ;;  %v499_v21 = vld [vmem:[%s929_s0 + $0x8] sm:$0xf0]  ;;  %v498_v24 = vor.u32 %v624_v17, %v497_v16 }
   0x9   :  { %v631_v22 = vld [vmem:[%s929_s0 + $0x44] sm:$0xf]  ;;  %v531_v23 = vld [vmem:[%s929_s0 + $0x48] sm:$0xf0]  ;;  %v530_v25 = vor.u32 %v632_v19, %v529_v18  ;;  %v502_v26 = vor.u32 %v623_v20, %v499_v21  ;;  %v537_v30 = vld [vmem:[%s929_s0 + $0x50] sm:$0xf] }
   0xa   :  { %276 = vmatpush.bf16.msra.mxu0 %v644_v4  ;;  %704 = vmatpush.bf16.msra.mxu2 %v644_v4  ;;  %v534_v27 = vor.u32 %v631_v22, %v531_v23  ;;  %v634_v31 = vld [vmem:[%s929_s0 + $0x54] sm:$0xf0]  ;;  %v625_v32 = vld [vmem:[%s929_s0 + $0x14] sm:$0xf]  ;;  %v507_v33 = vld [vmem:[%s929_s0 + $0x18] sm:$0xf0] }
   0xb   :  { %325 = vmatpush.bf16.msra.mxu1 %v652_v5  ;;  %712 = vmatpush.bf16.msra.mxu3 %v652_v5  ;;  %v633_v34 = vld [vmem:[%s929_s0 + $0x54] sm:$0xf]  ;;  %v539_v35 = vld [vmem:[%s929_s0 + $0x58] sm:$0xf0]  ;;  %v538_v37 = vor.u32 %v634_v31, %v537_v30  ;;  %v510_v38 = vor.u32 %v625_v32, %v507_v33  ;;  %v513_v40 = vld [vmem:[%s929_s0 + $0x20] sm:$0xf] }
   0xc   :  { %v542_v39 = vor.u32 %v633_v34, %v539_v35  ;;  %v628_v41 = vld [vmem:[%s929_s0 + $0x24] sm:$0xf0]  ;;  %v545_v42 = vld [vmem:[%s929_s0 + $0x60] sm:$0xf]  ;;  %v627_v44 = vld [vmem:[%s929_s0 + $0x24] sm:$0xf] }
   0xd   :  { %v636_v43 = vld [vmem:[%s929_s0 + $0x64] sm:$0xf0]  ;;  %v515_v45 = vld [vmem:[%s929_s0 + $0x28] sm:$0xf0]  ;;  %v635_v46 = vld [vmem:[%s929_s0 + $0x64] sm:$0xf]  ;;  %v514_v48 = vor.u32 %v628_v41, %v513_v40 }
   0xe   :  { %277 = vmatpush.bf16.msra.mxu0 %v643_v6  ;;  %705 = vmatpush.bf16.msra.mxu2 %v643_v6  ;;  %v547_v47 = vld [vmem:[%s929_s0 + $0x68] sm:$0xf0]  ;;  %v546_v49 = vor.u32 %v636_v43, %v545_v42  ;;  %v518_v50 = vor.u32 %v627_v44, %v515_v45  ;;  %v521_v52 = vld [vmem:[%s929_s0 + $0x30] sm:$0xf]  ;;  %v630_v53 = vld [vmem:[%s929_s0 + $0x34] sm:$0xf0] }
   0xf   :  { %326 = vmatpush.bf16.msra.mxu1 %v651_v7  ;;  %713 = vmatpush.bf16.msra.mxu3 %v651_v7  ;;  %v550_v51 = vor.u32 %v635_v46, %v547_v47  ;;  %v553_v54 = vld [vmem:[%s929_s0 + $0x70] sm:$0xf]  ;;  %v638_v55 = vld [vmem:[%s929_s0 + $0x74] sm:$0xf0]  ;;  %v629_v56 = vld [vmem:[%s929_s0 + $0x34] sm:$0xf]  ;;  %v522_v60 = vor.u32 %v630_v53, %v521_v52 }
  0x10   :  { %v523_v57 = vld [vmem:[%s929_s0 + $0x38] sm:$0xf0]  ;;  %v637_v58 = vld [vmem:[%s929_s0 + $0x74] sm:$0xf]  ;;  %v554_v61 = vor.u32 %v638_v55, %v553_v54  ;;  %v886_v3 = vld [vmem:[%s930_s2] ss:$0 sm:$0xff] }
  0x11   :  { %v555_v59 = vld [vmem:[%s929_s0 + $0x78] sm:$0xf0]  ;;  %v526_v62 = vor.u32 %v629_v56, %v523_v57 }
  0x12   :  { %278 = vmatpush.bf16.msra.mxu0 %v642_v8  ;;  %706 = vmatpush.bf16.msra.mxu2 %v642_v8  ;;  %v558_v63 = vor.u32 %v637_v58, %v555_v59 }
  0x13   :  { %327 = vmatpush.bf16.msra.mxu1 %v650_v9  ;;  %714 = vmatpush.bf16.msra.mxu3 %v650_v9 }
  0x16   :  { %279 = vmatpush.bf16.msra.mxu0 %v641_v10  ;;  %707 = vmatpush.bf16.msra.mxu2 %v641_v10 }
  0x17   :  { %328 = vmatpush.bf16.msra.mxu1 %v649_v11  ;;  %715 = vmatpush.bf16.msra.mxu3 %v649_v11 }
  0x1a   :  { %280 = vmatpush.bf16.msra.mxu0 %v640_v12  ;;  %708 = vmatpush.bf16.msra.mxu2 %v640_v12 }
  0x1b   :  { %329 = vmatpush.bf16.msra.mxu1 %v648_v13  ;;  %716 = vmatpush.bf16.msra.mxu3 %v648_v13 }
  0x1e   :  { %281 = vmatpush.bf16.msra.mxu0 %v639_v14  ;;  %709 = vmatpush.bf16.msra.mxu2 %v639_v14 }
  0x1f   :  { %330 = vmatpush.bf16.msra.mxu1 %v647_v15  ;;  %717 = vmatpush.bf16.msra.mxu3 %v647_v15 }
  0x21   :  { %282 = vmatmul.bf16.vlgmr.msra.gmra.mxu0 %v498_v24  ;;  %302 = vmatmul.bf16.vlgmr.msra.gmra.mxu2 %v530_v25 }
  0x22   :  { %331 = vmatmul.bf16.vlgmr.msra.gmra.mxu1 %v502_v26  ;;  %351 = vmatmul.bf16.vlgmr.msra.gmra.mxu3 %v534_v27 }
  0x31   :  { %287 = vmatmul.bf16.gmra.mxu0 %v506_v36  ;;  %307 = vmatmul.bf16.gmra.mxu2 %v538_v37 }
  0x32   :  { %336 = vmatmul.bf16.gmra.mxu1 %v510_v38  ;;  %356 = vmatmul.bf16.gmra.mxu3 %v542_v39 }
  0x41   :  { %292 = vmatmul.bf16.gmra.mxu0 %v514_v48  ;;  %312 = vmatmul.bf16.gmra.mxu2 %v546_v49 }
  0x42   :  { %341 = vmatmul.bf16.gmra.mxu1 %v518_v50  ;;  %361 = vmatmul.bf16.gmra.mxu3 %v550_v51 }
  0x51   :  { %297 = vmatmul.bf16.gmra.mxu0 %v522_v60  ;;  %317 = vmatmul.bf16.gmra.mxu2 %v554_v61 }
  0x52   :  { %346 = vmatmul.bf16.gmra.mxu1 %v526_v62  ;;  %366 = vmatmul.bf16.gmra.mxu3 %v558_v63 }
  0x9e   :  { %v283_v0 = vpop.f32.mrf.mxu0 }
  0x9f   :  { %v332_v1 = vpop.f32.mrf.mxu1 }
  0xa0   :  { %v333_v2 = vadd.f32 %v332_v1, %v283_v0 }
  0xa2   :  { %v427_v8 = vadd.f32 %v886_v3, %v333_v2 }
  0xa4   :  { %v303_v4 = vpop.f32.mrf.mxu2  ;;  %v443_v12 = vmax.f32 %v427_v8, 0.0 }
  0xa5   :  { %v352_v5 = vpop.f32.mrf.mxu3 }
  0xa6   :  { %v285_v6 = vpop.f32.mrf.mxu0  ;;  %v353_v10 = vadd.f32 %v352_v5, %v303_v4 }
  0xa7   :  { %v334_v7 = vpop.f32.mrf.mxu1 }
  0xa8   :  { %v335_v9 = vadd.f32 %v334_v7, %v285_v6  ;;  %v435_v16 = vadd.f32 %v886_v3, %v353_v10 }
  0xaa   :  { %v428_v11 = vadd.f32 %v886_v3, %v335_v9  ;;  %v451_v22 = vmax.f32 %v435_v16, 0.0 }
  0xac   :  { %v444_v13 = vmax.f32 %v428_v11, 0.0  ;;  %v305_v14 = vpop.f32.mrf.mxu2 }
  0xad   :  { %v354_v15 = vpop.f32.mrf.mxu3 }
  0xae   :  { %v658_v17 = vpack.c.bf16 %v444_v13, %v443_v12  ;;  %v355_v18 = vadd.f32 %v354_v15, %v305_v14  ;;  %v288_v19 = vpop.f32.mrf.mxu0 }
  0xaf   :  { %v337_v20 = vpop.f32.mrf.mxu1 }
  0xb0   :  { %659 = vst [vmem:[%s931_s3] sm:$0xff] %v658_v17   ;;  %v436_v21 = vadd.f32 %v886_v3, %v355_v18  ;;  %v338_v25 = vadd.f32 %v337_v20, %v288_v19 }
  0xb2   :  { %v452_v23 = vmax.f32 %v436_v21, 0.0  ;;  %v429_v30 = vadd.f32 %v886_v3, %v338_v25 }
  0xb4   :  { %v678_v24 = vpack.c.bf16 %v452_v23, %v451_v22  ;;  %v308_v26 = vpop.f32.mrf.mxu2  ;;  %v445_v34 = vmax.f32 %v429_v30, 0.0 }
  0xb5   :  { %v357_v27 = vpop.f32.mrf.mxu3 }
  0xb6   :  { %698 = vst [vmem:[%s931_s3 + $0x20] sm:$0xff] %v678_v24   ;;  %v290_v28 = vpop.f32.mrf.mxu0  ;;  %v358_v32 = vadd.f32 %v357_v27, %v308_v26 }
  0xb7   :  { %v339_v29 = vpop.f32.mrf.mxu1 }
  0xb8   :  { %v340_v31 = vadd.f32 %v339_v29, %v290_v28  ;;  %v437_v38 = vadd.f32 %v886_v3, %v358_v32 }
  0xba   :  { %v430_v33 = vadd.f32 %v886_v3, %v340_v31  ;;  %v453_v44 = vmax.f32 %v437_v38, 0.0 }
  0xbc   :  { %v446_v35 = vmax.f32 %v430_v33, 0.0  ;;  %v310_v36 = vpop.f32.mrf.mxu2 }
  0xbd   :  { %v359_v37 = vpop.f32.mrf.mxu3 }
  0xbe   :  { %v663_v39 = vpack.c.bf16 %v446_v35, %v445_v34  ;;  %v360_v40 = vadd.f32 %v359_v37, %v310_v36  ;;  %v293_v41 = vpop.f32.mrf.mxu0 }
  0xbf   :  { %v342_v42 = vpop.f32.mrf.mxu1 }
  0xc0   :  { %695 = vst [vmem:[%s931_s3 + $0x8] sm:$0xff] %v663_v39   ;;  %v438_v43 = vadd.f32 %v886_v3, %v360_v40  ;;  %v343_v47 = vadd.f32 %v342_v42, %v293_v41 }
  0xc2   :  { %v454_v45 = vmax.f32 %v438_v43, 0.0  ;;  %v431_v52 = vadd.f32 %v886_v3, %v343_v47 }
  0xc4   :  { %v683_v46 = vpack.c.bf16 %v454_v45, %v453_v44  ;;  %v313_v48 = vpop.f32.mrf.mxu2  ;;  %v447_v56 = vmax.f32 %v431_v52, 0.0 }
  0xc5   :  { %v362_v49 = vpop.f32.mrf.mxu3 }
  0xc6   :  { %699 = vst [vmem:[%s931_s3 + $0x28] sm:$0xff] %v683_v46   ;;  %v295_v50 = vpop.f32.mrf.mxu0  ;;  %v363_v54 = vadd.f32 %v362_v49, %v313_v48 }
  0xc7   :  { %v344_v51 = vpop.f32.mrf.mxu1 }
  0xc8   :  { %v345_v53 = vadd.f32 %v344_v51, %v295_v50  ;;  %v439_v60 = vadd.f32 %v886_v3, %v363_v54 }
  0xca   :  { %v432_v55 = vadd.f32 %v886_v3, %v345_v53  ;;  %v455_v2 = vmax.f32 %v439_v60, 0.0 }
  0xcc   :  { %v448_v57 = vmax.f32 %v432_v55, 0.0  ;;  %v315_v58 = vpop.f32.mrf.mxu2 }
  0xcd   :  { %v364_v59 = vpop.f32.mrf.mxu3 }
  0xce   :  { %v668_v61 = vpack.c.bf16 %v448_v57, %v447_v56  ;;  %v365_v62 = vadd.f32 %v364_v59, %v315_v58  ;;  %v298_v63 = vpop.f32.mrf.mxu0 }
  0xcf   :  { %v347_v0 = vpop.f32.mrf.mxu1 }
  0xd0   :  { %696 = vst [vmem:[%s931_s3 + $0x10] sm:$0xff] %v668_v61   ;;  %v440_v1 = vadd.f32 %v886_v3, %v365_v62  ;;  %v348_v6 = vadd.f32 %v347_v0, %v298_v63 }
  0xd2   :  { %v456_v4 = vmax.f32 %v440_v1, 0.0  ;;  %v433_v11 = vadd.f32 %v886_v3, %v348_v6 }
  0xd4   :  { %v688_v5 = vpack.c.bf16 %v456_v4, %v455_v2  ;;  %v318_v7 = vpop.f32.mrf.mxu2  ;;  %v449_v15 = vmax.f32 %v433_v11, 0.0 }
  0xd5   :  { %v367_v8 = vpop.f32.mrf.mxu3 }
  0xd6   :  { %700 = vst [vmem:[%s931_s3 + $0x30] sm:$0xff] %v688_v5   ;;  %v300_v9 = vpop.f32.mrf.mxu0  ;;  %v368_v13 = vadd.f32 %v367_v8, %v318_v7 }
  0xd7   :  { %v349_v10 = vpop.f32.mrf.mxu1 }
  0xd8   :  { %v350_v12 = vadd.f32 %v349_v10, %v300_v9  ;;  %v441_v19 = vadd.f32 %v886_v3, %v368_v13 }
  0xda   :  { %v434_v14 = vadd.f32 %v886_v3, %v350_v12  ;;  %v457_v23 = vmax.f32 %v441_v19, 0.0 }
  0xdc   :  { %v450_v16 = vmax.f32 %v434_v14, 0.0  ;;  %v320_v17 = vpop.f32.mrf.mxu2 }
  0xdd   :  { %v369_v18 = vpop.f32.mrf.mxu3 }
  0xde   :  { %v673_v20 = vpack.c.bf16 %v450_v16, %v449_v15  ;;  %v370_v21 = vadd.f32 %v369_v18, %v320_v17 }
  0xe0   :  { %697 = vst [vmem:[%s931_s3 + $0x18] sm:$0xff] %v673_v20   ;;  %v442_v22 = vadd.f32 %v886_v3, %v370_v21 }
  0xe2   :  { %v458_v24 = vmax.f32 %v442_v22, 0.0 }
  0xe4   :  { %v693_v25 = vpack.c.bf16 %v458_v24, %v457_v23 }
  0xe6   :  { %701 = vst [vmem:[%s931_s3 + $0x38] sm:$0xff] %v693_v25  }

// kernel: resnet101_forward.16
= control target key start
LH: loop header
LB: loop body
LE: loop exit
PB: predicated region body
PF: predicated region fallthrough
CT: control target
= control target key end

     0   :  { %s1424_s15 = smov 0   ;;  %s1426_s16 = smov 0   ;;  %s1651_s0 = inlined_call_operand.vmem [shape: bf16[128,128], index: 0, kind: input, shape index: {}]   ;;  %s1652_s1 = inlined_call_operand.vmem [shape: bf16[128,256], index: 1, kind: input, shape index: {}]   ;;  %s1653_s2 = inlined_call_operand.vmem [shape: f32[1,256], index: 2, kind: input, shape index: {}]   ;;  %s1654_s3 = inlined_call_operand.vmem [shape: bf16[128,256], index: 3, kind: input, shape index: {}]   ;;  %s1655_s4 = inlined_call_operand.vmem [shape: bf16[128,256], index: 4, kind: output, shape index: {}]  }
   0x1   :  { %s1428_s17 = smov 0   ;;  %s1430_s18 = smov 0  }
   0x2   :  { %s1432_s19 = smov 0  }
   0x3 LB: > { %s29_s20 = sadd.s32 1, %s1393_s18  ;;  %s1111_s21 = sadd.s32 4294967295, %s1397_s19   ;;  %s1397_s19 = sphi %s1432_s19, %s14_s19   ;;  %s1393_s18 = sphi %s1430_s18, %s1661_s18   ;;  %s1389_s17 = sphi %s1428_s17, %s1660_s17   ;;  %s1385_s16 = sphi %s1426_s16, %s1659_s16   ;;  %s1381_s15 = sphi %s1424_s15, %s1658_s15  }
   0x4   : > { %p31_p0 = scmp.ge.s32.totalorder %s29_s20, 2  ;;  %p77_p1 = scmp.ne.s32.totalorder %s1385_s16, %s1381_s15 }
   0x5   : > { %p78_p2 = scmp.eq.s32.totalorder %s1397_s19, 0  ;;  %p163_p4 = scmp.eq.s32.totalorder %s1111_s21, 1 }
   0x6   : > { %s1663_s20 = smov (%p31_p0, %s29_s20), 0  ;;  %s70_s24 = sadd.s32 1, %s1385_s16 }
   0x7   : > { %p1456_p3 = por %p78_p2, %p77_p1  ;;  %s66_s23 = ssub.s32 %s1393_s18, %s1663_s20 }
   0x8   : > { %p68_p5 = scmp.eq.s32.totalorder %s66_s23, 0  ;;  %p1463_p6 = por %p163_p4, %p77_p1 }
   0x9   : > { %p1115_p7 = scmp.ge.s32.totalorder %s1397_s19, 2 }
   0xa   : > { %s1468_s26 = scalar_select %p68_p5, %s1385_s16, %s70_s24  }
   0xb   : > { %197 = sbr.rel (%p1115_p7) target bundleno = 56 (0x38), region = 20 }
  0x10   : > { %200 = sbr.rel (!%p1456_p3) target bundleno = 36 (0x24), region = 24  ;;  %s202_s27 = sand.u32 (%p1456_p3), 1, %s1385_s16  }
  0x11   : > { %s1117_s28 = sshll.u32 (%p1456_p3), %s1393_s18, 2  ;;  %s1116_s29 = sshll.u32 (%p1456_p3), %s202_s27, 6 }
  0x12   : > { %s1478_s6 = scalar_lea.vmem (%p1456_p3), %s1652_s1, %s1117_s28  ;;  %s204_s7 = scalar_lea.vmem (%p1456_p3), [#allocation3], %s1116_s29 }
  0x13   : > { %v226_v0 = vld [vmem:[%s1478_s6] sm:$0xf] (%p1456_p3)  ;;  %v228_v1 = vld [vmem:[%s1478_s6 + $0x8] sm:$0xf] (%p1456_p3)  ;;  %v230_v2 = vld [vmem:[%s1478_s6 + $0x10] sm:$0xf] (%p1456_p3) }
  0x14   : > { %227 = vst [vmem:[%s204_s7] sm:$0xf] (%p1456_p3), %v226_v0  ;;  %v232_v3 = vld [vmem:[%s1478_s6 + $0x18] sm:$0xf] (%p1456_p3)  ;;  %v234_v4 = vld [vmem:[%s1478_s6 + $0x20] sm:$0xf] (%p1456_p3) }
  0x15   : > { %229 = vst [vmem:[%s204_s7 + $0x4] sm:$0xf] %v228_v1  ;;  %v236_v5 = vld [vmem:[%s1478_s6 + $0x28] sm:$0xf]  ;;  %v238_v6 = vld [vmem:[%s1478_s6 + $0x30] sm:$0xf] }
  0x16   : > { %231 = vst [vmem:[%s204_s7 + $0x8] sm:$0xf] %v230_v2  ;;  %v240_v7 = vld [vmem:[%s1478_s6 + $0x38] sm:$0xf]  ;;  %v242_v8 = vld [vmem:[%s1478_s6 + $0x40] sm:$0xf] }
  0x17   : > { %233 = vst [vmem:[%s204_s7 + $0xc] sm:$0xf] %v232_v3  ;;  %v244_v9 = vld [vmem:[%s1478_s6 + $0x48] sm:$0xf]  ;;  %v246_v10 = vld [vmem:[%s1478_s6 + $0x50] sm:$0xf] }
  0x18   : > { %235 = vst [vmem:[%s204_s7 + $0x10] sm:$0xf] %v234_v4  ;;  %v248_v11 = vld [vmem:[%s1478_s6 + $0x58] sm:$0xf]  ;;  %v250_v12 = vld [vmem:[%s1478_s6 + $0x60] sm:$0xf] }
  0x19   : > { %237 = vst [vmem:[%s204_s7 + $0x14] sm:$0xf] %v236_v5  ;;  %v252_v13 = vld [vmem:[%s1478_s6 + $0x68] sm:$0xf]  ;;  %v254_v14 = vld [vmem:[%s1478_s6 + $0x70] sm:$0xf] }
  0x1a   : > { %239 = vst [vmem:[%s204_s7 + $0x18] sm:$0xf] %v238_v6  ;;  %v256_v15 = vld [vmem:[%s1478_s6 + $0x78] sm:$0xf] }
  0x1b   : > { %241 = vst [vmem:[%s204_s7 + $0x1c] sm:$0xf] %v240_v7 }
  0x1c   : > { %243 = vst [vmem:[%s204_s7 + $0x20] sm:$0xf] %v242_v8 }
  0x1d   : > { %245 = vst [vmem:[%s204_s7 + $0x24] sm:$0xf] %v244_v9 }
  0x1e   : > { %247 = vst [vmem:[%s204_s7 + $0x28] sm:$0xf] %v246_v10 }
  0x1f   : > { %249 = vst [vmem:[%s204_s7 + $0x2c] sm:$0xf] %v248_v11 }
  0x20   : > { %251 = vst [vmem:[%s204_s7 + $0x30] sm:$0xf] %v250_v12 }
  0x21   : > { %253 = vst [vmem:[%s204_s7 + $0x34] sm:$0xf] %v252_v13 }
  0x22   : > { %255 = vst [vmem:[%s204_s7 + $0x38] sm:$0xf] %v254_v14 }
  0x23   : > { %257 = vst [vmem:[%s204_s7 + $0x3c] sm:$0xf] %v256_v15 }
  0x24 PF: > { %319 = sbr.rel (!%p1456_p3) target bundleno = 56 (0x38), region = 69  ;;  %s321_s8 = sand.u32 (%p1456_p3), 1, %s1385_s16  }
  0x25   : > { %s1119_s9 = sshll.u32 (%p1456_p3), %s1393_s18, 2  ;;  %s1118_s10 = sshll.u32 (%p1456_p3), %s321_s8, 6 }
  0x26   : > { %s1503_s13 = scalar_lea.vmem (%p1456_p3), %s1654_s3, %s1119_s9  ;;  %s323_s14 = scalar_lea.vmem (%p1456_p3), [#allocation4], %s1118_s10 }
  0x27   : > { %v345_v16 = vld [vmem:[%s1503_s13] sm:$0xf] (%p1456_p3)  ;;  %v347_v17 = vld [vmem:[%s1503_s13 + $0x8] sm:$0xf] (%p1456_p3)  ;;  %v349_v18 = vld [vmem:[%s1503_s13 + $0x10] sm:$0xf] (%p1456_p3) }
  0x28   : > { %346 = vst [vmem:[%s323_s14] sm:$0xf] (%p1456_p3), %v345_v16  ;;  %v351_v19 = vld [vmem:[%s1503_s13 + $0x18] sm:$0xf] (%p1456_p3)  ;;  %v353_v20 = vld [vmem:[%s1503_s13 + $0x20] sm:$0xf] (%p1456_p3) }
  0x29   : > { %348 = vst [vmem:[%s323_s14 + $0x4] sm:$0xf] %v347_v17  ;;  %v355_v21 = vld [vmem:[%s1503_s13 + $0x28] sm:$0xf]  ;;  %v357_v22 = vld [vmem:[%s1503_s13 + $0x30] sm:$0xf] }
  0x2a   : > { %350 = vst [vmem:[%s323_s14 + $0x8] sm:$0xf] %v349_v18  ;;  %v359_v23 = vld [vmem:[%s1503_s13 + $0x38] sm:$0xf]  ;;  %v361_v24 = vld [vmem:[%s1503_s13 + $0x40] sm:$0xf] }
  0x2b   : > { %352 = vst [vmem:[%s323_s14 + $0xc] sm:$0xf] %v351_v19  ;;  %v363_v25 = vld [vmem:[%s1503_s13 + $0x48] sm:$0xf]  ;;  %v365_v26 = vld [vmem:[%s1503_s13 + $0x50] sm:$0xf] }
  0x2c   : > { %354 = vst [vmem:[%s323_s14 + $0x10] sm:$0xf] %v353_v20  ;;  %v367_v27 = vld [vmem:[%s1503_s13 + $0x58] sm:$0xf]  ;;  %v369_v28 = vld [vmem:[%s1503_s13 + $0x60] sm:$0xf] }
  0x2d   : > { %356 = vst [vmem:[%s323_s14 + $0x14] sm:$0xf] %v355_v21  ;;  %v371_v29 = vld [vmem:[%s1503_s13 + $0x68] sm:$0xf]  ;;  %v373_v30 = vld [vmem:[%s1503_s13 + $0x70] sm:$0xf] }
  0x2e   : > { %358 = vst [vmem:[%s323_s14 + $0x18] sm:$0xf] %v357_v22  ;;  %v375_v31 = vld [vmem:[%s1503_s13 + $0x78] sm:$0xf] }
  0x2f   : > { %360 = vst [vmem:[%s323_s14 + $0x1c] sm:$0xf] %v359_v23 }
  0x30   : > { %362 = vst [vmem:[%s323_s14 + $0x20] sm:$0xf] %v361_v24 }
  0x31   : > { %364 = vst [vmem:[%s323_s14 + $0x24] sm:$0xf] %v363_v25 }
  0x32   : > { %366 = vst [vmem:[%s323_s14 + $0x28] sm:$0xf] %v365_v26 }
  0x33   : > { %368 = vst [vmem:[%s323_s14 + $0x2c] sm:$0xf] %v367_v27 }
  0x34   : > { %370 = vst [vmem:[%s323_s14 + $0x30] sm:$0xf] %v369_v28 }
  0x35   : > { %372 = vst [vmem:[%s323_s14 + $0x34] sm:$0xf] %v371_v29 }
  0x36   : > { %374 = vst [vmem:[%s323_s14 + $0x38] sm:$0xf] %v373_v30 }
  0x37   : > { %376 = vst [vmem:[%s323_s14 + $0x3c] sm:$0xf] %v375_v31 }
  0x38 PF: > { %p1120_p8 = scmp.ge.s32.totalorder %s1397_s19, 1  ;;  %p431_p9 = scmp.lt.s32.totalorder %s1397_s19, 3 }
  0x3a   : > { %p432_p10 = pnand %p1120_p8, %p431_p9 }
  0x3b   : > { %s438_s21 = sand.u32 (!%p432_p10), 1, %s1381_s15   ;;  %p494_p11 = scmp.lt.s32.totalorder (!%p432_p10), %s1389_s17, 1 }
  0x3c   : > { %435 = sbr.rel (%p432_p10) target bundleno = 274 (0x112), region = 110  ;;  %s1525_s22 = sshll.u32 (!%p432_p10), %s438_s21, 6 }
  0x3d   : > { %s1528_s23 = scalar_lea.vmem (!%p432_p10), [#allocation3], %s1525_s22  ;;  %s1577_s5 = scalar_lea.vmem (!%p432_p10), [#allocation4], %s1525_s22 }
  0x41   : > { %v1207_v32 = vld [vmem:[%s1528_s23 + $0x38] sm:$0xff]  ;;  %s1532_s24 = scalar_select %p494_p11, %s1389_s17, 1  ;;  %v1206_v33 = vld [vmem:[%s1528_s23 + $0x30] sm:$0xff]  ;;  %v1205_v34 = vld [vmem:[%s1528_s23 + $0x28] sm:$0xff] }
  0x42   : > { %663 = vmatpush.bf16.msra.mxu0 %v1207_v32  ;;  %1294 = vmatpush.bf16.msra.mxu1 %v1207_v32  ;;  %v1204_v35 = vld [vmem:[%s1528_s23 + $0x20] sm:$0xff]  ;;  %v1203_v36 = vld [vmem:[%s1528_s23 + $0x18] sm:$0xff]  ;;  %v1202_v37 = vld [vmem:[%s1528_s23 + $0x10] sm:$0xff] }
  0x43   : > { %1295 = vmatpush.bf16.msra.mxu2 %v1207_v32  ;;  %1296 = vmatpush.bf16.msra.mxu3 %v1207_v32  ;;  %s496_s28 = scalar_lea.vmem %s1653_s2, %s1532_s24  ;;  %v1201_v38 = vld [vmem:[%s1528_s23 + $0x8] sm:$0xff]  ;;  %v1200_v39 = vld [vmem:[%s1528_s23] sm:$0xff]  ;;  %v1194_v41 = vld [vmem:[%s1651_s0 + $0x10] sm:$0xff]  ;;  %s1592_s24 = scalar_lea.vmem [#allocation5], %s1525_s22 }
  0x44   : > { %v1192_v40 = vld [vmem:[%s1651_s0] sm:$0xff]  ;;  %v1198_v43 = vld [vmem:[%s1651_s0 + $0x30] sm:$0xff]  ;;  %v1193_v44 = vld [vmem:[%s1651_s0 + $0x8] sm:$0xff]  ;;  %s1189_s22 = sshll.u32 (%p1463_p6), %s1389_s17, 2 }
  0x45   : > { %v1196_v42 = vld [vmem:[%s1651_s0 + $0x20] sm:$0xff]  ;;  %v1195_v45 = vld [vmem:[%s1651_s0 + $0x18] sm:$0xff]  ;;  %v1197_v46 = vld [vmem:[%s1651_s0 + $0x28] sm:$0xff]  ;;  %s890_s7 = scalar_lea.vmem (%p1463_p6), %s1655_s4, %s1189_s22 }
  0x46   : > { %664 = vmatpush.bf16.msra.mxu0 %v1206_v33  ;;  %1297 = vmatpush.bf16.msra.mxu1 %v1206_v33  ;;  %v1199_v47 = vld [vmem:[%s1651_s0 + $0x38] sm:$0xff]  ;;  %v1574_v50 = vld [vmem:[%s496_s28] ss:$0 sm:$0xff]  ;;  %v1281_v52 = vld [vmem:[%s1577_s5 + $0x10] sm:$0xff]  }
  0x47   : > { %1298 = vmatpush.bf16.msra.mxu2 %v1206_v33  ;;  %1299 = vmatpush.bf16.msra.mxu3 %v1206_v33  ;;  %v1209_v51 = vld [vmem:[%s1577_s5] sm:$0xff]   ;;  %v1218_v56 = vunpack.c.l.bf16 %v1281_v52  ;;  %v1219_v60 = vunpack.c.h.bf16 %v1281_v52  ;;  %v1285_v2 = vld [vmem:[%s1577_s5 + $0x30] sm:$0xff]   ;;  %v1280_v29 = vld [vmem:[%s1577_s5 + $0x8] sm:$0xff]  }
  0x48   : > { %v1210_v54 = vunpack.c.l.bf16 %v1209_v51  ;;  %v1211_v59 = vunpack.c.h.bf16 %v1209_v51  ;;  %v1283_v1 = vld [vmem:[%s1577_s5 + $0x20] sm:$0xff]   ;;  %v1234_v10 = vunpack.c.l.bf16 %v1285_v2  ;;  %v1235_v16 = vunpack.c.h.bf16 %v1285_v2  ;;  %v1282_v30 = vld [vmem:[%s1577_s5 + $0x18] sm:$0xff]  }
  0x49   : > { %v1226_v8 = vunpack.c.l.bf16 %v1283_v1  ;;  %v1227_v15 = vunpack.c.h.bf16 %v1283_v1  ;;  %v1286_v51 = vld [vmem:[%s1577_s5 + $0x38] sm:$0xff]  }
  0x4a   : > { %665 = vmatpush.bf16.msra.mxu0 %v1205_v34  ;;  %1300 = vmatpush.bf16.msra.mxu1 %v1205_v34  ;;  %v1239_v1 = vunpack.c.h.bf16 %v1286_v51 }
  0x4b   : > { %1301 = vmatpush.bf16.msra.mxu2 %v1205_v34  ;;  %1302 = vmatpush.bf16.msra.mxu3 %v1205_v34 }
  0x4e   : > { %666 = vmatpush.bf16.msra.mxu0 %v1204_v35  ;;  %1303 = vmatpush.bf16.msra.mxu1 %v1204_v35 }
  0x4f   : > { %1304 = vmatpush.bf16.msra.mxu2 %v1204_v35  ;;  %1305 = vmatpush.bf16.msra.mxu3 %v1204_v35 }
  0x52   : > { %667 = vmatpush.bf16.msra.mxu0 %v1203_v36  ;;  %1306 = vmatpush.bf16.msra.mxu1 %v1203_v36 }
  0x53   : > { %1307 = vmatpush.bf16.msra.mxu2 %v1203_v36  ;;  %1308 = vmatpush.bf16.msra.mxu3 %v1203_v36  ;;  %v1214_v36 = vunpack.c.l.bf16 %v1280_v29 }
  0x56   : > { %668 = vmatpush.bf16.msra.mxu0 %v1202_v37  ;;  %1309 = vmatpush.bf16.msra.mxu1 %v1202_v37 }
  0x57   : > { %1310 = vmatpush.bf16.msra.mxu2 %v1202_v37  ;;  %1311 = vmatpush.bf16.msra.mxu3 %v1202_v37 }
  0x5a   : > { %669 = vmatpush.bf16.msra.mxu0 %v1201_v38  ;;  %1312 = vmatpush.bf16.msra.mxu1 %v1201_v38 }
  0x5b   : > { %1313 = vmatpush.bf16.msra.mxu2 %v1201_v38  ;;  %1314 = vmatpush.bf16.msra.mxu3 %v1201_v38  ;;  %v1222_v38 = vunpack.c.l.bf16 %v1282_v30 }
  0x5e   : > { %670 = vmatpush.bf16.msra.mxu0 %v1200_v39  ;;  %1315 = vmatpush.bf16.msra.mxu1 %v1200_v39 }
  0x5f   : > { %1316 = vmatpush.bf16.msra.mxu2 %v1200_v39  ;;  %1317 = vmatpush.bf16.msra.mxu3 %v1200_v39 }
  0x61   : > { %671 = vmatmul.bf16.vlgmr.msra.gmra.mxu0 %v1192_v40  ;;  %681 = vmatmul.bf16.vlgmr.msra.gmra.mxu1 %v1194_v41 }
  0x62   : > { %691 = vmatmul.bf16.vlgmr.msra.gmra.mxu2 %v1196_v42  ;;  %701 = vmatmul.bf16.vlgmr.msra.gmra.mxu3 %v1198_v43  ;;  %v1215_v43 = vunpack.c.h.bf16 %v1280_v29 }
  0x71   : > { %676 = vmatmul.bf16.gmra.mxu0 %v1193_v44  ;;  %686 = vmatmul.bf16.gmra.mxu1 %v1195_v45  ;;  %v1223_v44 = vunpack.c.h.bf16 %v1282_v30 }
  0x72   : > { %696 = vmatmul.bf16.gmra.mxu2 %v1197_v46  ;;  %706 = vmatmul.bf16.gmra.mxu3 %v1199_v47 }
  0xde   : > { %v672_v48 = vpop.f32.mrf.mxu0  ;;  %v682_v49 = vpop.f32.mrf.mxu1 }
  0xdf   : > { %v767_v53 = vadd.f32 %v1574_v50, %v672_v48  ;;  %v771_v55 = vadd.f32 %v1574_v50, %v682_v49  ;;  %v1284_v49 = vld [vmem:[%s1577_s5 + $0x28] sm:$0xff]  }
  0xe1   : > { %v815_v63 = vadd.f32 %v1210_v54, %v767_v53  ;;  %v819_v0 = vadd.f32 %v1218_v56, %v771_v55 }
  0xe3   : > { %v831_v11 = vmax.f32 %v815_v63, 0.0  ;;  %v835_v12 = vmax.f32 %v819_v0, 0.0  ;;  %v1231_v0 = vunpack.c.h.bf16 %v1284_v49 }
  0xe5   : > { %v692_v57 = vpop.f32.mrf.mxu2  ;;  %v702_v58 = vpop.f32.mrf.mxu3 }
  0xe6   : > { %v674_v61 = vpop.f32.mrf.mxu0  ;;  %v684_v62 = vpop.f32.mrf.mxu1  ;;  %v775_v7 = vadd.f32 %v1574_v50, %v692_v57  ;;  %v779_v9 = vadd.f32 %v1574_v50, %v702_v58  ;;  %v1230_v57 = vunpack.c.l.bf16 %v1284_v49 }
  0xe7   : > { %v768_v3 = vadd.f32 %v1574_v50, %v674_v61  ;;  %v772_v4 = vadd.f32 %v1574_v50, %v684_v62 }
  0xe8   : > { %v823_v21 = vadd.f32 %v1226_v8, %v775_v7  ;;  %v827_v22 = vadd.f32 %v1234_v10, %v779_v9 }
  0xe9   : > { %v816_v5 = vadd.f32 %v1211_v59, %v768_v3  ;;  %v820_v6 = vadd.f32 %v1219_v60, %v772_v4  ;;  %v1238_v59 = vunpack.c.l.bf16 %v1286_v51 }
  0xea   : > { %v839_v31 = vmax.f32 %v823_v21, 0.0  ;;  %v843_v32 = vmax.f32 %v827_v22, 0.0 }
  0xeb   : > { %v832_v13 = vmax.f32 %v816_v5, 0.0  ;;  %v836_v14 = vmax.f32 %v820_v6, 0.0 }
  0xed   : > { %v1243_v17 = vpack.c.bf16 %v832_v13, %v831_v11  ;;  %v1253_v18 = vpack.c.bf16 %v836_v14, %v835_v12  ;;  %v694_v19 = vpop.f32.mrf.mxu2  ;;  %v704_v20 = vpop.f32.mrf.mxu3 }
  0xee   : > { %v776_v23 = vadd.f32 %v1574_v50, %v694_v19  ;;  %v780_v24 = vadd.f32 %v1574_v50, %v704_v20  ;;  %v677_v25 = vpop.f32.mrf.mxu0  ;;  %v687_v26 = vpop.f32.mrf.mxu1 }
  0xef   : > { %1244 = vst [vmem:[%s1592_s24] sm:$0xff] %v1243_v17   ;;  %v769_v35 = vadd.f32 %v1574_v50, %v677_v25  ;;  %v773_v37 = vadd.f32 %v1574_v50, %v687_v26 }
  0xf0   : > { %1288 = vst [vmem:[%s1592_s24 + $0x10] sm:$0xff] %v1253_v18   ;;  %v824_v27 = vadd.f32 %v1227_v15, %v776_v23  ;;  %v828_v28 = vadd.f32 %v1235_v16, %v780_v24 }
  0xf1   : > { %v817_v47 = vadd.f32 %v1214_v36, %v769_v35  ;;  %v821_v48 = vadd.f32 %v1222_v38, %v773_v37 }
  0xf2   : > { %v840_v33 = vmax.f32 %v824_v27, 0.0  ;;  %v844_v34 = vmax.f32 %v828_v28, 0.0 }
  0xf3   : > { %v833_v60 = vmax.f32 %v817_v47, 0.0  ;;  %v837_v61 = vmax.f32 %v821_v48, 0.0 }
  0xf4   : > { %v1263_v39 = vpack.c.bf16 %v840_v33, %v839_v31  ;;  %v1273_v40 = vpack.c.bf16 %v844_v34, %v843_v32 }
  0xf5   : > { %v697_v41 = vpop.f32.mrf.mxu2  ;;  %v707_v42 = vpop.f32.mrf.mxu3 }
  0xf6   : > { %1290 = vst [vmem:[%s1592_s24 + $0x20] sm:$0xff] %v1263_v39   ;;  %v679_v45 = vpop.f32.mrf.mxu0  ;;  %v689_v46 = vpop.f32.mrf.mxu1  ;;  %v777_v56 = vadd.f32 %v1574_v50, %v697_v41  ;;  %v781_v58 = vadd.f32 %v1574_v50, %v707_v42  ;;  %v909_v18 = vld [vmem:[%s1592_s24 + $0x4] sm:$0xf] (%p1463_p6) }
  0xf7   : > { %1292 = vst [vmem:[%s1592_s24 + $0x30] sm:$0xff] %v1273_v40   ;;  %v770_v52 = vadd.f32 %v1574_v50, %v679_v45  ;;  %v774_v53 = vadd.f32 %v1574_v50, %v689_v46  ;;  %v915_v21 = vld [vmem:[%s1592_s24 + $0x10] sm:$0xf] (%p1463_p6)  ;;  %v917_v22 = vld [vmem:[%s1592_s24 + $0x14] sm:$0xf] (%p1463_p6) }
  0xf8   : > { %v825_v6 = vadd.f32 %v1230_v57, %v777_v56  ;;  %v829_v7 = vadd.f32 %v1238_v59, %v781_v58  ;;  %910 = vst [vmem:[%s890_s7 + $0x8] sm:$0xf] (%p1463_p6), %v909_v18 }
  0xf9   : > { %v818_v54 = vadd.f32 %v1215_v43, %v770_v52  ;;  %v822_v55 = vadd.f32 %v1223_v44, %v774_v53  ;;  %916 = vst [vmem:[%s890_s7 + $0x20] sm:$0xf] (%p1463_p6), %v915_v21 }
  0xfa   : > { %v841_v12 = vmax.f32 %v825_v6, 0.0  ;;  %v845_v13 = vmax.f32 %v829_v7, 0.0  ;;  %918 = vst [vmem:[%s890_s7 + $0x28] sm:$0xf] (%p1463_p6), %v917_v22 }
  0xfb   : > { %v834_v62 = vmax.f32 %v818_v54, 0.0  ;;  %v838_v63 = vmax.f32 %v822_v55, 0.0 }
  0xfd   : > { %v1248_v2 = vpack.c.bf16 %v834_v62, %v833_v60  ;;  %v1258_v3 = vpack.c.bf16 %v838_v63, %v837_v61  ;;  %v699_v4 = vpop.f32.mrf.mxu2  ;;  %v709_v5 = vpop.f32.mrf.mxu3  ;;  %v923_v25 = vld [vmem:[%s1592_s24 + $0x20] sm:$0xf] (%p1463_p6)  ;;  %v925_v26 = vld [vmem:[%s1592_s24 + $0x24] sm:$0xf] (%p1463_p6) }
  0xfe   : > { %v778_v8 = vadd.f32 %v1574_v50, %v699_v4  ;;  %v782_v9 = vadd.f32 %v1574_v50, %v709_v5  ;;  %v907_v50 = vld [vmem:[%s1592_s24] sm:$0xf] (%p1463_p6)  ;;  %924 = vst [vmem:[%s890_s7 + $0x40] sm:$0xf] (%p1463_p6), %v923_v25  ;;  %v931_v29 = vld [vmem:[%s1592_s24 + $0x30] sm:$0xf] (%p1463_p6) }
  0xff   : > { %1287 = vst [vmem:[%s1592_s24 + $0x8] sm:$0xff] %v1248_v2   ;;  %v933_v30 = vld [vmem:[%s1592_s24 + $0x34] sm:$0xf] (%p1463_p6) }
 0x100   : > { %1289 = vst [vmem:[%s1592_s24 + $0x18] sm:$0xff] %v1258_v3   ;;  %v826_v10 = vadd.f32 %v1231_v0, %v778_v8  ;;  %v830_v11 = vadd.f32 %v1239_v1, %v782_v9 }
 0x101   : > { %908 = vst [vmem:[%s890_s7] sm:$0xf] (%p1463_p6), %v907_v50 }
 0x102   : > { %v842_v14 = vmax.f32 %v826_v10, 0.0  ;;  %v846_v15 = vmax.f32 %v830_v11, 0.0  ;;  %926 = vst [vmem:[%s890_s7 + $0x48] sm:$0xf] (%p1463_p6), %v925_v26 }
 0x103   : > { %885 = sbr.rel (!%p1463_p6) target bundleno = 274 (0x112), region = 130  ;;  %932 = vst [vmem:[%s890_s7 + $0x60] sm:$0xf] (%p1463_p6), %v931_v29 }
 0x104   : > { %v1268_v16 = vpack.c.bf16 %v842_v14, %v841_v12  ;;  %v1278_v17 = vpack.c.bf16 %v846_v15, %v845_v13  ;;  %934 = vst [vmem:[%s890_s7 + $0x68] sm:$0xf] (%p1463_p6), %v933_v30 }
 0x106   : > { %1291 = vst [vmem:[%s1592_s24 + $0x28] sm:$0xff] %v1268_v16   ;;  %v911_v19 = vld [vmem:[%s1592_s24 + $0x8] sm:$0xf] (%p1463_p6)  ;;  %v913_v20 = vld [vmem:[%s1592_s24 + $0xc] sm:$0xf] (%p1463_p6) }
 0x107   : > { %1293 = vst [vmem:[%s1592_s24 + $0x38] sm:$0xff] %v1278_v17   ;;  %v919_v23 = vld [vmem:[%s1592_s24 + $0x18] sm:$0xf] (%p1463_p6)  ;;  %v921_v24 = vld [vmem:[%s1592_s24 + $0x1c] sm:$0xf] (%p1463_p6) }
 0x108   : > { %912 = vst [vmem:[%s890_s7 + $0x10] sm:$0xf] %v911_v19 }
 0x109   : > { %914 = vst [vmem:[%s890_s7 + $0x18] sm:$0xf] %v913_v20 }
 0x10a   : > { %920 = vst [vmem:[%s890_s7 + $0x30] sm:$0xf] %v919_v23 }
 0x10b   : > { %922 = vst [vmem:[%s890_s7 + $0x38] sm:$0xf] %v921_v24 }
 0x10d   : > { %v927_v27 = vld [vmem:[%s1592_s24 + $0x28] sm:$0xf]  ;;  %v929_v28 = vld [vmem:[%s1592_s24 + $0x2c] sm:$0xf] }
 0x10e   : > { %928 = vst [vmem:[%s890_s7 + $0x50] sm:$0xf] %v927_v27  ;;  %v935_v31 = vld [vmem:[%s1592_s24 + $0x38] sm:$0xf]  ;;  %v937_v32 = vld [vmem:[%s1592_s24 + $0x3c] sm:$0xf] }
 0x10f   : > { %930 = vst [vmem:[%s890_s7 + $0x58] sm:$0xf] %v929_v28 }
 0x110   : > { %936 = vst [vmem:[%s890_s7 + $0x70] sm:$0xf] %v935_v31 }
 0x111   : > { %938 = vst [vmem:[%s890_s7 + $0x78] sm:$0xf] %v937_v32 }
 0x112 PF: > { %s14_s19 = sadd.s32 1, %s1397_s19   ;;  %s1658_s15 = smov %s1385_s16 }
 0x113   : > { %p11_p12 = scmp.ge.s32.totalorder %s14_s19, 4   ;;  %s1659_s16 = smov %s1468_s26 }
 0x114   : > { %s1660_s17 = smov %s1393_s18  ;;  %s1661_s18 = smov %s1663_s20 }
 0x115   :  { %13 = sbr.rel (!%p11_p12) target bundleno = 3 (0x3), region = 216 }

</bundles_post_ra>
